<compile_context>
chip_gen: v5e
topology: v5e:2x2
jax: 0.10.0
libtpu: 0.0.40
codegen_flags: <defaults>
</compile_context>

<pallas_src>
import functools

import jax
import jax.numpy as jnp
from jax.experimental import pallas as pl
from jax.experimental.pallas import tpu as pltpu

MXU_DTYPE = jnp.bfloat16          # matmul operand dtype (f32 accumulation)


# ----------------------------------------------------------------------------
# Small helpers
# ----------------------------------------------------------------------------
def _elu(x):
    return jnp.where(x > 0, x, jnp.exp(jnp.minimum(x, 0.0)) - 1.0)


def _apply_act(x, act):
    if act == "elu":
        return _elu(x)
    if act == "relu":
        return jnp.maximum(x, 0.0)
    return x


def _tile_m(m):
    """Lane-dim tile: 256 lanes per grid step when possible (>=2 steps for
    megacore sharding on v7x), otherwise the whole (already small) M."""
    return 256 if m % 256 == 0 else m


def _block_diag(mats):
    rows = sum(m.shape[0] for m in mats)
    cols = sum(m.shape[1] for m in mats)
    out = jnp.zeros((rows, cols), mats[0].dtype)
    r = c = 0
    for m in mats:
        out = out.at[r:r + m.shape[0], c:c + m.shape[1]].set(m)
        r += m.shape[0]
        c += m.shape[1]
    return out


_PARALLEL = pltpu.CompilerParams(dimension_semantics=("parallel",))


# ----------------------------------------------------------------------------
# Pallas kernels
# ----------------------------------------------------------------------------
def _matmul_act_kernel(w_ref, a_ref, b_ref, o_ref, *, act):
    acc = jnp.dot(w_ref[...], a_ref[...], preferred_element_type=jnp.float32)
    acc = acc + b_ref[...]
    o_ref[...] = _apply_act(acc, act).astype(o_ref.dtype)


def matmul_act(w, a, b, *, act, out_dtype=jnp.float32):
    """(Cout,K) @ (K,M) + b with fused activation; M maps to lanes."""
    cout, k = w.shape
    m = a.shape[1]
    tm = _tile_m(m)
    kern = functools.partial(_matmul_act_kernel, act=act)
    return pl.pallas_call(
        kern,
        out_shape=jax.ShapeDtypeStruct((cout, m), out_dtype),
        grid=(m // tm,),
        in_specs=[
            pl.BlockSpec((cout, k), lambda i: (0, 0)),
            pl.BlockSpec((k, tm), lambda i: (0, i)),
            pl.BlockSpec((cout, 1), lambda i: (0, 0)),
        ],
        out_specs=pl.BlockSpec((cout, tm), lambda i: (0, i)),
        compiler_params=_PARALLEL,
    )(w, a, b)


def _merge_kernel(w2_ref, a2_ref, b2_ref, ws_ref, as_ref, bs_ref, o_ref):
    # dual branch tail:  BN2(conv2(y))            (no activation)
    d = jnp.dot(w2_ref[...], a2_ref[...], preferred_element_type=jnp.float32)
    d = d + b2_ref[...]
    # single branch:     ELU(BNs(convS(x)))
    s = jnp.dot(ws_ref[...], as_ref[...], preferred_element_type=jnp.float32)
    s = _elu(s + bs_ref[...])
    # merge:             ReLU(dual + single)
    o_ref[...] = jnp.maximum(d + s, 0.0).astype(o_ref.dtype)


def merge_branches(w2, a2, b2, ws, a_s, bs, *, out_dtype):
    cout, k2 = w2.shape
    ks = ws.shape[1]
    m = a2.shape[1]
    tm = _tile_m(m)
    return pl.pallas_call(
        _merge_kernel,
        out_shape=jax.ShapeDtypeStruct((cout, m), out_dtype),
        grid=(m // tm,),
        in_specs=[
            pl.BlockSpec((cout, k2), lambda i: (0, 0)),
            pl.BlockSpec((k2, tm), lambda i: (0, i)),
            pl.BlockSpec((cout, 1), lambda i: (0, 0)),
            pl.BlockSpec((cout, ks), lambda i: (0, 0)),
            pl.BlockSpec((ks, tm), lambda i: (0, i)),
            pl.BlockSpec((cout, 1), lambda i: (0, 0)),
        ],
        out_specs=pl.BlockSpec((cout, tm), lambda i: (0, i)),
        compiler_params=_PARALLEL,
    )(w2, a2, b2, ws, a_s, bs)


def _convlstm_kernel(wg_ref, bg_ref, a_ref, c_ref, h_ref, cn_ref):
    a = a_ref[...]

    def gate(g):
        return jnp.dot(wg_ref[g], a, preferred_element_type=jnp.float32) + bg_ref[g]

    i_g = jax.nn.sigmoid(gate(0))
    f_g = jax.nn.sigmoid(gate(1))
    g_g = jnp.tanh(gate(2))
    o_g = jax.nn.sigmoid(gate(3))
    c_new = f_g * c_ref[...] + i_g * g_g
    cn_ref[...] = c_new
    h_ref[...] = o_g * jnp.tanh(c_new)


def convlstm_gates(wg, bg, a, c):
    """Fused ConvLSTM: 4 gate matmuls + nonlinearities + state update."""
    _, ch, k = wg.shape
    m = a.shape[1]
    tm = _tile_m(m)
    return pl.pallas_call(
        _convlstm_kernel,
        out_shape=(jax.ShapeDtypeStruct((ch, m), jnp.float32),
                   jax.ShapeDtypeStruct((ch, m), jnp.float32)),
        grid=(m // tm,),
        in_specs=[
            pl.BlockSpec((4, ch, k), lambda i: (0, 0, 0)),
            pl.BlockSpec((4, ch, 1), lambda i: (0, 0, 0)),
            pl.BlockSpec((k, tm), lambda i: (0, i)),
            pl.BlockSpec((ch, tm), lambda i: (0, i)),
        ],
        out_specs=(pl.BlockSpec((ch, tm), lambda i: (0, i)),
                   pl.BlockSpec((ch, tm), lambda i: (0, i))),
        compiler_params=_PARALLEL,
    )(wg, bg, a, c)


# ----------------------------------------------------------------------------
# XLA glue: transposed im2col (K, M) in bf16; weight / BN-fold preparation
# ----------------------------------------------------------------------------
def _patches(x_cnhw, kh, kw, stride, pad_h, pad_w):
    """Returns (kh*kw*Cin, N*Ho*Wo) bf16 patches and (N, Ho, Wo)."""
    x = x_cnhw.astype(MXU_DTYPE)
    c, n, h, w = x.shape
    xp = jnp.pad(x, ((0, 0), (0, 0), pad_h, pad_w))
    hp = h + pad_h[0] + pad_h[1]
    wp = w + pad_w[0] + pad_w[1]
    ho = (hp - kh) // stride + 1
    wo = (wp - kw) // stride + 1
    slabs = []
    for dy in range(kh):
        for dx in range(kw):
            slabs.append(
                xp[:, :, dy:dy + stride * ho:stride, dx:dx + stride * wo:stride]
                .reshape(c, n * ho * wo))
    return jnp.concatenate(slabs, axis=0), (n, ho, wo)


def patches3(x_cnhw):
    return _patches(x_cnhw, 3, 3, 1, (1, 1), (1, 1))


def fold_bn(w_oihw, b, bn, eps=1e-5):
    scale = bn["gamma"] / jnp.sqrt(bn["var"] + eps)
    w = w_oihw * scale[:, None, None, None]
    bias = (b - bn["mean"]) * scale + bn["beta"]
    return w, bias


def prep_conv(conv_p, bn_p=None):
    """Conv weight (Cout,Cin,KH,KW) -> (Cout, KH*KW*Cin) bf16 + bias (Cout,1) f32."""
    w, b = conv_p["w"], conv_p["b"]
    if bn_p is not None:
        w, b = fold_bn(w, b, bn_p)
    cout = w.shape[0]
    wm = jnp.transpose(w, (0, 2, 3, 1)).reshape(cout, -1).astype(MXU_DTYPE)
    return wm, b.astype(jnp.float32).reshape(cout, 1)


def prep_lstm(cell):
    """Stack the 4 gate weights as (4, Ch, 9*(Cx+Ch)) bf16 and biases (4, Ch, 1)."""
    wmats, bvecs = [], []
    for gx, gh in (("Wxi", "Whi"), ("Wxf", "Whf"), ("Wxc", "Whc"), ("Wxo", "Who")):
        w = jnp.concatenate([cell[gx]["w"], cell[gh]["w"]], axis=1)   # (Ch, Cx+Ch, 3, 3)
        wmats.append(jnp.transpose(w, (0, 2, 3, 1)).reshape(w.shape[0], -1))
        bvecs.append(cell[gx]["b"] + cell[gh]["b"])
    wg = jnp.stack(wmats).astype(MXU_DTYPE)
    bg = jnp.stack(bvecs).astype(jnp.float32)[:, :, None]
    return wg, bg


def prep_transup(conv_p, bn_p):
    """ConvTranspose2d(4,2,1) weight -> block-diagonal (4*Cout, 16*Cin) matrix
    implementing the 4 sub-pixel phase convolutions, plus tiled bias."""
    w_iohw, b = conv_p["w"], conv_p["b"]            # (Cin, Cout, 4, 4)
    wt = jnp.transpose(w_iohw, (1, 0, 2, 3))        # (Cout, Cin, 4, 4)
    wt, b = fold_bn(wt, b, bn_p)
    cout, cin = wt.shape[0], wt.shape[1]
    mats = []
    for r in (0, 1):
        for s in (0, 1):
            # phase (r, s) uses original kernel taps ky in [3-r, 1-r], kx in [3-s, 1-s]
            wp = wt[:, :, 3 - r::-2, :][:, :, :, 3 - s::-2]          # (Cout, Cin, 2, 2)
            mats.append(jnp.transpose(wp, (0, 2, 3, 1)).reshape(cout, 4 * cin))
    wblk = _block_diag(mats).astype(MXU_DTYPE)                       # (4*Cout, 16*Cin)
    bblk = jnp.tile(b.astype(jnp.float32), 4).reshape(4 * cout, 1)
    return wblk, bblk


# ----------------------------------------------------------------------------
# Sub-module apply functions (channel-leading layout (C, N, H, W))
# ----------------------------------------------------------------------------
def dual_single_merge(dual_p, single_p, x_cnhw, *, out_dtype):
    """ReLU( BN2(conv2(ELU(BN1(conv1(x))))) + ELU(BNs(convS(x))) )."""
    _, n, h, w = x_cnhw.shape
    ax, _ = patches3(x_cnhw)                                   # shared by both branches
    w1, b1 = prep_conv(dual_p["conv1"], dual_p["bn1"])
    y = matmul_act(w1, ax, b1, act="elu", out_dtype=MXU_DTYPE)
    ay, _ = patches3(y.reshape(w1.shape[0], n, h, w))
    w2, b2 = prep_conv(dual_p["conv2"], dual_p["bn2"])
    ws, bs = prep_conv(single_p["conv"], single_p["bn"])
    out = merge_branches(w2, ay, b2, ws, ax, bs, out_dtype=out_dtype)
    return out.reshape(w2.shape[0], n, h, w)


def transdown_apply(p, x_cnhw):
    wtd, btd = prep_conv(p["conv"], p["bn"])
    a, (n, ho, wo) = _patches(x_cnhw, 4, 4, 2, (1, 1), (1, 1))
    out = matmul_act(wtd, a, btd, act="elu", out_dtype=MXU_DTYPE)
    return out.reshape(wtd.shape[0], n, ho, wo)


def transup_apply(p, x_cnhw):
    """ConvTranspose2d(4, stride 2, pad 1) + BN + ELU via sub-pixel phases
    (one block-diagonal matmul; no zero-dilated input is materialized)."""
    wblk, bblk = prep_transup(p["conv"], p["bn"])
    cin, n, h, w = x_cnhw.shape
    cout = wblk.shape[0] // 4
    x = x_cnhw.astype(MXU_DTYPE)
    slabs = []
    for r in (0, 1):
        for s in (0, 1):
            xp = jnp.pad(x, ((0, 0), (0, 0), (1 - r, r), (1 - s, s)))
            for ty in (0, 1):
                for tx in (0, 1):
                    slabs.append(xp[:, :, ty:ty + h, tx:tx + w].reshape(cin, n * h * w))
    a = jnp.concatenate(slabs, axis=0)                               # (16*Cin, M)
    out = matmul_act(wblk, a, bblk, act="elu", out_dtype=MXU_DTYPE)  # (4*Cout, M)
    out = out.reshape(2, 2, cout, n, h, w)                           # (r, s, co, n, h, w)
    out = jnp.transpose(out, (2, 3, 4, 0, 5, 1)).reshape(cout, n, 2 * h, 2 * w)
    return out


def convlstm_apply(cell, x_cnhw, h_cnhw, c_cnhw):
    ch = cell["Wxi"]["w"].shape[0]
    _, n, hh, ww = x_cnhw.shape
    wg, bg = prep_lstm(cell)
    xh = jnp.concatenate([x_cnhw.astype(MXU_DTYPE), h_cnhw.astype(MXU_DTYPE)], axis=0)
    a, _ = patches3(xh)
    m = n * hh * ww
    h_new, c_new = convlstm_gates(wg, bg, a, c_cnhw.reshape(ch, m).astype(jnp.float32))
    return h_new.reshape(ch, n, hh, ww), c_new.reshape(ch, n, hh, ww)


# ----------------------------------------------------------------------------
# Parameter init (deterministic, same structure as the PyTorch module)
# ----------------------------------------------------------------------------
def init_params(enc_nch, key):
    keys = iter(jax.random.split(key, 4096))

    def conv_p(cin, cout, k):
        return {
            "w": 0.1 * jax.random.normal(next(keys), (cout, cin, k, k), jnp.float32),
            "b": 0.05 * jax.random.normal(next(keys), (cout,), jnp.float32),
        }

    def convT_p(cin, cout, k):
        return {
            "w": 0.1 * jax.random.normal(next(keys), (cin, cout, k, k), jnp.float32),
            "b": 0.05 * jax.random.normal(next(keys), (cout,), jnp.float32),
        }

    def bn_p(c):
        return {
            "gamma": 1.0 + 0.05 * jax.random.normal(next(keys), (c,), jnp.float32),
            "beta": 0.05 * jax.random.normal(next(keys), (c,), jnp.float32),
            "mean": 0.05 * jax.random.normal(next(keys), (c,), jnp.float32),
            "var": 1.0 + 0.05 * jnp.abs(jax.random.normal(next(keys), (c,), jnp.float32)),
        }

    def dual_p(cin, cout):
        return {"conv1": conv_p(cin, cin, 3), "bn1": bn_p(cin),
                "conv2": conv_p(cin, cout, 3), "bn2": bn_p(cout)}

    def single_p(cin, cout):
        return {"conv": conv_p(cin, cout, 3), "bn": bn_p(cout)}

    input_nch = 1
    res_nch = (input_nch,) + tuple(enc_nch)
    lstm_nch = tuple(enc_nch) + (enc_nch[-1],)

    params = {"cells": [], "encoder_dual": [], "encoder_single": [],
              "decoder_dual": [], "decoder_single": [],
              "transition_down": [], "transition_up": []}

    for nch in lstm_nch:
        cell = {name: conv_p(nch, nch, 3) for name in
                ("Wxi", "Whi", "Wxf", "Whf", "Wxc", "Whc", "Wxo", "Who")}
        params["cells"].append(cell)

    num_levels = len(enc_nch)
    for i in range(num_levels):
        params["encoder_dual"].append(dual_p(res_nch[i], res_nch[i + 1]))
        params["encoder_single"].append(single_p(res_nch[i], res_nch[i + 1]))
        params["transition_down"].append(
            {"conv": conv_p(enc_nch[i], enc_nch[i], 4), "bn": bn_p(enc_nch[i])})
        params["transition_up"].append(
            {"conv": convT_p(enc_nch[-1 - i], enc_nch[-1 - i], 4), "bn": bn_p(enc_nch[-1 - i])})
        params["decoder_dual"].append(dual_p(res_nch[-1 - i] * 2, res_nch[-2 - i]))
        params["decoder_single"].append(single_p(res_nch[-1 - i] * 2, res_nch[-2 - i]))
    return params


# ----------------------------------------------------------------------------
# Full forward pass (PyTorch-equivalent semantics; I/O in NCHW)
# ----------------------------------------------------------------------------
def lstm_unet_forward(params, x_nchw, h_list, c_list):
    # NCHW -> channel-leading (C, N, H, W)
    x = jnp.transpose(x_nchw, (1, 0, 2, 3))
    h_ = [jnp.transpose(h, (1, 0, 2, 3)) for h in h_list]
    c_ = [jnp.transpose(c, (1, 0, 2, 3)) for c in c_list]

    num_levels = len(params["encoder_dual"])

    # encoder
    for i in range(num_levels):
        layer_opt = dual_single_merge(params["encoder_dual"][i],
                                      params["encoder_single"][i],
                                      x, out_dtype=MXU_DTYPE)
        x = transdown_apply(params["transition_down"][i], layer_opt)
        h_[i], c_[i] = convlstm_apply(params["cells"][i], layer_opt, h_[i], c_[i])

    # bottleneck LSTM
    h_[-1], c_[-1] = convlstm_apply(params["cells"][-1], x, h_[-1], c_[-1])
    layer_opt = h_[-1]

    # decoder
    for i in range(num_levels):
        up = transup_apply(params["transition_up"][i], layer_opt)
        xcat = jnp.concatenate([up, h_[-2 - i].astype(MXU_DTYPE)], axis=0)
        last = (i == num_levels - 1)
        layer_opt = dual_single_merge(params["decoder_dual"][i],
                                      params["decoder_single"][i],
                                      xcat,
                                      out_dtype=jnp.float32 if last else MXU_DTYPE)

    y = jnp.transpose(layer_opt, (1, 0, 2, 3))
    h_out = [jnp.transpose(h, (1, 0, 2, 3)) for h in h_]
    c_out = [jnp.transpose(c, (1, 0, 2, 3)) for c in c_]
    return y, h_out, c_out


# ----------------------------------------------------------------------------
if __name__ == "__main__":
    enc_nch = (4, 8)
    N, H, W = 2, 16, 16

    key = jax.random.PRNGKey(0)
    kp, kx, kh, kc = jax.random.split(key, 4)
    params = init_params(enc_nch, kp)

    x = jax.random.normal(kx, (N, 1, H, W), jnp.float32)

    # lstm state shapes: one per encoder stage (at that stage's resolution)
    # plus one bottleneck state.
    state_shapes = []
    hh, ww = H, W
    for c in enc_nch:
        state_shapes.append((N, c, hh, ww))
        hh, ww = hh // 2, ww // 2
    state_shapes.append((N, enc_nch[-1], hh, ww))

    hkeys = jax.random.split(kh, len(state_shapes))
    ckeys = jax.random.split(kc, len(state_shapes))
    h_ = [jax.random.normal(hkeys[i], s, jnp.float32) for i, s in enumerate(state_shapes)]
    c_ = [jax.random.normal(ckeys[i], s, jnp.float32) for i, s in enumerate(state_shapes)]

    fwd = jax.jit(lstm_unet_forward)
    y_pred, h_out, c_out = fwd(params, x, h_, c_)
    jax.block_until_ready((y_pred, h_out, c_out))

    assert y_pred.shape == (N, 1, H, W), y_pred.shape
    assert all(ho.shape == s for ho, s in zip(h_out, state_shapes))
    assert all(co.shape == s for co, s in zip(c_out, state_shapes))
    print("KERNEL_OK")
</pallas_src>

<mosaic_0001>
module attributes {stable_mosaic.version = 11 : i64} {
  func.func @_matmul_act_kernel(%arg0: i32, %arg1: memref<1x9xbf16, #tpu.memory_space<vmem>>, %arg2: memref<9x256xbf16, #tpu.memory_space<vmem>>, %arg3: memref<1x1xf32, #tpu.memory_space<vmem>>, %arg4: memref<1x256xbf16, #tpu.memory_space<vmem>>) attributes {dimension_semantics = [#tpu.dimension_semantics<parallel>], iteration_bounds = array<i64: 2>, scalar_prefetch = 0 : i64, scratch_operands = 0 : i64, tpu.core_type = #tpu.core_type<tc>, window_params = [{pipeline_mode = #tpu.pipeline_mode<synchronous>, transform_indices = @transform_0, window_bounds = array<i64: 1, 9>}, {transform_indices = @transform_1, window_bounds = array<i64: 9, 256>}, {pipeline_mode = #tpu.pipeline_mode<synchronous>, transform_indices = @transform_2, window_bounds = array<i64: 1, 1>}, {transform_indices = @transform_3, window_bounds = array<i64: 1, 256>}]} {
    %c0 = arith.constant 0 : index
    %c0_0 = arith.constant 0 : index
    %0 = vector.load %arg1[%c0, %c0_0] : memref<1x9xbf16, #tpu.memory_space<vmem>>, vector<1x9xbf16>
    %c0_1 = arith.constant 0 : index
    %c0_2 = arith.constant 0 : index
    %1 = vector.load %arg2[%c0_1, %c0_2] : memref<9x256xbf16, #tpu.memory_space<vmem>>, vector<9x256xbf16>
    %cst = arith.constant dense<0.000000e+00> : vector<1x256xf32>
    %2 = tpu.matmul %0, %1, %cst {dimension_numbers = #tpu.dot_dimension_numbers<[1], [0], [0], [1], [0, 0, 1, 1], [], []>} : vector<1x9xbf16>, vector<9x256xbf16>, vector<1x256xf32> -> vector<1x256xf32>
    %c0_3 = arith.constant 0 : index
    %c0_4 = arith.constant 0 : index
    %3 = vector.load %arg3[%c0_3, %c0_4] : memref<1x1xf32, #tpu.memory_space<vmem>>, vector<1x1xf32>
    %4 = vector.broadcast %3 : vector<1x1xf32> to vector<1x256xf32>
    %5 = arith.addf %2, %4 : vector<1x256xf32>
    %cst_5 = arith.constant 0.000000e+00 : f32
    %6 = vector.broadcast %cst_5 : f32 to vector<1x256xf32>
    %7 = arith.cmpf ogt, %5, %6 : vector<1x256xf32>
    %cst_6 = arith.constant 0.000000e+00 : f32
    %8 = vector.broadcast %cst_6 : f32 to vector<1x256xf32>
    %9 = arith.minimumf %5, %8 : vector<1x256xf32>
    %10 = math.exp %9 : vector<1x256xf32>
    %cst_7 = arith.constant 1.000000e+00 : f32
    %11 = vector.broadcast %cst_7 : f32 to vector<1x256xf32>
    %12 = arith.subf %10, %11 : vector<1x256xf32>
    %13 = arith.select %7, %5, %12 : vector<1x256xi1>, vector<1x256xf32>
    %14 = arith.truncf %13 : vector<1x256xf32> to vector<1x256xbf16>
    %c0_8 = arith.constant 0 : index
    %c0_9 = arith.constant 0 : index
    %15 = vector.load %arg4[%c0_8, %c0_9] : memref<1x256xbf16, #tpu.memory_space<vmem>>, vector<1x256xbf16>
    tpu.vector_store %arg4[%c0_8, %c0_9], %14 {strides = array<i32>} : memref<1x256xbf16, #tpu.memory_space<vmem>>, vector<1x256xbf16>,
    return
  }
  func.func @transform_0(%arg0: i32) -> (i32, i32) {
    %c0_i32 = arith.constant 0 : i32
    %c0_i32_0 = arith.constant 0 : i32
    %c0_i32_1 = arith.constant 0 : i32
    return %c0_i32, %c0_i32_0 : i32, i32
  }
  func.func @transform_1(%arg0: i32) -> (i32, i32) {
    %c0_i32 = arith.constant 0 : i32
    %c0_i32_0 = arith.constant 0 : i32
    return %c0_i32, %arg0 : i32, i32
  }
  func.func @transform_2(%arg0: i32) -> (i32, i32) {
    %c0_i32 = arith.constant 0 : i32
    %c0_i32_0 = arith.constant 0 : i32
    %c0_i32_1 = arith.constant 0 : i32
    return %c0_i32, %c0_i32_0 : i32, i32
  }
  func.func @transform_3(%arg0: i32) -> (i32, i32) {
    %c0_i32 = arith.constant 0 : i32
    %c0_i32_0 = arith.constant 0 : i32
    return %c0_i32, %arg0 : i32, i32
  }
}

module attributes {stable_mosaic.version = 11 : i64} {
  func.func @_merge_kernel(%arg0: i32, %arg1: memref<4x9xbf16, #tpu.memory_space<vmem>>, %arg2: memref<9x256xbf16, #tpu.memory_space<vmem>>, %arg3: memref<4x1xf32, #tpu.memory_space<vmem>>, %arg4: memref<4x9xbf16, #tpu.memory_space<vmem>>, %arg5: memref<9x256xbf16, #tpu.memory_space<vmem>>, %arg6: memref<4x1xf32, #tpu.memory_space<vmem>>, %arg7: memref<4x256xbf16, #tpu.memory_space<vmem>>) attributes {dimension_semantics = [#tpu.dimension_semantics<parallel>], iteration_bounds = array<i64: 2>, scalar_prefetch = 0 : i64, scratch_operands = 0 : i64, tpu.core_type = #tpu.core_type<tc>, window_params = [{pipeline_mode = #tpu.pipeline_mode<synchronous>, transform_indices = @transform_0, window_bounds = array<i64: 4, 9>}, {transform_indices = @transform_1, window_bounds = array<i64: 9, 256>}, {pipeline_mode = #tpu.pipeline_mode<synchronous>, transform_indices = @transform_2, window_bounds = array<i64: 4, 1>}, {pipeline_mode = #tpu.pipeline_mode<synchronous>, transform_indices = @transform_3, window_bounds = array<i64: 4, 9>}, {transform_indices = @transform_4, window_bounds = array<i64: 9, 256>}, {pipeline_mode = #tpu.pipeline_mode<synchronous>, transform_indices = @transform_5, window_bounds = array<i64: 4, 1>}, {transform_indices = @transform_6, window_bounds = array<i64: 4, 256>}]} {
    %c0 = arith.constant 0 : index
    %c0_0 = arith.constant 0 : index
    %0 = vector.load %arg1[%c0, %c0_0] : memref<4x9xbf16, #tpu.memory_space<vmem>>, vector<4x9xbf16>
    %c0_1 = arith.constant 0 : index
    %c0_2 = arith.constant 0 : index
    %1 = vector.load %arg2[%c0_1, %c0_2] : memref<9x256xbf16, #tpu.memory_space<vmem>>, vector<9x256xbf16>
    %cst = arith.constant dense<0.000000e+00> : vector<4x256xf32>
    %2 = tpu.matmul %0, %1, %cst {dimension_numbers = #tpu.dot_dimension_numbers<[1], [0], [0], [1], [0, 0, 1, 1], [], []>} : vector<4x9xbf16>, vector<9x256xbf16>, vector<4x256xf32> -> vector<4x256xf32>
    %c0_3 = arith.constant 0 : index
    %c0_4 = arith.constant 0 : index
    %3 = vector.load %arg3[%c0_3, %c0_4] : memref<4x1xf32, #tpu.memory_space<vmem>>, vector<4x1xf32>
    %4 = vector.broadcast %3 : vector<4x1xf32> to vector<4x256xf32>
    %5 = arith.addf %2, %4 : vector<4x256xf32>
    %c0_5 = arith.constant 0 : index
    %c0_6 = arith.constant 0 : index
    %6 = vector.load %arg4[%c0_5, %c0_6] : memref<4x9xbf16, #tpu.memory_space<vmem>>, vector<4x9xbf16>
    %c0_7 = arith.constant 0 : index
    %c0_8 = arith.constant 0 : index
    %7 = vector.load %arg5[%c0_7, %c0_8] : memref<9x256xbf16, #tpu.memory_space<vmem>>, vector<9x256xbf16>
    %cst_9 = arith.constant dense<0.000000e+00> : vector<4x256xf32>
    %8 = tpu.matmul %6, %7, %cst_9 {dimension_numbers = #tpu.dot_dimension_numbers<[1], [0], [0], [1], [0, 0, 1, 1], [], []>} : vector<4x9xbf16>, vector<9x256xbf16>, vector<4x256xf32> -> vector<4x256xf32>
    %c0_10 = arith.constant 0 : index
    %c0_11 = arith.constant 0 : index
    %9 = vector.load %arg6[%c0_10, %c0_11] : memref<4x1xf32, #tpu.memory_space<vmem>>, vector<4x1xf32>
    %10 = vector.broadcast %9 : vector<4x1xf32> to vector<4x256xf32>
    %11 = arith.addf %8, %10 : vector<4x256xf32>
    %cst_12 = arith.constant 0.000000e+00 : f32
    %12 = vector.broadcast %cst_12 : f32 to vector<4x256xf32>
    %13 = arith.cmpf ogt, %11, %12 : vector<4x256xf32>
    %cst_13 = arith.constant 0.000000e+00 : f32
    %14 = vector.broadcast %cst_13 : f32 to vector<4x256xf32>
    %15 = arith.minimumf %11, %14 : vector<4x256xf32>
    %16 = math.exp %15 : vector<4x256xf32>
    %cst_14 = arith.constant 1.000000e+00 : f32
    %17 = vector.broadcast %cst_14 : f32 to vector<4x256xf32>
    %18 = arith.subf %16, %17 : vector<4x256xf32>
    %19 = arith.select %13, %11, %18 : vector<4x256xi1>, vector<4x256xf32>
    %20 = arith.addf %5, %19 : vector<4x256xf32>
    %cst_15 = arith.constant 0.000000e+00 : f32
    %21 = vector.broadcast %cst_15 : f32 to vector<4x256xf32>
    %22 = arith.maximumf %20, %21 : vector<4x256xf32>
    %23 = arith.truncf %22 : vector<4x256xf32> to vector<4x256xbf16>
    %c0_16 = arith.constant 0 : index
    %c0_17 = arith.constant 0 : index
    %24 = vector.load %arg7[%c0_16, %c0_17] : memref<4x256xbf16, #tpu.memory_space<vmem>>, vector<4x256xbf16>
    tpu.vector_store %arg7[%c0_16, %c0_17], %23 {strides = array<i32>} : memref<4x256xbf16, #tpu.memory_space<vmem>>, vector<4x256xbf16>,
    return
  }
  func.func @transform_0(%arg0: i32) -> (i32, i32) {
    %c0_i32 = arith.constant 0 : i32
    %c0_i32_0 = arith.constant 0 : i32
    %c0_i32_1 = arith.constant 0 : i32
    return %c0_i32, %c0_i32_0 : i32, i32
  }
  func.func @transform_1(%arg0: i32) -> (i32, i32) {
    %c0_i32 = arith.constant 0 : i32
    %c0_i32_0 = arith.constant 0 : i32
    return %c0_i32, %arg0 : i32, i32
  }
  func.func @transform_2(%arg0: i32) -> (i32, i32) {
    %c0_i32 = arith.constant 0 : i32
    %c0_i32_0 = arith.constant 0 : i32
    %c0_i32_1 = arith.constant 0 : i32
    return %c0_i32, %c0_i32_0 : i32, i32
  }
  func.func @transform_3(%arg0: i32) -> (i32, i32) {
    %c0_i32 = arith.constant 0 : i32
    %c0_i32_0 = arith.constant 0 : i32
    %c0_i32_1 = arith.constant 0 : i32
    return %c0_i32, %c0_i32_0 : i32, i32
  }
  func.func @transform_4(%arg0: i32) -> (i32, i32) {
    %c0_i32 = arith.constant 0 : i32
    %c0_i32_0 = arith.constant 0 : i32
    return %c0_i32, %arg0 : i32, i32
  }
  func.func @transform_5(%arg0: i32) -> (i32, i32) {
    %c0_i32 = arith.constant 0 : i32
    %c0_i32_0 = arith.constant 0 : i32
    %c0_i32_1 = arith.constant 0 : i32
    return %c0_i32, %c0_i32_0 : i32, i32
  }
  func.func @transform_6(%arg0: i32) -> (i32, i32) {
    %c0_i32 = arith.constant 0 : i32
    %c0_i32_0 = arith.constant 0 : i32
    return %c0_i32, %arg0 : i32, i32
  }
}

module attributes {stable_mosaic.version = 11 : i64} {
  func.func @_matmul_act_kernel(%arg0: i32, %arg1: memref<4x64xbf16, #tpu.memory_space<vmem>>, %arg2: memref<64x128xbf16, #tpu.memory_space<vmem>>, %arg3: memref<4x1xf32, #tpu.memory_space<vmem>>, %arg4: memref<4x128xbf16, #tpu.memory_space<vmem>>) attributes {dimension_semantics = [#tpu.dimension_semantics<parallel>], iteration_bounds = array<i64: 1>, scalar_prefetch = 0 : i64, scratch_operands = 0 : i64, tpu.core_type = #tpu.core_type<tc>, window_params = [{pipeline_mode = #tpu.pipeline_mode<synchronous>, transform_indices = @transform_0, window_bounds = array<i64: 4, 64>}, {transform_indices = @transform_1, window_bounds = array<i64: 64, 128>}, {pipeline_mode = #tpu.pipeline_mode<synchronous>, transform_indices = @transform_2, window_bounds = array<i64: 4, 1>}, {transform_indices = @transform_3, window_bounds = array<i64: 4, 128>}]} {
    %c0 = arith.constant 0 : index
    %c0_0 = arith.constant 0 : index
    %0 = vector.load %arg1[%c0, %c0_0] : memref<4x64xbf16, #tpu.memory_space<vmem>>, vector<4x64xbf16>
    %c0_1 = arith.constant 0 : index
    %c0_2 = arith.constant 0 : index
    %1 = vector.load %arg2[%c0_1, %c0_2] : memref<64x128xbf16, #tpu.memory_space<vmem>>, vector<64x128xbf16>
    %cst = arith.constant dense<0.000000e+00> : vector<4x128xf32>
    %2 = tpu.matmul %0, %1, %cst {dimension_numbers = #tpu.dot_dimension_numbers<[1], [0], [0], [1], [0, 0, 1, 1], [], []>} : vector<4x64xbf16>, vector<64x128xbf16>, vector<4x128xf32> -> vector<4x128xf32>
    %c0_3 = arith.constant 0 : index
    %c0_4 = arith.constant 0 : index
    %3 = vector.load %arg3[%c0_3, %c0_4] : memref<4x1xf32, #tpu.memory_space<vmem>>, vector<4x1xf32>
    %4 = vector.broadcast %3 : vector<4x1xf32> to vector<4x128xf32>
    %5 = arith.addf %2, %4 : vector<4x128xf32>
    %cst_5 = arith.constant 0.000000e+00 : f32
    %6 = vector.broadcast %cst_5 : f32 to vector<4x128xf32>
    %7 = arith.cmpf ogt, %5, %6 : vector<4x128xf32>
    %cst_6 = arith.constant 0.000000e+00 : f32
    %8 = vector.broadcast %cst_6 : f32 to vector<4x128xf32>
    %9 = arith.minimumf %5, %8 : vector<4x128xf32>
    %10 = math.exp %9 : vector<4x128xf32>
    %cst_7 = arith.constant 1.000000e+00 : f32
    %11 = vector.broadcast %cst_7 : f32 to vector<4x128xf32>
    %12 = arith.subf %10, %11 : vector<4x128xf32>
    %13 = arith.select %7, %5, %12 : vector<4x128xi1>, vector<4x128xf32>
    %14 = arith.truncf %13 : vector<4x128xf32> to vector<4x128xbf16>
    %c0_8 = arith.constant 0 : index
    %c0_9 = arith.constant 0 : index
    %15 = vector.load %arg4[%c0_8, %c0_9] : memref<4x128xbf16, #tpu.memory_space<vmem>>, vector<4x128xbf16>
    tpu.vector_store %arg4[%c0_8, %c0_9], %14 {strides = array<i32>} : memref<4x128xbf16, #tpu.memory_space<vmem>>, vector<4x128xbf16>,
    return
  }
  func.func @transform_0(%arg0: i32) -> (i32, i32) {
    %c0_i32 = arith.constant 0 : i32
    %c0_i32_0 = arith.constant 0 : i32
    %c0_i32_1 = arith.constant 0 : i32
    return %c0_i32, %c0_i32_0 : i32, i32
  }
  func.func @transform_1(%arg0: i32) -> (i32, i32) {
    %c0_i32 = arith.constant 0 : i32
    %c0_i32_0 = arith.constant 0 : i32
    return %c0_i32, %arg0 : i32, i32
  }
  func.func @transform_2(%arg0: i32) -> (i32, i32) {
    %c0_i32 = arith.constant 0 : i32
    %c0_i32_0 = arith.constant 0 : i32
    %c0_i32_1 = arith.constant 0 : i32
    return %c0_i32, %c0_i32_0 : i32, i32
  }
  func.func @transform_3(%arg0: i32) -> (i32, i32) {
    %c0_i32 = arith.constant 0 : i32
    %c0_i32_0 = arith.constant 0 : i32
    return %c0_i32, %arg0 : i32, i32
  }
}

module attributes {stable_mosaic.version = 11 : i64} {
  func.func @_matmul_act_kernel(%arg0: i32, %arg1: memref<4x36xbf16, #tpu.memory_space<vmem>>, %arg2: memref<36x128xbf16, #tpu.memory_space<vmem>>, %arg3: memref<4x1xf32, #tpu.memory_space<vmem>>, %arg4: memref<4x128xbf16, #tpu.memory_space<vmem>>) attributes {dimension_semantics = [#tpu.dimension_semantics<parallel>], iteration_bounds = array<i64: 1>, scalar_prefetch = 0 : i64, scratch_operands = 0 : i64, tpu.core_type = #tpu.core_type<tc>, window_params = [{pipeline_mode = #tpu.pipeline_mode<synchronous>, transform_indices = @transform_0, window_bounds = array<i64: 4, 36>}, {transform_indices = @transform_1, window_bounds = array<i64: 36, 128>}, {pipeline_mode = #tpu.pipeline_mode<synchronous>, transform_indices = @transform_2, window_bounds = array<i64: 4, 1>}, {transform_indices = @transform_3, window_bounds = array<i64: 4, 128>}]} {
    %c0 = arith.constant 0 : index
    %c0_0 = arith.constant 0 : index
    %0 = vector.load %arg1[%c0, %c0_0] : memref<4x36xbf16, #tpu.memory_space<vmem>>, vector<4x36xbf16>
    %c0_1 = arith.constant 0 : index
    %c0_2 = arith.constant 0 : index
    %1 = vector.load %arg2[%c0_1, %c0_2] : memref<36x128xbf16, #tpu.memory_space<vmem>>, vector<36x128xbf16>
    %cst = arith.constant dense<0.000000e+00> : vector<4x128xf32>
    %2 = tpu.matmul %0, %1, %cst {dimension_numbers = #tpu.dot_dimension_numbers<[1], [0], [0], [1], [0, 0, 1, 1], [], []>} : vector<4x36xbf16>, vector<36x128xbf16>, vector<4x128xf32> -> vector<4x128xf32>
    %c0_3 = arith.constant 0 : index
    %c0_4 = arith.constant 0 : index
    %3 = vector.load %arg3[%c0_3, %c0_4] : memref<4x1xf32, #tpu.memory_space<vmem>>, vector<4x1xf32>
    %4 = vector.broadcast %3 : vector<4x1xf32> to vector<4x128xf32>
    %5 = arith.addf %2, %4 : vector<4x128xf32>
    %cst_5 = arith.constant 0.000000e+00 : f32
    %6 = vector.broadcast %cst_5 : f32 to vector<4x128xf32>
    %7 = arith.cmpf ogt, %5, %6 : vector<4x128xf32>
    %cst_6 = arith.constant 0.000000e+00 : f32
    %8 = vector.broadcast %cst_6 : f32 to vector<4x128xf32>
    %9 = arith.minimumf %5, %8 : vector<4x128xf32>
    %10 = math.exp %9 : vector<4x128xf32>
    %cst_7 = arith.constant 1.000000e+00 : f32
    %11 = vector.broadcast %cst_7 : f32 to vector<4x128xf32>
    %12 = arith.subf %10, %11 : vector<4x128xf32>
    %13 = arith.select %7, %5, %12 : vector<4x128xi1>, vector<4x128xf32>
    %14 = arith.truncf %13 : vector<4x128xf32> to vector<4x128xbf16>
    %c0_8 = arith.constant 0 : index
    %c0_9 = arith.constant 0 : index
    %15 = vector.load %arg4[%c0_8, %c0_9] : memref<4x128xbf16, #tpu.memory_space<vmem>>, vector<4x128xbf16>
    tpu.vector_store %arg4[%c0_8, %c0_9], %14 {strides = array<i32>} : memref<4x128xbf16, #tpu.memory_space<vmem>>, vector<4x128xbf16>,
    return
  }
  func.func @transform_0(%arg0: i32) -> (i32, i32) {
    %c0_i32 = arith.constant 0 : i32
    %c0_i32_0 = arith.constant 0 : i32
    %c0_i32_1 = arith.constant 0 : i32
    return %c0_i32, %c0_i32_0 : i32, i32
  }
  func.func @transform_1(%arg0: i32) -> (i32, i32) {
    %c0_i32 = arith.constant 0 : i32
    %c0_i32_0 = arith.constant 0 : i32
    return %c0_i32, %arg0 : i32, i32
  }
  func.func @transform_2(%arg0: i32) -> (i32, i32) {
    %c0_i32 = arith.constant 0 : i32
    %c0_i32_0 = arith.constant 0 : i32
    %c0_i32_1 = arith.constant 0 : i32
    return %c0_i32, %c0_i32_0 : i32, i32
  }
  func.func @transform_3(%arg0: i32) -> (i32, i32) {
    %c0_i32 = arith.constant 0 : i32
    %c0_i32_0 = arith.constant 0 : i32
    return %c0_i32, %arg0 : i32, i32
  }
}

module attributes {stable_mosaic.version = 11 : i64} {
  func.func @_merge_kernel(%arg0: i32, %arg1: memref<8x36xbf16, #tpu.memory_space<vmem>>, %arg2: memref<36x128xbf16, #tpu.memory_space<vmem>>, %arg3: memref<8x1xf32, #tpu.memory_space<vmem>>, %arg4: memref<8x36xbf16, #tpu.memory_space<vmem>>, %arg5: memref<36x128xbf16, #tpu.memory_space<vmem>>, %arg6: memref<8x1xf32, #tpu.memory_space<vmem>>, %arg7: memref<8x128xbf16, #tpu.memory_space<vmem>>) attributes {dimension_semantics = [#tpu.dimension_semantics<parallel>], iteration_bounds = array<i64: 1>, scalar_prefetch = 0 : i64, scratch_operands = 0 : i64, tpu.core_type = #tpu.core_type<tc>, window_params = [{pipeline_mode = #tpu.pipeline_mode<synchronous>, transform_indices = @transform_0, window_bounds = array<i64: 8, 36>}, {transform_indices = @transform_1, window_bounds = array<i64: 36, 128>}, {pipeline_mode = #tpu.pipeline_mode<synchronous>, transform_indices = @transform_2, window_bounds = array<i64: 8, 1>}, {pipeline_mode = #tpu.pipeline_mode<synchronous>, transform_indices = @transform_3, window_bounds = array<i64: 8, 36>}, {transform_indices = @transform_4, window_bounds = array<i64: 36, 128>}, {pipeline_mode = #tpu.pipeline_mode<synchronous>, transform_indices = @transform_5, window_bounds = array<i64: 8, 1>}, {transform_indices = @transform_6, window_bounds = array<i64: 8, 128>}]} {
    %c0 = arith.constant 0 : index
    %c0_0 = arith.constant 0 : index
    %0 = vector.load %arg1[%c0, %c0_0] : memref<8x36xbf16, #tpu.memory_space<vmem>>, vector<8x36xbf16>
    %c0_1 = arith.constant 0 : index
    %c0_2 = arith.constant 0 : index
    %1 = vector.load %arg2[%c0_1, %c0_2] : memref<36x128xbf16, #tpu.memory_space<vmem>>, vector<36x128xbf16>
    %cst = arith.constant dense<0.000000e+00> : vector<8x128xf32>
    %2 = tpu.matmul %0, %1, %cst {dimension_numbers = #tpu.dot_dimension_numbers<[1], [0], [0], [1], [0, 0, 1, 1], [], []>} : vector<8x36xbf16>, vector<36x128xbf16>, vector<8x128xf32> -> vector<8x128xf32>
    %c0_3 = arith.constant 0 : index
    %c0_4 = arith.constant 0 : index
    %3 = vector.load %arg3[%c0_3, %c0_4] : memref<8x1xf32, #tpu.memory_space<vmem>>, vector<8x1xf32>
    %4 = vector.broadcast %3 : vector<8x1xf32> to vector<8x128xf32>
    %5 = arith.addf %2, %4 : vector<8x128xf32>
    %c0_5 = arith.constant 0 : index
    %c0_6 = arith.constant 0 : index
    %6 = vector.load %arg4[%c0_5, %c0_6] : memref<8x36xbf16, #tpu.memory_space<vmem>>, vector<8x36xbf16>
    %c0_7 = arith.constant 0 : index
    %c0_8 = arith.constant 0 : index
    %7 = vector.load %arg5[%c0_7, %c0_8] : memref<36x128xbf16, #tpu.memory_space<vmem>>, vector<36x128xbf16>
    %cst_9 = arith.constant dense<0.000000e+00> : vector<8x128xf32>
    %8 = tpu.matmul %6, %7, %cst_9 {dimension_numbers = #tpu.dot_dimension_numbers<[1], [0], [0], [1], [0, 0, 1, 1], [], []>} : vector<8x36xbf16>, vector<36x128xbf16>, vector<8x128xf32> -> vector<8x128xf32>
    %c0_10 = arith.constant 0 : index
    %c0_11 = arith.constant 0 : index
    %9 = vector.load %arg6[%c0_10, %c0_11] : memref<8x1xf32, #tpu.memory_space<vmem>>, vector<8x1xf32>
    %10 = vector.broadcast %9 : vector<8x1xf32> to vector<8x128xf32>
    %11 = arith.addf %8, %10 : vector<8x128xf32>
    %cst_12 = arith.constant 0.000000e+00 : f32
    %12 = vector.broadcast %cst_12 : f32 to vector<8x128xf32>
    %13 = arith.cmpf ogt, %11, %12 : vector<8x128xf32>
    %cst_13 = arith.constant 0.000000e+00 : f32
    %14 = vector.broadcast %cst_13 : f32 to vector<8x128xf32>
    %15 = arith.minimumf %11, %14 : vector<8x128xf32>
    %16 = math.exp %15 : vector<8x128xf32>
    %cst_14 = arith.constant 1.000000e+00 : f32
    %17 = vector.broadcast %cst_14 : f32 to vector<8x128xf32>
    %18 = arith.subf %16, %17 : vector<8x128xf32>
    %19 = arith.select %13, %11, %18 : vector<8x128xi1>, vector<8x128xf32>
    %20 = arith.addf %5, %19 : vector<8x128xf32>
    %cst_15 = arith.constant 0.000000e+00 : f32
    %21 = vector.broadcast %cst_15 : f32 to vector<8x128xf32>
    %22 = arith.maximumf %20, %21 : vector<8x128xf32>
    %23 = arith.truncf %22 : vector<8x128xf32> to vector<8x128xbf16>
    %c0_16 = arith.constant 0 : index
    %c0_17 = arith.constant 0 : index
    %24 = vector.load %arg7[%c0_16, %c0_17] : memref<8x128xbf16, #tpu.memory_space<vmem>>, vector<8x128xbf16>
    tpu.vector_store %arg7[%c0_16, %c0_17], %23 {strides = array<i32>} : memref<8x128xbf16, #tpu.memory_space<vmem>>, vector<8x128xbf16>,
    return
  }
  func.func @transform_0(%arg0: i32) -> (i32, i32) {
    %c0_i32 = arith.constant 0 : i32
    %c0_i32_0 = arith.constant 0 : i32
    %c0_i32_1 = arith.constant 0 : i32
    return %c0_i32, %c0_i32_0 : i32, i32
  }
  func.func @transform_1(%arg0: i32) -> (i32, i32) {
    %c0_i32 = arith.constant 0 : i32
    %c0_i32_0 = arith.constant 0 : i32
    return %c0_i32, %arg0 : i32, i32
  }
  func.func @transform_2(%arg0: i32) -> (i32, i32) {
    %c0_i32 = arith.constant 0 : i32
    %c0_i32_0 = arith.constant 0 : i32
    %c0_i32_1 = arith.constant 0 : i32
    return %c0_i32, %c0_i32_0 : i32, i32
  }
  func.func @transform_3(%arg0: i32) -> (i32, i32) {
    %c0_i32 = arith.constant 0 : i32
    %c0_i32_0 = arith.constant 0 : i32
    %c0_i32_1 = arith.constant 0 : i32
    return %c0_i32, %c0_i32_0 : i32, i32
  }
  func.func @transform_4(%arg0: i32) -> (i32, i32) {
    %c0_i32 = arith.constant 0 : i32
    %c0_i32_0 = arith.constant 0 : i32
    return %c0_i32, %arg0 : i32, i32
  }
  func.func @transform_5(%arg0: i32) -> (i32, i32) {
    %c0_i32 = arith.constant 0 : i32
    %c0_i32_0 = arith.constant 0 : i32
    %c0_i32_1 = arith.constant 0 : i32
    return %c0_i32, %c0_i32_0 : i32, i32
  }
  func.func @transform_6(%arg0: i32) -> (i32, i32) {
    %c0_i32 = arith.constant 0 : i32
    %c0_i32_0 = arith.constant 0 : i32
    return %c0_i32, %arg0 : i32, i32
  }
}

module attributes {stable_mosaic.version = 11 : i64} {
  func.func @_matmul_act_kernel(%arg0: i32, %arg1: memref<8x128xbf16, #tpu.memory_space<vmem>>, %arg2: memref<128x32xbf16, #tpu.memory_space<vmem>>, %arg3: memref<8x1xf32, #tpu.memory_space<vmem>>, %arg4: memref<8x32xbf16, #tpu.memory_space<vmem>>) attributes {dimension_semantics = [#tpu.dimension_semantics<parallel>], iteration_bounds = array<i64: 1>, scalar_prefetch = 0 : i64, scratch_operands = 0 : i64, tpu.core_type = #tpu.core_type<tc>, window_params = [{pipeline_mode = #tpu.pipeline_mode<synchronous>, transform_indices = @transform_0, window_bounds = array<i64: 8, 128>}, {transform_indices = @transform_1, window_bounds = array<i64: 128, 32>}, {pipeline_mode = #tpu.pipeline_mode<synchronous>, transform_indices = @transform_2, window_bounds = array<i64: 8, 1>}, {transform_indices = @transform_3, window_bounds = array<i64: 8, 32>}]} {
    %c0 = arith.constant 0 : index
    %c0_0 = arith.constant 0 : index
    %0 = vector.load %arg1[%c0, %c0_0] : memref<8x128xbf16, #tpu.memory_space<vmem>>, vector<8x128xbf16>
    %c0_1 = arith.constant 0 : index
    %c0_2 = arith.constant 0 : index
    %1 = vector.load %arg2[%c0_1, %c0_2] : memref<128x32xbf16, #tpu.memory_space<vmem>>, vector<128x32xbf16>
    %cst = arith.constant dense<0.000000e+00> : vector<8x32xf32>
    %2 = tpu.matmul %0, %1, %cst {dimension_numbers = #tpu.dot_dimension_numbers<[1], [0], [0], [1], [0, 0, 1, 1], [], []>} : vector<8x128xbf16>, vector<128x32xbf16>, vector<8x32xf32> -> vector<8x32xf32>
    %c0_3 = arith.constant 0 : index
    %c0_4 = arith.constant 0 : index
    %3 = vector.load %arg3[%c0_3, %c0_4] : memref<8x1xf32, #tpu.memory_space<vmem>>, vector<8x1xf32>
    %4 = vector.broadcast %3 : vector<8x1xf32> to vector<8x32xf32>
    %5 = arith.addf %2, %4 : vector<8x32xf32>
    %cst_5 = arith.constant 0.000000e+00 : f32
    %6 = vector.broadcast %cst_5 : f32 to vector<8x32xf32>
    %7 = arith.cmpf ogt, %5, %6 : vector<8x32xf32>
    %cst_6 = arith.constant 0.000000e+00 : f32
    %8 = vector.broadcast %cst_6 : f32 to vector<8x32xf32>
    %9 = arith.minimumf %5, %8 : vector<8x32xf32>
    %10 = math.exp %9 : vector<8x32xf32>
    %cst_7 = arith.constant 1.000000e+00 : f32
    %11 = vector.broadcast %cst_7 : f32 to vector<8x32xf32>
    %12 = arith.subf %10, %11 : vector<8x32xf32>
    %13 = arith.select %7, %5, %12 : vector<8x32xi1>, vector<8x32xf32>
    %14 = arith.truncf %13 : vector<8x32xf32> to vector<8x32xbf16>
    %c0_8 = arith.constant 0 : index
    %c0_9 = arith.constant 0 : index
    %15 = vector.load %arg4[%c0_8, %c0_9] : memref<8x32xbf16, #tpu.memory_space<vmem>>, vector<8x32xbf16>
    tpu.vector_store %arg4[%c0_8, %c0_9], %14 {strides = array<i32>} : memref<8x32xbf16, #tpu.memory_space<vmem>>, vector<8x32xbf16>,
    return
  }
  func.func @transform_0(%arg0: i32) -> (i32, i32) {
    %c0_i32 = arith.constant 0 : i32
    %c0_i32_0 = arith.constant 0 : i32
    %c0_i32_1 = arith.constant 0 : i32
    return %c0_i32, %c0_i32_0 : i32, i32
  }
  func.func @transform_1(%arg0: i32) -> (i32, i32) {
    %c0_i32 = arith.constant 0 : i32
    %c0_i32_0 = arith.constant 0 : i32
    return %c0_i32, %arg0 : i32, i32
  }
  func.func @transform_2(%arg0: i32) -> (i32, i32) {
    %c0_i32 = arith.constant 0 : i32
    %c0_i32_0 = arith.constant 0 : i32
    %c0_i32_1 = arith.constant 0 : i32
    return %c0_i32, %c0_i32_0 : i32, i32
  }
  func.func @transform_3(%arg0: i32) -> (i32, i32) {
    %c0_i32 = arith.constant 0 : i32
    %c0_i32_0 = arith.constant 0 : i32
    return %c0_i32, %arg0 : i32, i32
  }
}

module attributes {stable_mosaic.version = 11 : i64} {
  func.func @_convlstm_kernel(%arg0: i32, %arg1: memref<4x8x144xbf16, #tpu.memory_space<vmem>>, %arg2: memref<4x8x1xf32, #tpu.memory_space<vmem>>, %arg3: memref<144x32xbf16, #tpu.memory_space<vmem>>, %arg4: memref<8x32xf32, #tpu.memory_space<vmem>>, %arg5: memref<8x32xf32, #tpu.memory_space<vmem>>, %arg6: memref<8x32xf32, #tpu.memory_space<vmem>>) attributes {dimension_semantics = [#tpu.dimension_semantics<parallel>], iteration_bounds = array<i64: 1>, scalar_prefetch = 0 : i64, scratch_operands = 0 : i64, tpu.core_type = #tpu.core_type<tc>, window_params = [{pipeline_mode = #tpu.pipeline_mode<synchronous>, transform_indices = @transform_0, window_bounds = array<i64: 4, 8, 144>}, {pipeline_mode = #tpu.pipeline_mode<synchronous>, transform_indices = @transform_1, window_bounds = array<i64: 4, 8, 1>}, {transform_indices = @transform_2, window_bounds = array<i64: 144, 32>}, {transform_indices = @transform_3, window_bounds = array<i64: 8, 32>}, {transform_indices = @transform_4, window_bounds = array<i64: 8, 32>}, {transform_indices = @transform_5, window_bounds = array<i64: 8, 32>}]} {
    %c0 = arith.constant 0 : index
    %c0_0 = arith.constant 0 : index
    %0 = vector.load %arg3[%c0, %c0_0] : memref<144x32xbf16, #tpu.memory_space<vmem>>, vector<144x32xbf16>
    %c0_1 = arith.constant 0 : index
    %c0_2 = arith.constant 0 : index
    %c0_3 = arith.constant 0 : index
    %1 = vector.load %arg1[%c0_1, %c0_2, %c0_3] : memref<4x8x144xbf16, #tpu.memory_space<vmem>>, vector<1x8x144xbf16>
    %2 = vector.shape_cast %1 : vector<1x8x144xbf16> to vector<8x144xbf16>
    %cst = arith.constant dense<0.000000e+00> : vector<8x32xf32>
    %3 = tpu.matmul %2, %0, %cst {dimension_numbers = #tpu.dot_dimension_numbers<[1], [0], [0], [1], [0, 0, 1, 1], [], []>} : vector<8x144xbf16>, vector<144x32xbf16>, vector<8x32xf32> -> vector<8x32xf32>
    %c0_4 = arith.constant 0 : index
    %c0_5 = arith.constant 0 : index
    %c0_6 = arith.constant 0 : index
    %4 = vector.load %arg2[%c0_4, %c0_5, %c0_6] : memref<4x8x1xf32, #tpu.memory_space<vmem>>, vector<1x8x1xf32>
    %5 = vector.shape_cast %4 : vector<1x8x1xf32> to vector<8x1xf32>
    %6 = vector.broadcast %5 : vector<8x1xf32> to vector<8x32xf32>
    %7 = arith.addf %3, %6 : vector<8x32xf32>
    %8 = arith.negf %7 : vector<8x32xf32>
    %9 = math.exp %8 : vector<8x32xf32>
    %cst_7 = arith.constant 1.000000e+00 : f32
    %10 = vector.broadcast %cst_7 : f32 to vector<8x32xf32>
    %11 = arith.addf %10, %9 : vector<8x32xf32>
    %12 = arith.divf %10, %11 : vector<8x32xf32>
    %c1 = arith.constant 1 : index
    %c0_8 = arith.constant 0 : index
    %c0_9 = arith.constant 0 : index
    %13 = vector.load %arg1[%c1, %c0_8, %c0_9] : memref<4x8x144xbf16, #tpu.memory_space<vmem>>, vector<1x8x144xbf16>
    %14 = vector.shape_cast %13 : vector<1x8x144xbf16> to vector<8x144xbf16>
    %cst_10 = arith.constant dense<0.000000e+00> : vector<8x32xf32>
    %15 = tpu.matmul %14, %0, %cst_10 {dimension_numbers = #tpu.dot_dimension_numbers<[1], [0], [0], [1], [0, 0, 1, 1], [], []>} : vector<8x144xbf16>, vector<144x32xbf16>, vector<8x32xf32> -> vector<8x32xf32>
    %c1_11 = arith.constant 1 : index
    %c0_12 = arith.constant 0 : index
    %c0_13 = arith.constant 0 : index
    %16 = vector.load %arg2[%c1_11, %c0_12, %c0_13] : memref<4x8x1xf32, #tpu.memory_space<vmem>>, vector<1x8x1xf32>
    %17 = vector.shape_cast %16 : vector<1x8x1xf32> to vector<8x1xf32>
    %18 = vector.broadcast %17 : vector<8x1xf32> to vector<8x32xf32>
    %19 = arith.addf %15, %18 : vector<8x32xf32>
    %20 = arith.negf %19 : vector<8x32xf32>
    %21 = math.exp %20 : vector<8x32xf32>
    %cst_14 = arith.constant 1.000000e+00 : f32
    %22 = vector.broadcast %cst_14 : f32 to vector<8x32xf32>
    %23 = arith.addf %22, %21 : vector<8x32xf32>
    %24 = arith.divf %22, %23 : vector<8x32xf32>
    %c2 = arith.constant 2 : index
    %c0_15 = arith.constant 0 : index
    %c0_16 = arith.constant 0 : index
    %25 = vector.load %arg1[%c2, %c0_15, %c0_16] : memref<4x8x144xbf16, #tpu.memory_space<vmem>>, vector<1x8x144xbf16>
    %26 = vector.shape_cast %25 : vector<1x8x144xbf16> to vector<8x144xbf16>
    %cst_17 = arith.constant dense<0.000000e+00> : vector<8x32xf32>
    %27 = tpu.matmul %26, %0, %cst_17 {dimension_numbers = #tpu.dot_dimension_numbers<[1], [0], [0], [1], [0, 0, 1, 1], [], []>} : vector<8x144xbf16>, vector<144x32xbf16>, vector<8x32xf32> -> vector<8x32xf32>
    %c2_18 = arith.constant 2 : index
    %c0_19 = arith.constant 0 : index
    %c0_20 = arith.constant 0 : index
    %28 = vector.load %arg2[%c2_18, %c0_19, %c0_20] : memref<4x8x1xf32, #tpu.memory_space<vmem>>, vector<1x8x1xf32>
    %29 = vector.shape_cast %28 : vector<1x8x1xf32> to vector<8x1xf32>
    %30 = vector.broadcast %29 : vector<8x1xf32> to vector<8x32xf32>
    %31 = arith.addf %27, %30 : vector<8x32xf32>
    %32 = math.tanh %31 : vector<8x32xf32>
    %c3 = arith.constant 3 : index
    %c0_21 = arith.constant 0 : index
    %c0_22 = arith.constant 0 : index
    %33 = vector.load %arg1[%c3, %c0_21, %c0_22] : memref<4x8x144xbf16, #tpu.memory_space<vmem>>, vector<1x8x144xbf16>
    %34 = vector.shape_cast %33 : vector<1x8x144xbf16> to vector<8x144xbf16>
    %cst_23 = arith.constant dense<0.000000e+00> : vector<8x32xf32>
    %35 = tpu.matmul %34, %0, %cst_23 {dimension_numbers = #tpu.dot_dimension_numbers<[1], [0], [0], [1], [0, 0, 1, 1], [], []>} : vector<8x144xbf16>, vector<144x32xbf16>, vector<8x32xf32> -> vector<8x32xf32>
    %c3_24 = arith.constant 3 : index
    %c0_25 = arith.constant 0 : index
    %c0_26 = arith.constant 0 : index
    %36 = vector.load %arg2[%c3_24, %c0_25, %c0_26] : memref<4x8x1xf32, #tpu.memory_space<vmem>>, vector<1x8x1xf32>
    %37 = vector.shape_cast %36 : vector<1x8x1xf32> to vector<8x1xf32>
    %38 = vector.broadcast %37 : vector<8x1xf32> to vector<8x32xf32>
    %39 = arith.addf %35, %38 : vector<8x32xf32>
    %40 = arith.negf %39 : vector<8x32xf32>
    %41 = math.exp %40 : vector<8x32xf32>
    %cst_27 = arith.constant 1.000000e+00 : f32
    %42 = vector.broadcast %cst_27 : f32 to vector<8x32xf32>
    %43 = arith.addf %42, %41 : vector<8x32xf32>
    %44 = arith.divf %42, %43 : vector<8x32xf32>
    %c0_28 = arith.constant 0 : index
    %c0_29 = arith.constant 0 : index
    %45 = vector.load %arg4[%c0_28, %c0_29] : memref<8x32xf32, #tpu.memory_space<vmem>>, vector<8x32xf32>
    %46 = arith.mulf %24, %45 : vector<8x32xf32>
    %47 = arith.mulf %12, %32 : vector<8x32xf32>
    %48 = arith.addf %46, %47 : vector<8x32xf32>
    %c0_30 = arith.constant 0 : index
    %c0_31 = arith.constant 0 : index
    %49 = vector.load %arg6[%c0_30, %c0_31] : memref<8x32xf32, #tpu.memory_space<vmem>>, vector<8x32xf32>
    tpu.vector_store %arg6[%c0_30, %c0_31], %48 {strides = array<i32>} : memref<8x32xf32, #tpu.memory_space<vmem>>, vector<8x32xf32>,
    %50 = math.tanh %48 : vector<8x32xf32>
    %51 = arith.mulf %44, %50 : vector<8x32xf32>
    %c0_32 = arith.constant 0 : index
    %c0_33 = arith.constant 0 : index
    %52 = vector.load %arg5[%c0_32, %c0_33] : memref<8x32xf32, #tpu.memory_space<vmem>>, vector<8x32xf32>
    tpu.vector_store %arg5[%c0_32, %c0_33], %51 {strides = array<i32>} : memref<8x32xf32, #tpu.memory_space<vmem>>, vector<8x32xf32>,
    return
  }
  func.func @transform_0(%arg0: i32) -> (i32, i32, i32) {
    %c0_i32 = arith.constant 0 : i32
    %c0_i32_0 = arith.constant 0 : i32
    %c0_i32_1 = arith.constant 0 : i32
    %c0_i32_2 = arith.constant 0 : i32
    return %c0_i32, %c0_i32_0, %c0_i32_1 : i32, i32, i32
  }
  func.func @transform_1(%arg0: i32) -> (i32, i32, i32) {
    %c0_i32 = arith.constant 0 : i32
    %c0_i32_0 = arith.constant 0 : i32
    %c0_i32_1 = arith.constant 0 : i32
    %c0_i32_2 = arith.constant 0 : i32
    return %c0_i32, %c0_i32_0, %c0_i32_1 : i32, i32, i32
  }
  func.func @transform_2(%arg0: i32) -> (i32, i32) {
    %c0_i32 = arith.constant 0 : i32
    %c0_i32_0 = arith.constant 0 : i32
    return %c0_i32, %arg0 : i32, i32
  }
  func.func @transform_3(%arg0: i32) -> (i32, i32) {
    %c0_i32 = arith.constant 0 : i32
    %c0_i32_0 = arith.constant 0 : i32
    return %c0_i32, %arg0 : i32, i32
  }
  func.func @transform_4(%arg0: i32) -> (i32, i32) {
    %c0_i32 = arith.constant 0 : i32
    %c0_i32_0 = arith.constant 0 : i32
    return %c0_i32, %arg0 : i32, i32
  }
  func.func @transform_5(%arg0: i32) -> (i32, i32) {
    %c0_i32 = arith.constant 0 : i32
    %c0_i32_0 = arith.constant 0 : i32
    return %c0_i32, %arg0 : i32, i32
  }
}

module attributes {stable_mosaic.version = 11 : i64} {
  func.func @_matmul_act_kernel(%arg0: i32, %arg1: memref<32x128xbf16, #tpu.memory_space<vmem>>, %arg2: memref<128x32xbf16, #tpu.memory_space<vmem>>, %arg3: memref<32x1xf32, #tpu.memory_space<vmem>>, %arg4: memref<32x32xbf16, #tpu.memory_space<vmem>>) attributes {dimension_semantics = [#tpu.dimension_semantics<parallel>], iteration_bounds = array<i64: 1>, scalar_prefetch = 0 : i64, scratch_operands = 0 : i64, tpu.core_type = #tpu.core_type<tc>, window_params = [{pipeline_mode = #tpu.pipeline_mode<synchronous>, transform_indices = @transform_0, window_bounds = array<i64: 32, 128>}, {transform_indices = @transform_1, window_bounds = array<i64: 128, 32>}, {pipeline_mode = #tpu.pipeline_mode<synchronous>, transform_indices = @transform_2, window_bounds = array<i64: 32, 1>}, {transform_indices = @transform_3, window_bounds = array<i64: 32, 32>}]} {
    %c0 = arith.constant 0 : index
    %c0_0 = arith.constant 0 : index
    %0 = vector.load %arg1[%c0, %c0_0] : memref<32x128xbf16, #tpu.memory_space<vmem>>, vector<32x128xbf16>
    %c0_1 = arith.constant 0 : index
    %c0_2 = arith.constant 0 : index
    %1 = vector.load %arg2[%c0_1, %c0_2] : memref<128x32xbf16, #tpu.memory_space<vmem>>, vector<128x32xbf16>
    %cst = arith.constant dense<0.000000e+00> : vector<32x32xf32>
    %2 = tpu.matmul %0, %1, %cst {dimension_numbers = #tpu.dot_dimension_numbers<[1], [0], [0], [1], [0, 0, 1, 1], [], []>} : vector<32x128xbf16>, vector<128x32xbf16>, vector<32x32xf32> -> vector<32x32xf32>
    %c0_3 = arith.constant 0 : index
    %c0_4 = arith.constant 0 : index
    %3 = vector.load %arg3[%c0_3, %c0_4] : memref<32x1xf32, #tpu.memory_space<vmem>>, vector<32x1xf32>
    %4 = vector.broadcast %3 : vector<32x1xf32> to vector<32x32xf32>
    %5 = arith.addf %2, %4 : vector<32x32xf32>
    %cst_5 = arith.constant 0.000000e+00 : f32
    %6 = vector.broadcast %cst_5 : f32 to vector<32x32xf32>
    %7 = arith.cmpf ogt, %5, %6 : vector<32x32xf32>
    %cst_6 = arith.constant 0.000000e+00 : f32
    %8 = vector.broadcast %cst_6 : f32 to vector<32x32xf32>
    %9 = arith.minimumf %5, %8 : vector<32x32xf32>
    %10 = math.exp %9 : vector<32x32xf32>
    %cst_7 = arith.constant 1.000000e+00 : f32
    %11 = vector.broadcast %cst_7 : f32 to vector<32x32xf32>
    %12 = arith.subf %10, %11 : vector<32x32xf32>
    %13 = arith.select %7, %5, %12 : vector<32x32xi1>, vector<32x32xf32>
    %14 = arith.truncf %13 : vector<32x32xf32> to vector<32x32xbf16>
    %c0_8 = arith.constant 0 : index
    %c0_9 = arith.constant 0 : index
    %15 = vector.load %arg4[%c0_8, %c0_9] : memref<32x32xbf16, #tpu.memory_space<vmem>>, vector<32x32xbf16>
    tpu.vector_store %arg4[%c0_8, %c0_9], %14 {strides = array<i32>} : memref<32x32xbf16, #tpu.memory_space<vmem>>, vector<32x32xbf16>,
    return
  }
  func.func @transform_0(%arg0: i32) -> (i32, i32) {
    %c0_i32 = arith.constant 0 : i32
    %c0_i32_0 = arith.constant 0 : i32
    %c0_i32_1 = arith.constant 0 : i32
    return %c0_i32, %c0_i32_0 : i32, i32
  }
  func.func @transform_1(%arg0: i32) -> (i32, i32) {
    %c0_i32 = arith.constant 0 : i32
    %c0_i32_0 = arith.constant 0 : i32
    return %c0_i32, %arg0 : i32, i32
  }
  func.func @transform_2(%arg0: i32) -> (i32, i32) {
    %c0_i32 = arith.constant 0 : i32
    %c0_i32_0 = arith.constant 0 : i32
    %c0_i32_1 = arith.constant 0 : i32
    return %c0_i32, %c0_i32_0 : i32, i32
  }
  func.func @transform_3(%arg0: i32) -> (i32, i32) {
    %c0_i32 = arith.constant 0 : i32
    %c0_i32_0 = arith.constant 0 : i32
    return %c0_i32, %arg0 : i32, i32
  }
}

module attributes {stable_mosaic.version = 11 : i64} {
  func.func @_convlstm_kernel(%arg0: i32, %arg1: memref<4x8x144xbf16, #tpu.memory_space<vmem>>, %arg2: memref<4x8x1xf32, #tpu.memory_space<vmem>>, %arg3: memref<144x128xbf16, #tpu.memory_space<vmem>>, %arg4: memref<8x128xf32, #tpu.memory_space<vmem>>, %arg5: memref<8x128xf32, #tpu.memory_space<vmem>>, %arg6: memref<8x128xf32, #tpu.memory_space<vmem>>) attributes {dimension_semantics = [#tpu.dimension_semantics<parallel>], iteration_bounds = array<i64: 1>, scalar_prefetch = 0 : i64, scratch_operands = 0 : i64, tpu.core_type = #tpu.core_type<tc>, window_params = [{pipeline_mode = #tpu.pipeline_mode<synchronous>, transform_indices = @transform_0, window_bounds = array<i64: 4, 8, 144>}, {pipeline_mode = #tpu.pipeline_mode<synchronous>, transform_indices = @transform_1, window_bounds = array<i64: 4, 8, 1>}, {transform_indices = @transform_2, window_bounds = array<i64: 144, 128>}, {transform_indices = @transform_3, window_bounds = array<i64: 8, 128>}, {transform_indices = @transform_4, window_bounds = array<i64: 8, 128>}, {transform_indices = @transform_5, window_bounds = array<i64: 8, 128>}]} {
    %c0 = arith.constant 0 : index
    %c0_0 = arith.constant 0 : index
    %0 = vector.load %arg3[%c0, %c0_0] : memref<144x128xbf16, #tpu.memory_space<vmem>>, vector<144x128xbf16>
    %c0_1 = arith.constant 0 : index
    %c0_2 = arith.constant 0 : index
    %c0_3 = arith.constant 0 : index
    %1 = vector.load %arg1[%c0_1, %c0_2, %c0_3] : memref<4x8x144xbf16, #tpu.memory_space<vmem>>, vector<1x8x144xbf16>
    %2 = vector.shape_cast %1 : vector<1x8x144xbf16> to vector<8x144xbf16>
    %cst = arith.constant dense<0.000000e+00> : vector<8x128xf32>
    %3 = tpu.matmul %2, %0, %cst {dimension_numbers = #tpu.dot_dimension_numbers<[1], [0], [0], [1], [0, 0, 1, 1], [], []>} : vector<8x144xbf16>, vector<144x128xbf16>, vector<8x128xf32> -> vector<8x128xf32>
    %c0_4 = arith.constant 0 : index
    %c0_5 = arith.constant 0 : index
    %c0_6 = arith.constant 0 : index
    %4 = vector.load %arg2[%c0_4, %c0_5, %c0_6] : memref<4x8x1xf32, #tpu.memory_space<vmem>>, vector<1x8x1xf32>
    %5 = vector.shape_cast %4 : vector<1x8x1xf32> to vector<8x1xf32>
    %6 = vector.broadcast %5 : vector<8x1xf32> to vector<8x128xf32>
    %7 = arith.addf %3, %6 : vector<8x128xf32>
    %8 = arith.negf %7 : vector<8x128xf32>
    %9 = math.exp %8 : vector<8x128xf32>
    %cst_7 = arith.constant 1.000000e+00 : f32
    %10 = vector.broadcast %cst_7 : f32 to vector<8x128xf32>
    %11 = arith.addf %10, %9 : vector<8x128xf32>
    %12 = arith.divf %10, %11 : vector<8x128xf32>
    %c1 = arith.constant 1 : index
    %c0_8 = arith.constant 0 : index
    %c0_9 = arith.constant 0 : index
    %13 = vector.load %arg1[%c1, %c0_8, %c0_9] : memref<4x8x144xbf16, #tpu.memory_space<vmem>>, vector<1x8x144xbf16>
    %14 = vector.shape_cast %13 : vector<1x8x144xbf16> to vector<8x144xbf16>
    %cst_10 = arith.constant dense<0.000000e+00> : vector<8x128xf32>
    %15 = tpu.matmul %14, %0, %cst_10 {dimension_numbers = #tpu.dot_dimension_numbers<[1], [0], [0], [1], [0, 0, 1, 1], [], []>} : vector<8x144xbf16>, vector<144x128xbf16>, vector<8x128xf32> -> vector<8x128xf32>
    %c1_11 = arith.constant 1 : index
    %c0_12 = arith.constant 0 : index
    %c0_13 = arith.constant 0 : index
    %16 = vector.load %arg2[%c1_11, %c0_12, %c0_13] : memref<4x8x1xf32, #tpu.memory_space<vmem>>, vector<1x8x1xf32>
    %17 = vector.shape_cast %16 : vector<1x8x1xf32> to vector<8x1xf32>
    %18 = vector.broadcast %17 : vector<8x1xf32> to vector<8x128xf32>
    %19 = arith.addf %15, %18 : vector<8x128xf32>
    %20 = arith.negf %19 : vector<8x128xf32>
    %21 = math.exp %20 : vector<8x128xf32>
    %cst_14 = arith.constant 1.000000e+00 : f32
    %22 = vector.broadcast %cst_14 : f32 to vector<8x128xf32>
    %23 = arith.addf %22, %21 : vector<8x128xf32>
    %24 = arith.divf %22, %23 : vector<8x128xf32>
    %c2 = arith.constant 2 : index
    %c0_15 = arith.constant 0 : index
    %c0_16 = arith.constant 0 : index
    %25 = vector.load %arg1[%c2, %c0_15, %c0_16] : memref<4x8x144xbf16, #tpu.memory_space<vmem>>, vector<1x8x144xbf16>
    %26 = vector.shape_cast %25 : vector<1x8x144xbf16> to vector<8x144xbf16>
    %cst_17 = arith.constant dense<0.000000e+00> : vector<8x128xf32>
    %27 = tpu.matmul %26, %0, %cst_17 {dimension_numbers = #tpu.dot_dimension_numbers<[1], [0], [0], [1], [0, 0, 1, 1], [], []>} : vector<8x144xbf16>, vector<144x128xbf16>, vector<8x128xf32> -> vector<8x128xf32>
    %c2_18 = arith.constant 2 : index
    %c0_19 = arith.constant 0 : index
    %c0_20 = arith.constant 0 : index
    %28 = vector.load %arg2[%c2_18, %c0_19, %c0_20] : memref<4x8x1xf32, #tpu.memory_space<vmem>>, vector<1x8x1xf32>
    %29 = vector.shape_cast %28 : vector<1x8x1xf32> to vector<8x1xf32>
    %30 = vector.broadcast %29 : vector<8x1xf32> to vector<8x128xf32>
    %31 = arith.addf %27, %30 : vector<8x128xf32>
    %32 = math.tanh %31 : vector<8x128xf32>
    %c3 = arith.constant 3 : index
    %c0_21 = arith.constant 0 : index
    %c0_22 = arith.constant 0 : index
    %33 = vector.load %arg1[%c3, %c0_21, %c0_22] : memref<4x8x144xbf16, #tpu.memory_space<vmem>>, vector<1x8x144xbf16>
    %34 = vector.shape_cast %33 : vector<1x8x144xbf16> to vector<8x144xbf16>
    %cst_23 = arith.constant dense<0.000000e+00> : vector<8x128xf32>
    %35 = tpu.matmul %34, %0, %cst_23 {dimension_numbers = #tpu.dot_dimension_numbers<[1], [0], [0], [1], [0, 0, 1, 1], [], []>} : vector<8x144xbf16>, vector<144x128xbf16>, vector<8x128xf32> -> vector<8x128xf32>
    %c3_24 = arith.constant 3 : index
    %c0_25 = arith.constant 0 : index
    %c0_26 = arith.constant 0 : index
    %36 = vector.load %arg2[%c3_24, %c0_25, %c0_26] : memref<4x8x1xf32, #tpu.memory_space<vmem>>, vector<1x8x1xf32>
    %37 = vector.shape_cast %36 : vector<1x8x1xf32> to vector<8x1xf32>
    %38 = vector.broadcast %37 : vector<8x1xf32> to vector<8x128xf32>
    %39 = arith.addf %35, %38 : vector<8x128xf32>
    %40 = arith.negf %39 : vector<8x128xf32>
    %41 = math.exp %40 : vector<8x128xf32>
    %cst_27 = arith.constant 1.000000e+00 : f32
    %42 = vector.broadcast %cst_27 : f32 to vector<8x128xf32>
    %43 = arith.addf %42, %41 : vector<8x128xf32>
    %44 = arith.divf %42, %43 : vector<8x128xf32>
    %c0_28 = arith.constant 0 : index
    %c0_29 = arith.constant 0 : index
    %45 = vector.load %arg4[%c0_28, %c0_29] : memref<8x128xf32, #tpu.memory_space<vmem>>, vector<8x128xf32>
    %46 = arith.mulf %24, %45 : vector<8x128xf32>
    %47 = arith.mulf %12, %32 : vector<8x128xf32>
    %48 = arith.addf %46, %47 : vector<8x128xf32>
    %c0_30 = arith.constant 0 : index
    %c0_31 = arith.constant 0 : index
    %49 = vector.load %arg6[%c0_30, %c0_31] : memref<8x128xf32, #tpu.memory_space<vmem>>, vector<8x128xf32>
    tpu.vector_store %arg6[%c0_30, %c0_31], %48 {strides = array<i32>} : memref<8x128xf32, #tpu.memory_space<vmem>>, vector<8x128xf32>,
    %50 = math.tanh %48 : vector<8x128xf32>
    %51 = arith.mulf %44, %50 : vector<8x128xf32>
    %c0_32 = arith.constant 0 : index
    %c0_33 = arith.constant 0 : index
    %52 = vector.load %arg5[%c0_32, %c0_33] : memref<8x128xf32, #tpu.memory_space<vmem>>, vector<8x128xf32>
    tpu.vector_store %arg5[%c0_32, %c0_33], %51 {strides = array<i32>} : memref<8x128xf32, #tpu.memory_space<vmem>>, vector<8x128xf32>,
    return
  }
  func.func @transform_0(%arg0: i32) -> (i32, i32, i32) {
    %c0_i32 = arith.constant 0 : i32
    %c0_i32_0 = arith.constant 0 : i32
    %c0_i32_1 = arith.constant 0 : i32
    %c0_i32_2 = arith.constant 0 : i32
    return %c0_i32, %c0_i32_0, %c0_i32_1 : i32, i32, i32
  }
  func.func @transform_1(%arg0: i32) -> (i32, i32, i32) {
    %c0_i32 = arith.constant 0 : i32
    %c0_i32_0 = arith.constant 0 : i32
    %c0_i32_1 = arith.constant 0 : i32
    %c0_i32_2 = arith.constant 0 : i32
    return %c0_i32, %c0_i32_0, %c0_i32_1 : i32, i32, i32
  }
  func.func @transform_2(%arg0: i32) -> (i32, i32) {
    %c0_i32 = arith.constant 0 : i32
    %c0_i32_0 = arith.constant 0 : i32
    return %c0_i32, %arg0 : i32, i32
  }
  func.func @transform_3(%arg0: i32) -> (i32, i32) {
    %c0_i32 = arith.constant 0 : i32
    %c0_i32_0 = arith.constant 0 : i32
    return %c0_i32, %arg0 : i32, i32
  }
  func.func @transform_4(%arg0: i32) -> (i32, i32) {
    %c0_i32 = arith.constant 0 : i32
    %c0_i32_0 = arith.constant 0 : i32
    return %c0_i32, %arg0 : i32, i32
  }
  func.func @transform_5(%arg0: i32) -> (i32, i32) {
    %c0_i32 = arith.constant 0 : i32
    %c0_i32_0 = arith.constant 0 : i32
    return %c0_i32, %arg0 : i32, i32
  }
}

module attributes {stable_mosaic.version = 11 : i64} {
  func.func @_matmul_act_kernel(%arg0: i32, %arg1: memref<16x144xbf16, #tpu.memory_space<vmem>>, %arg2: memref<144x128xbf16, #tpu.memory_space<vmem>>, %arg3: memref<16x1xf32, #tpu.memory_space<vmem>>, %arg4: memref<16x128xbf16, #tpu.memory_space<vmem>>) attributes {dimension_semantics = [#tpu.dimension_semantics<parallel>], iteration_bounds = array<i64: 1>, scalar_prefetch = 0 : i64, scratch_operands = 0 : i64, tpu.core_type = #tpu.core_type<tc>, window_params = [{pipeline_mode = #tpu.pipeline_mode<synchronous>, transform_indices = @transform_0, window_bounds = array<i64: 16, 144>}, {transform_indices = @transform_1, window_bounds = array<i64: 144, 128>}, {pipeline_mode = #tpu.pipeline_mode<synchronous>, transform_indices = @transform_2, window_bounds = array<i64: 16, 1>}, {transform_indices = @transform_3, window_bounds = array<i64: 16, 128>}]} {
    %c0 = arith.constant 0 : index
    %c0_0 = arith.constant 0 : index
    %0 = vector.load %arg1[%c0, %c0_0] : memref<16x144xbf16, #tpu.memory_space<vmem>>, vector<16x144xbf16>
    %c0_1 = arith.constant 0 : index
    %c0_2 = arith.constant 0 : index
    %1 = vector.load %arg2[%c0_1, %c0_2] : memref<144x128xbf16, #tpu.memory_space<vmem>>, vector<144x128xbf16>
    %cst = arith.constant dense<0.000000e+00> : vector<16x128xf32>
    %2 = tpu.matmul %0, %1, %cst {dimension_numbers = #tpu.dot_dimension_numbers<[1], [0], [0], [1], [0, 0, 1, 1], [], []>} : vector<16x144xbf16>, vector<144x128xbf16>, vector<16x128xf32> -> vector<16x128xf32>
    %c0_3 = arith.constant 0 : index
    %c0_4 = arith.constant 0 : index
    %3 = vector.load %arg3[%c0_3, %c0_4] : memref<16x1xf32, #tpu.memory_space<vmem>>, vector<16x1xf32>
    %4 = vector.broadcast %3 : vector<16x1xf32> to vector<16x128xf32>
    %5 = arith.addf %2, %4 : vector<16x128xf32>
    %cst_5 = arith.constant 0.000000e+00 : f32
    %6 = vector.broadcast %cst_5 : f32 to vector<16x128xf32>
    %7 = arith.cmpf ogt, %5, %6 : vector<16x128xf32>
    %cst_6 = arith.constant 0.000000e+00 : f32
    %8 = vector.broadcast %cst_6 : f32 to vector<16x128xf32>
    %9 = arith.minimumf %5, %8 : vector<16x128xf32>
    %10 = math.exp %9 : vector<16x128xf32>
    %cst_7 = arith.constant 1.000000e+00 : f32
    %11 = vector.broadcast %cst_7 : f32 to vector<16x128xf32>
    %12 = arith.subf %10, %11 : vector<16x128xf32>
    %13 = arith.select %7, %5, %12 : vector<16x128xi1>, vector<16x128xf32>
    %14 = arith.truncf %13 : vector<16x128xf32> to vector<16x128xbf16>
    %c0_8 = arith.constant 0 : index
    %c0_9 = arith.constant 0 : index
    %15 = vector.load %arg4[%c0_8, %c0_9] : memref<16x128xbf16, #tpu.memory_space<vmem>>, vector<16x128xbf16>
    tpu.vector_store %arg4[%c0_8, %c0_9], %14 {strides = array<i32>} : memref<16x128xbf16, #tpu.memory_space<vmem>>, vector<16x128xbf16>,
    return
  }
  func.func @transform_0(%arg0: i32) -> (i32, i32) {
    %c0_i32 = arith.constant 0 : i32
    %c0_i32_0 = arith.constant 0 : i32
    %c0_i32_1 = arith.constant 0 : i32
    return %c0_i32, %c0_i32_0 : i32, i32
  }
  func.func @transform_1(%arg0: i32) -> (i32, i32) {
    %c0_i32 = arith.constant 0 : i32
    %c0_i32_0 = arith.constant 0 : i32
    return %c0_i32, %arg0 : i32, i32
  }
  func.func @transform_2(%arg0: i32) -> (i32, i32) {
    %c0_i32 = arith.constant 0 : i32
    %c0_i32_0 = arith.constant 0 : i32
    %c0_i32_1 = arith.constant 0 : i32
    return %c0_i32, %c0_i32_0 : i32, i32
  }
  func.func @transform_3(%arg0: i32) -> (i32, i32) {
    %c0_i32 = arith.constant 0 : i32
    %c0_i32_0 = arith.constant 0 : i32
    return %c0_i32, %arg0 : i32, i32
  }
}

module attributes {stable_mosaic.version = 11 : i64} {
  func.func @_merge_kernel(%arg0: i32, %arg1: memref<4x144xbf16, #tpu.memory_space<vmem>>, %arg2: memref<144x128xbf16, #tpu.memory_space<vmem>>, %arg3: memref<4x1xf32, #tpu.memory_space<vmem>>, %arg4: memref<4x144xbf16, #tpu.memory_space<vmem>>, %arg5: memref<144x128xbf16, #tpu.memory_space<vmem>>, %arg6: memref<4x1xf32, #tpu.memory_space<vmem>>, %arg7: memref<4x128xbf16, #tpu.memory_space<vmem>>) attributes {dimension_semantics = [#tpu.dimension_semantics<parallel>], iteration_bounds = array<i64: 1>, scalar_prefetch = 0 : i64, scratch_operands = 0 : i64, tpu.core_type = #tpu.core_type<tc>, window_params = [{pipeline_mode = #tpu.pipeline_mode<synchronous>, transform_indices = @transform_0, window_bounds = array<i64: 4, 144>}, {transform_indices = @transform_1, window_bounds = array<i64: 144, 128>}, {pipeline_mode = #tpu.pipeline_mode<synchronous>, transform_indices = @transform_2, window_bounds = array<i64: 4, 1>}, {pipeline_mode = #tpu.pipeline_mode<synchronous>, transform_indices = @transform_3, window_bounds = array<i64: 4, 144>}, {transform_indices = @transform_4, window_bounds = array<i64: 144, 128>}, {pipeline_mode = #tpu.pipeline_mode<synchronous>, transform_indices = @transform_5, window_bounds = array<i64: 4, 1>}, {transform_indices = @transform_6, window_bounds = array<i64: 4, 128>}]} {
    %c0 = arith.constant 0 : index
    %c0_0 = arith.constant 0 : index
    %0 = vector.load %arg1[%c0, %c0_0] : memref<4x144xbf16, #tpu.memory_space<vmem>>, vector<4x144xbf16>
    %c0_1 = arith.constant 0 : index
    %c0_2 = arith.constant 0 : index
    %1 = vector.load %arg2[%c0_1, %c0_2] : memref<144x128xbf16, #tpu.memory_space<vmem>>, vector<144x128xbf16>
    %cst = arith.constant dense<0.000000e+00> : vector<4x128xf32>
    %2 = tpu.matmul %0, %1, %cst {dimension_numbers = #tpu.dot_dimension_numbers<[1], [0], [0], [1], [0, 0, 1, 1], [], []>} : vector<4x144xbf16>, vector<144x128xbf16>, vector<4x128xf32> -> vector<4x128xf32>
    %c0_3 = arith.constant 0 : index
    %c0_4 = arith.constant 0 : index
    %3 = vector.load %arg3[%c0_3, %c0_4] : memref<4x1xf32, #tpu.memory_space<vmem>>, vector<4x1xf32>
    %4 = vector.broadcast %3 : vector<4x1xf32> to vector<4x128xf32>
    %5 = arith.addf %2, %4 : vector<4x128xf32>
    %c0_5 = arith.constant 0 : index
    %c0_6 = arith.constant 0 : index
    %6 = vector.load %arg4[%c0_5, %c0_6] : memref<4x144xbf16, #tpu.memory_space<vmem>>, vector<4x144xbf16>
    %c0_7 = arith.constant 0 : index
    %c0_8 = arith.constant 0 : index
    %7 = vector.load %arg5[%c0_7, %c0_8] : memref<144x128xbf16, #tpu.memory_space<vmem>>, vector<144x128xbf16>
    %cst_9 = arith.constant dense<0.000000e+00> : vector<4x128xf32>
    %8 = tpu.matmul %6, %7, %cst_9 {dimension_numbers = #tpu.dot_dimension_numbers<[1], [0], [0], [1], [0, 0, 1, 1], [], []>} : vector<4x144xbf16>, vector<144x128xbf16>, vector<4x128xf32> -> vector<4x128xf32>
    %c0_10 = arith.constant 0 : index
    %c0_11 = arith.constant 0 : index
    %9 = vector.load %arg6[%c0_10, %c0_11] : memref<4x1xf32, #tpu.memory_space<vmem>>, vector<4x1xf32>
    %10 = vector.broadcast %9 : vector<4x1xf32> to vector<4x128xf32>
    %11 = arith.addf %8, %10 : vector<4x128xf32>
    %cst_12 = arith.constant 0.000000e+00 : f32
    %12 = vector.broadcast %cst_12 : f32 to vector<4x128xf32>
    %13 = arith.cmpf ogt, %11, %12 : vector<4x128xf32>
    %cst_13 = arith.constant 0.000000e+00 : f32
    %14 = vector.broadcast %cst_13 : f32 to vector<4x128xf32>
    %15 = arith.minimumf %11, %14 : vector<4x128xf32>
    %16 = math.exp %15 : vector<4x128xf32>
    %cst_14 = arith.constant 1.000000e+00 : f32
    %17 = vector.broadcast %cst_14 : f32 to vector<4x128xf32>
    %18 = arith.subf %16, %17 : vector<4x128xf32>
    %19 = arith.select %13, %11, %18 : vector<4x128xi1>, vector<4x128xf32>
    %20 = arith.addf %5, %19 : vector<4x128xf32>
    %cst_15 = arith.constant 0.000000e+00 : f32
    %21 = vector.broadcast %cst_15 : f32 to vector<4x128xf32>
    %22 = arith.maximumf %20, %21 : vector<4x128xf32>
    %23 = arith.truncf %22 : vector<4x128xf32> to vector<4x128xbf16>
    %c0_16 = arith.constant 0 : index
    %c0_17 = arith.constant 0 : index
    %24 = vector.load %arg7[%c0_16, %c0_17] : memref<4x128xbf16, #tpu.memory_space<vmem>>, vector<4x128xbf16>
    tpu.vector_store %arg7[%c0_16, %c0_17], %23 {strides = array<i32>} : memref<4x128xbf16, #tpu.memory_space<vmem>>, vector<4x128xbf16>,
    return
  }
  func.func @transform_0(%arg0: i32) -> (i32, i32) {
    %c0_i32 = arith.constant 0 : i32
    %c0_i32_0 = arith.constant 0 : i32
    %c0_i32_1 = arith.constant 0 : i32
    return %c0_i32, %c0_i32_0 : i32, i32
  }
  func.func @transform_1(%arg0: i32) -> (i32, i32) {
    %c0_i32 = arith.constant 0 : i32
    %c0_i32_0 = arith.constant 0 : i32
    return %c0_i32, %arg0 : i32, i32
  }
  func.func @transform_2(%arg0: i32) -> (i32, i32) {
    %c0_i32 = arith.constant 0 : i32
    %c0_i32_0 = arith.constant 0 : i32
    %c0_i32_1 = arith.constant 0 : i32
    return %c0_i32, %c0_i32_0 : i32, i32
  }
  func.func @transform_3(%arg0: i32) -> (i32, i32) {
    %c0_i32 = arith.constant 0 : i32
    %c0_i32_0 = arith.constant 0 : i32
    %c0_i32_1 = arith.constant 0 : i32
    return %c0_i32, %c0_i32_0 : i32, i32
  }
  func.func @transform_4(%arg0: i32) -> (i32, i32) {
    %c0_i32 = arith.constant 0 : i32
    %c0_i32_0 = arith.constant 0 : i32
    return %c0_i32, %arg0 : i32, i32
  }
  func.func @transform_5(%arg0: i32) -> (i32, i32) {
    %c0_i32 = arith.constant 0 : i32
    %c0_i32_0 = arith.constant 0 : i32
    %c0_i32_1 = arith.constant 0 : i32
    return %c0_i32, %c0_i32_0 : i32, i32
  }
  func.func @transform_6(%arg0: i32) -> (i32, i32) {
    %c0_i32 = arith.constant 0 : i32
    %c0_i32_0 = arith.constant 0 : i32
    return %c0_i32, %arg0 : i32, i32
  }
}

module attributes {stable_mosaic.version = 11 : i64} {
  func.func @_matmul_act_kernel(%arg0: i32, %arg1: memref<16x64xbf16, #tpu.memory_space<vmem>>, %arg2: memref<64x128xbf16, #tpu.memory_space<vmem>>, %arg3: memref<16x1xf32, #tpu.memory_space<vmem>>, %arg4: memref<16x128xbf16, #tpu.memory_space<vmem>>) attributes {dimension_semantics = [#tpu.dimension_semantics<parallel>], iteration_bounds = array<i64: 1>, scalar_prefetch = 0 : i64, scratch_operands = 0 : i64, tpu.core_type = #tpu.core_type<tc>, window_params = [{pipeline_mode = #tpu.pipeline_mode<synchronous>, transform_indices = @transform_0, window_bounds = array<i64: 16, 64>}, {transform_indices = @transform_1, window_bounds = array<i64: 64, 128>}, {pipeline_mode = #tpu.pipeline_mode<synchronous>, transform_indices = @transform_2, window_bounds = array<i64: 16, 1>}, {transform_indices = @transform_3, window_bounds = array<i64: 16, 128>}]} {
    %c0 = arith.constant 0 : index
    %c0_0 = arith.constant 0 : index
    %0 = vector.load %arg1[%c0, %c0_0] : memref<16x64xbf16, #tpu.memory_space<vmem>>, vector<16x64xbf16>
    %c0_1 = arith.constant 0 : index
    %c0_2 = arith.constant 0 : index
    %1 = vector.load %arg2[%c0_1, %c0_2] : memref<64x128xbf16, #tpu.memory_space<vmem>>, vector<64x128xbf16>
    %cst = arith.constant dense<0.000000e+00> : vector<16x128xf32>
    %2 = tpu.matmul %0, %1, %cst {dimension_numbers = #tpu.dot_dimension_numbers<[1], [0], [0], [1], [0, 0, 1, 1], [], []>} : vector<16x64xbf16>, vector<64x128xbf16>, vector<16x128xf32> -> vector<16x128xf32>
    %c0_3 = arith.constant 0 : index
    %c0_4 = arith.constant 0 : index
    %3 = vector.load %arg3[%c0_3, %c0_4] : memref<16x1xf32, #tpu.memory_space<vmem>>, vector<16x1xf32>
    %4 = vector.broadcast %3 : vector<16x1xf32> to vector<16x128xf32>
    %5 = arith.addf %2, %4 : vector<16x128xf32>
    %cst_5 = arith.constant 0.000000e+00 : f32
    %6 = vector.broadcast %cst_5 : f32 to vector<16x128xf32>
    %7 = arith.cmpf ogt, %5, %6 : vector<16x128xf32>
    %cst_6 = arith.constant 0.000000e+00 : f32
    %8 = vector.broadcast %cst_6 : f32 to vector<16x128xf32>
    %9 = arith.minimumf %5, %8 : vector<16x128xf32>
    %10 = math.exp %9 : vector<16x128xf32>
    %cst_7 = arith.constant 1.000000e+00 : f32
    %11 = vector.broadcast %cst_7 : f32 to vector<16x128xf32>
    %12 = arith.subf %10, %11 : vector<16x128xf32>
    %13 = arith.select %7, %5, %12 : vector<16x128xi1>, vector<16x128xf32>
    %14 = arith.truncf %13 : vector<16x128xf32> to vector<16x128xbf16>
    %c0_8 = arith.constant 0 : index
    %c0_9 = arith.constant 0 : index
    %15 = vector.load %arg4[%c0_8, %c0_9] : memref<16x128xbf16, #tpu.memory_space<vmem>>, vector<16x128xbf16>
    tpu.vector_store %arg4[%c0_8, %c0_9], %14 {strides = array<i32>} : memref<16x128xbf16, #tpu.memory_space<vmem>>, vector<16x128xbf16>,
    return
  }
  func.func @transform_0(%arg0: i32) -> (i32, i32) {
    %c0_i32 = arith.constant 0 : i32
    %c0_i32_0 = arith.constant 0 : i32
    %c0_i32_1 = arith.constant 0 : i32
    return %c0_i32, %c0_i32_0 : i32, i32
  }
  func.func @transform_1(%arg0: i32) -> (i32, i32) {
    %c0_i32 = arith.constant 0 : i32
    %c0_i32_0 = arith.constant 0 : i32
    return %c0_i32, %arg0 : i32, i32
  }
  func.func @transform_2(%arg0: i32) -> (i32, i32) {
    %c0_i32 = arith.constant 0 : i32
    %c0_i32_0 = arith.constant 0 : i32
    %c0_i32_1 = arith.constant 0 : i32
    return %c0_i32, %c0_i32_0 : i32, i32
  }
  func.func @transform_3(%arg0: i32) -> (i32, i32) {
    %c0_i32 = arith.constant 0 : i32
    %c0_i32_0 = arith.constant 0 : i32
    return %c0_i32, %arg0 : i32, i32
  }
}

module attributes {stable_mosaic.version = 11 : i64} {
  func.func @_convlstm_kernel(%arg0: i32, %arg1: memref<4x4x72xbf16, #tpu.memory_space<vmem>>, %arg2: memref<4x4x1xf32, #tpu.memory_space<vmem>>, %arg3: memref<72x256xbf16, #tpu.memory_space<vmem>>, %arg4: memref<4x256xf32, #tpu.memory_space<vmem>>, %arg5: memref<4x256xf32, #tpu.memory_space<vmem>>, %arg6: memref<4x256xf32, #tpu.memory_space<vmem>>) attributes {dimension_semantics = [#tpu.dimension_semantics<parallel>], iteration_bounds = array<i64: 2>, scalar_prefetch = 0 : i64, scratch_operands = 0 : i64, tpu.core_type = #tpu.core_type<tc>, window_params = [{pipeline_mode = #tpu.pipeline_mode<synchronous>, transform_indices = @transform_0, window_bounds = array<i64: 4, 4, 72>}, {pipeline_mode = #tpu.pipeline_mode<synchronous>, transform_indices = @transform_1, window_bounds = array<i64: 4, 4, 1>}, {transform_indices = @transform_2, window_bounds = array<i64: 72, 256>}, {transform_indices = @transform_3, window_bounds = array<i64: 4, 256>}, {transform_indices = @transform_4, window_bounds = array<i64: 4, 256>}, {transform_indices = @transform_5, window_bounds = array<i64: 4, 256>}]} {
    %c0 = arith.constant 0 : index
    %c0_0 = arith.constant 0 : index
    %0 = vector.load %arg3[%c0, %c0_0] : memref<72x256xbf16, #tpu.memory_space<vmem>>, vector<72x256xbf16>
    %c0_1 = arith.constant 0 : index
    %c0_2 = arith.constant 0 : index
    %c0_3 = arith.constant 0 : index
    %1 = vector.load %arg1[%c0_1, %c0_2, %c0_3] : memref<4x4x72xbf16, #tpu.memory_space<vmem>>, vector<1x4x72xbf16>
    %2 = vector.shape_cast %1 : vector<1x4x72xbf16> to vector<4x72xbf16>
    %cst = arith.constant dense<0.000000e+00> : vector<4x256xf32>
    %3 = tpu.matmul %2, %0, %cst {dimension_numbers = #tpu.dot_dimension_numbers<[1], [0], [0], [1], [0, 0, 1, 1], [], []>} : vector<4x72xbf16>, vector<72x256xbf16>, vector<4x256xf32> -> vector<4x256xf32>
    %c0_4 = arith.constant 0 : index
    %c0_5 = arith.constant 0 : index
    %c0_6 = arith.constant 0 : index
    %4 = vector.load %arg2[%c0_4, %c0_5, %c0_6] : memref<4x4x1xf32, #tpu.memory_space<vmem>>, vector<1x4x1xf32>
    %5 = vector.shape_cast %4 : vector<1x4x1xf32> to vector<4x1xf32>
    %6 = vector.broadcast %5 : vector<4x1xf32> to vector<4x256xf32>
    %7 = arith.addf %3, %6 : vector<4x256xf32>
    %8 = arith.negf %7 : vector<4x256xf32>
    %9 = math.exp %8 : vector<4x256xf32>
    %cst_7 = arith.constant 1.000000e+00 : f32
    %10 = vector.broadcast %cst_7 : f32 to vector<4x256xf32>
    %11 = arith.addf %10, %9 : vector<4x256xf32>
    %12 = arith.divf %10, %11 : vector<4x256xf32>
    %c1 = arith.constant 1 : index
    %c0_8 = arith.constant 0 : index
    %c0_9 = arith.constant 0 : index
    %13 = vector.load %arg1[%c1, %c0_8, %c0_9] : memref<4x4x72xbf16, #tpu.memory_space<vmem>>, vector<1x4x72xbf16>
    %14 = vector.shape_cast %13 : vector<1x4x72xbf16> to vector<4x72xbf16>
    %cst_10 = arith.constant dense<0.000000e+00> : vector<4x256xf32>
    %15 = tpu.matmul %14, %0, %cst_10 {dimension_numbers = #tpu.dot_dimension_numbers<[1], [0], [0], [1], [0, 0, 1, 1], [], []>} : vector<4x72xbf16>, vector<72x256xbf16>, vector<4x256xf32> -> vector<4x256xf32>
    %c1_11 = arith.constant 1 : index
    %c0_12 = arith.constant 0 : index
    %c0_13 = arith.constant 0 : index
    %16 = vector.load %arg2[%c1_11, %c0_12, %c0_13] : memref<4x4x1xf32, #tpu.memory_space<vmem>>, vector<1x4x1xf32>
    %17 = vector.shape_cast %16 : vector<1x4x1xf32> to vector<4x1xf32>
    %18 = vector.broadcast %17 : vector<4x1xf32> to vector<4x256xf32>
    %19 = arith.addf %15, %18 : vector<4x256xf32>
    %20 = arith.negf %19 : vector<4x256xf32>
    %21 = math.exp %20 : vector<4x256xf32>
    %cst_14 = arith.constant 1.000000e+00 : f32
    %22 = vector.broadcast %cst_14 : f32 to vector<4x256xf32>
    %23 = arith.addf %22, %21 : vector<4x256xf32>
    %24 = arith.divf %22, %23 : vector<4x256xf32>
    %c2 = arith.constant 2 : index
    %c0_15 = arith.constant 0 : index
    %c0_16 = arith.constant 0 : index
    %25 = vector.load %arg1[%c2, %c0_15, %c0_16] : memref<4x4x72xbf16, #tpu.memory_space<vmem>>, vector<1x4x72xbf16>
    %26 = vector.shape_cast %25 : vector<1x4x72xbf16> to vector<4x72xbf16>
    %cst_17 = arith.constant dense<0.000000e+00> : vector<4x256xf32>
    %27 = tpu.matmul %26, %0, %cst_17 {dimension_numbers = #tpu.dot_dimension_numbers<[1], [0], [0], [1], [0, 0, 1, 1], [], []>} : vector<4x72xbf16>, vector<72x256xbf16>, vector<4x256xf32> -> vector<4x256xf32>
    %c2_18 = arith.constant 2 : index
    %c0_19 = arith.constant 0 : index
    %c0_20 = arith.constant 0 : index
    %28 = vector.load %arg2[%c2_18, %c0_19, %c0_20] : memref<4x4x1xf32, #tpu.memory_space<vmem>>, vector<1x4x1xf32>
    %29 = vector.shape_cast %28 : vector<1x4x1xf32> to vector<4x1xf32>
    %30 = vector.broadcast %29 : vector<4x1xf32> to vector<4x256xf32>
    %31 = arith.addf %27, %30 : vector<4x256xf32>
    %32 = math.tanh %31 : vector<4x256xf32>
    %c3 = arith.constant 3 : index
    %c0_21 = arith.constant 0 : index
    %c0_22 = arith.constant 0 : index
    %33 = vector.load %arg1[%c3, %c0_21, %c0_22] : memref<4x4x72xbf16, #tpu.memory_space<vmem>>, vector<1x4x72xbf16>
    %34 = vector.shape_cast %33 : vector<1x4x72xbf16> to vector<4x72xbf16>
    %cst_23 = arith.constant dense<0.000000e+00> : vector<4x256xf32>
    %35 = tpu.matmul %34, %0, %cst_23 {dimension_numbers = #tpu.dot_dimension_numbers<[1], [0], [0], [1], [0, 0, 1, 1], [], []>} : vector<4x72xbf16>, vector<72x256xbf16>, vector<4x256xf32> -> vector<4x256xf32>
    %c3_24 = arith.constant 3 : index
    %c0_25 = arith.constant 0 : index
    %c0_26 = arith.constant 0 : index
    %36 = vector.load %arg2[%c3_24, %c0_25, %c0_26] : memref<4x4x1xf32, #tpu.memory_space<vmem>>, vector<1x4x1xf32>
    %37 = vector.shape_cast %36 : vector<1x4x1xf32> to vector<4x1xf32>
    %38 = vector.broadcast %37 : vector<4x1xf32> to vector<4x256xf32>
    %39 = arith.addf %35, %38 : vector<4x256xf32>
    %40 = arith.negf %39 : vector<4x256xf32>
    %41 = math.exp %40 : vector<4x256xf32>
    %cst_27 = arith.constant 1.000000e+00 : f32
    %42 = vector.broadcast %cst_27 : f32 to vector<4x256xf32>
    %43 = arith.addf %42, %41 : vector<4x256xf32>
    %44 = arith.divf %42, %43 : vector<4x256xf32>
    %c0_28 = arith.constant 0 : index
    %c0_29 = arith.constant 0 : index
    %45 = vector.load %arg4[%c0_28, %c0_29] : memref<4x256xf32, #tpu.memory_space<vmem>>, vector<4x256xf32>
    %46 = arith.mulf %24, %45 : vector<4x256xf32>
    %47 = arith.mulf %12, %32 : vector<4x256xf32>
    %48 = arith.addf %46, %47 : vector<4x256xf32>
    %c0_30 = arith.constant 0 : index
    %c0_31 = arith.constant 0 : index
    %49 = vector.load %arg6[%c0_30, %c0_31] : memref<4x256xf32, #tpu.memory_space<vmem>>, vector<4x256xf32>
    tpu.vector_store %arg6[%c0_30, %c0_31], %48 {strides = array<i32>} : memref<4x256xf32, #tpu.memory_space<vmem>>, vector<4x256xf32>,
    %50 = math.tanh %48 : vector<4x256xf32>
    %51 = arith.mulf %44, %50 : vector<4x256xf32>
    %c0_32 = arith.constant 0 : index
    %c0_33 = arith.constant 0 : index
    %52 = vector.load %arg5[%c0_32, %c0_33] : memref<4x256xf32, #tpu.memory_space<vmem>>, vector<4x256xf32>
    tpu.vector_store %arg5[%c0_32, %c0_33], %51 {strides = array<i32>} : memref<4x256xf32, #tpu.memory_space<vmem>>, vector<4x256xf32>,
    return
  }
  func.func @transform_0(%arg0: i32) -> (i32, i32, i32) {
    %c0_i32 = arith.constant 0 : i32
    %c0_i32_0 = arith.constant 0 : i32
    %c0_i32_1 = arith.constant 0 : i32
    %c0_i32_2 = arith.constant 0 : i32
    return %c0_i32, %c0_i32_0, %c0_i32_1 : i32, i32, i32
  }
  func.func @transform_1(%arg0: i32) -> (i32, i32, i32) {
    %c0_i32 = arith.constant 0 : i32
    %c0_i32_0 = arith.constant 0 : i32
    %c0_i32_1 = arith.constant 0 : i32
    %c0_i32_2 = arith.constant 0 : i32
    return %c0_i32, %c0_i32_0, %c0_i32_1 : i32, i32, i32
  }
  func.func @transform_2(%arg0: i32) -> (i32, i32) {
    %c0_i32 = arith.constant 0 : i32
    %c0_i32_0 = arith.constant 0 : i32
    return %c0_i32, %arg0 : i32, i32
  }
  func.func @transform_3(%arg0: i32) -> (i32, i32) {
    %c0_i32 = arith.constant 0 : i32
    %c0_i32_0 = arith.constant 0 : i32
    return %c0_i32, %arg0 : i32, i32
  }
  func.func @transform_4(%arg0: i32) -> (i32, i32) {
    %c0_i32 = arith.constant 0 : i32
    %c0_i32_0 = arith.constant 0 : i32
    return %c0_i32, %arg0 : i32, i32
  }
  func.func @transform_5(%arg0: i32) -> (i32, i32) {
    %c0_i32 = arith.constant 0 : i32
    %c0_i32_0 = arith.constant 0 : i32
    return %c0_i32, %arg0 : i32, i32
  }
}

module attributes {stable_mosaic.version = 11 : i64} {
  func.func @_matmul_act_kernel(%arg0: i32, %arg1: memref<8x72xbf16, #tpu.memory_space<vmem>>, %arg2: memref<72x256xbf16, #tpu.memory_space<vmem>>, %arg3: memref<8x1xf32, #tpu.memory_space<vmem>>, %arg4: memref<8x256xbf16, #tpu.memory_space<vmem>>) attributes {dimension_semantics = [#tpu.dimension_semantics<parallel>], iteration_bounds = array<i64: 2>, scalar_prefetch = 0 : i64, scratch_operands = 0 : i64, tpu.core_type = #tpu.core_type<tc>, window_params = [{pipeline_mode = #tpu.pipeline_mode<synchronous>, transform_indices = @transform_0, window_bounds = array<i64: 8, 72>}, {transform_indices = @transform_1, window_bounds = array<i64: 72, 256>}, {pipeline_mode = #tpu.pipeline_mode<synchronous>, transform_indices = @transform_2, window_bounds = array<i64: 8, 1>}, {transform_indices = @transform_3, window_bounds = array<i64: 8, 256>}]} {
    %c0 = arith.constant 0 : index
    %c0_0 = arith.constant 0 : index
    %0 = vector.load %arg1[%c0, %c0_0] : memref<8x72xbf16, #tpu.memory_space<vmem>>, vector<8x72xbf16>
    %c0_1 = arith.constant 0 : index
    %c0_2 = arith.constant 0 : index
    %1 = vector.load %arg2[%c0_1, %c0_2] : memref<72x256xbf16, #tpu.memory_space<vmem>>, vector<72x256xbf16>
    %cst = arith.constant dense<0.000000e+00> : vector<8x256xf32>
    %2 = tpu.matmul %0, %1, %cst {dimension_numbers = #tpu.dot_dimension_numbers<[1], [0], [0], [1], [0, 0, 1, 1], [], []>} : vector<8x72xbf16>, vector<72x256xbf16>, vector<8x256xf32> -> vector<8x256xf32>
    %c0_3 = arith.constant 0 : index
    %c0_4 = arith.constant 0 : index
    %3 = vector.load %arg3[%c0_3, %c0_4] : memref<8x1xf32, #tpu.memory_space<vmem>>, vector<8x1xf32>
    %4 = vector.broadcast %3 : vector<8x1xf32> to vector<8x256xf32>
    %5 = arith.addf %2, %4 : vector<8x256xf32>
    %cst_5 = arith.constant 0.000000e+00 : f32
    %6 = vector.broadcast %cst_5 : f32 to vector<8x256xf32>
    %7 = arith.cmpf ogt, %5, %6 : vector<8x256xf32>
    %cst_6 = arith.constant 0.000000e+00 : f32
    %8 = vector.broadcast %cst_6 : f32 to vector<8x256xf32>
    %9 = arith.minimumf %5, %8 : vector<8x256xf32>
    %10 = math.exp %9 : vector<8x256xf32>
    %cst_7 = arith.constant 1.000000e+00 : f32
    %11 = vector.broadcast %cst_7 : f32 to vector<8x256xf32>
    %12 = arith.subf %10, %11 : vector<8x256xf32>
    %13 = arith.select %7, %5, %12 : vector<8x256xi1>, vector<8x256xf32>
    %14 = arith.truncf %13 : vector<8x256xf32> to vector<8x256xbf16>
    %c0_8 = arith.constant 0 : index
    %c0_9 = arith.constant 0 : index
    %15 = vector.load %arg4[%c0_8, %c0_9] : memref<8x256xbf16, #tpu.memory_space<vmem>>, vector<8x256xbf16>
    tpu.vector_store %arg4[%c0_8, %c0_9], %14 {strides = array<i32>} : memref<8x256xbf16, #tpu.memory_space<vmem>>, vector<8x256xbf16>,
    return
  }
  func.func @transform_0(%arg0: i32) -> (i32, i32) {
    %c0_i32 = arith.constant 0 : i32
    %c0_i32_0 = arith.constant 0 : i32
    %c0_i32_1 = arith.constant 0 : i32
    return %c0_i32, %c0_i32_0 : i32, i32
  }
  func.func @transform_1(%arg0: i32) -> (i32, i32) {
    %c0_i32 = arith.constant 0 : i32
    %c0_i32_0 = arith.constant 0 : i32
    return %c0_i32, %arg0 : i32, i32
  }
  func.func @transform_2(%arg0: i32) -> (i32, i32) {
    %c0_i32 = arith.constant 0 : i32
    %c0_i32_0 = arith.constant 0 : i32
    %c0_i32_1 = arith.constant 0 : i32
    return %c0_i32, %c0_i32_0 : i32, i32
  }
  func.func @transform_3(%arg0: i32) -> (i32, i32) {
    %c0_i32 = arith.constant 0 : i32
    %c0_i32_0 = arith.constant 0 : i32
    return %c0_i32, %arg0 : i32, i32
  }
}

module attributes {stable_mosaic.version = 11 : i64} {
  func.func @_merge_kernel(%arg0: i32, %arg1: memref<1x72xbf16, #tpu.memory_space<vmem>>, %arg2: memref<72x256xbf16, #tpu.memory_space<vmem>>, %arg3: memref<1x1xf32, #tpu.memory_space<vmem>>, %arg4: memref<1x72xbf16, #tpu.memory_space<vmem>>, %arg5: memref<72x256xbf16, #tpu.memory_space<vmem>>, %arg6: memref<1x1xf32, #tpu.memory_space<vmem>>, %arg7: memref<1x256xf32, #tpu.memory_space<vmem>>) attributes {dimension_semantics = [#tpu.dimension_semantics<parallel>], iteration_bounds = array<i64: 2>, scalar_prefetch = 0 : i64, scratch_operands = 0 : i64, tpu.core_type = #tpu.core_type<tc>, window_params = [{pipeline_mode = #tpu.pipeline_mode<synchronous>, transform_indices = @transform_0, window_bounds = array<i64: 1, 72>}, {transform_indices = @transform_1, window_bounds = array<i64: 72, 256>}, {pipeline_mode = #tpu.pipeline_mode<synchronous>, transform_indices = @transform_2, window_bounds = array<i64: 1, 1>}, {pipeline_mode = #tpu.pipeline_mode<synchronous>, transform_indices = @transform_3, window_bounds = array<i64: 1, 72>}, {transform_indices = @transform_4, window_bounds = array<i64: 72, 256>}, {pipeline_mode = #tpu.pipeline_mode<synchronous>, transform_indices = @transform_5, window_bounds = array<i64: 1, 1>}, {transform_indices = @transform_6, window_bounds = array<i64: 1, 256>}]} {
    %c0 = arith.constant 0 : index
    %c0_0 = arith.constant 0 : index
    %0 = vector.load %arg1[%c0, %c0_0] : memref<1x72xbf16, #tpu.memory_space<vmem>>, vector<1x72xbf16>
    %c0_1 = arith.constant 0 : index
    %c0_2 = arith.constant 0 : index
    %1 = vector.load %arg2[%c0_1, %c0_2] : memref<72x256xbf16, #tpu.memory_space<vmem>>, vector<72x256xbf16>
    %cst = arith.constant dense<0.000000e+00> : vector<1x256xf32>
    %2 = tpu.matmul %0, %1, %cst {dimension_numbers = #tpu.dot_dimension_numbers<[1], [0], [0], [1], [0, 0, 1, 1], [], []>} : vector<1x72xbf16>, vector<72x256xbf16>, vector<1x256xf32> -> vector<1x256xf32>
    %c0_3 = arith.constant 0 : index
    %c0_4 = arith.constant 0 : index
    %3 = vector.load %arg3[%c0_3, %c0_4] : memref<1x1xf32, #tpu.memory_space<vmem>>, vector<1x1xf32>
    %4 = vector.broadcast %3 : vector<1x1xf32> to vector<1x256xf32>
    %5 = arith.addf %2, %4 : vector<1x256xf32>
    %c0_5 = arith.constant 0 : index
    %c0_6 = arith.constant 0 : index
    %6 = vector.load %arg4[%c0_5, %c0_6] : memref<1x72xbf16, #tpu.memory_space<vmem>>, vector<1x72xbf16>
    %c0_7 = arith.constant 0 : index
    %c0_8 = arith.constant 0 : index
    %7 = vector.load %arg5[%c0_7, %c0_8] : memref<72x256xbf16, #tpu.memory_space<vmem>>, vector<72x256xbf16>
    %cst_9 = arith.constant dense<0.000000e+00> : vector<1x256xf32>
    %8 = tpu.matmul %6, %7, %cst_9 {dimension_numbers = #tpu.dot_dimension_numbers<[1], [0], [0], [1], [0, 0, 1, 1], [], []>} : vector<1x72xbf16>, vector<72x256xbf16>, vector<1x256xf32> -> vector<1x256xf32>
    %c0_10 = arith.constant 0 : index
    %c0_11 = arith.constant 0 : index
    %9 = vector.load %arg6[%c0_10, %c0_11] : memref<1x1xf32, #tpu.memory_space<vmem>>, vector<1x1xf32>
    %10 = vector.broadcast %9 : vector<1x1xf32> to vector<1x256xf32>
    %11 = arith.addf %8, %10 : vector<1x256xf32>
    %cst_12 = arith.constant 0.000000e+00 : f32
    %12 = vector.broadcast %cst_12 : f32 to vector<1x256xf32>
    %13 = arith.cmpf ogt, %11, %12 : vector<1x256xf32>
    %cst_13 = arith.constant 0.000000e+00 : f32
    %14 = vector.broadcast %cst_13 : f32 to vector<1x256xf32>
    %15 = arith.minimumf %11, %14 : vector<1x256xf32>
    %16 = math.exp %15 : vector<1x256xf32>
    %cst_14 = arith.constant 1.000000e+00 : f32
    %17 = vector.broadcast %cst_14 : f32 to vector<1x256xf32>
    %18 = arith.subf %16, %17 : vector<1x256xf32>
    %19 = arith.select %13, %11, %18 : vector<1x256xi1>, vector<1x256xf32>
    %20 = arith.addf %5, %19 : vector<1x256xf32>
    %cst_15 = arith.constant 0.000000e+00 : f32
    %21 = vector.broadcast %cst_15 : f32 to vector<1x256xf32>
    %22 = arith.maximumf %20, %21 : vector<1x256xf32>
    %c0_16 = arith.constant 0 : index
    %c0_17 = arith.constant 0 : index
    %23 = vector.load %arg7[%c0_16, %c0_17] : memref<1x256xf32, #tpu.memory_space<vmem>>, vector<1x256xf32>
    tpu.vector_store %arg7[%c0_16, %c0_17], %22 {strides = array<i32>} : memref<1x256xf32, #tpu.memory_space<vmem>>, vector<1x256xf32>,
    return
  }
  func.func @transform_0(%arg0: i32) -> (i32, i32) {
    %c0_i32 = arith.constant 0 : i32
    %c0_i32_0 = arith.constant 0 : i32
    %c0_i32_1 = arith.constant 0 : i32
    return %c0_i32, %c0_i32_0 : i32, i32
  }
  func.func @transform_1(%arg0: i32) -> (i32, i32) {
    %c0_i32 = arith.constant 0 : i32
    %c0_i32_0 = arith.constant 0 : i32
    return %c0_i32, %arg0 : i32, i32
  }
  func.func @transform_2(%arg0: i32) -> (i32, i32) {
    %c0_i32 = arith.constant 0 : i32
    %c0_i32_0 = arith.constant 0 : i32
    %c0_i32_1 = arith.constant 0 : i32
    return %c0_i32, %c0_i32_0 : i32, i32
  }
  func.func @transform_3(%arg0: i32) -> (i32, i32) {
    %c0_i32 = arith.constant 0 : i32
    %c0_i32_0 = arith.constant 0 : i32
    %c0_i32_1 = arith.constant 0 : i32
    return %c0_i32, %c0_i32_0 : i32, i32
  }
  func.func @transform_4(%arg0: i32) -> (i32, i32) {
    %c0_i32 = arith.constant 0 : i32
    %c0_i32_0 = arith.constant 0 : i32
    return %c0_i32, %arg0 : i32, i32
  }
  func.func @transform_5(%arg0: i32) -> (i32, i32) {
    %c0_i32 = arith.constant 0 : i32
    %c0_i32_0 = arith.constant 0 : i32
    %c0_i32_1 = arith.constant 0 : i32
    return %c0_i32, %c0_i32_0 : i32, i32
  }
  func.func @transform_6(%arg0: i32) -> (i32, i32) {
    %c0_i32 = arith.constant 0 : i32
    %c0_i32_0 = arith.constant 0 : i32
    return %c0_i32, %arg0 : i32, i32
  }
}

</mosaic_0001>

<bundles_post_ra>
// kernel: lstm_unet_forward.15
= control target key start
LH: loop header
LB: loop body
LE: loop exit
PB: predicated region body
PF: predicated region fallthrough
CT: control target
= control target key end

     0   :  { %s522_s0 = inlined_call_operand.vmem [shape: bf16[1,9], index: 0, kind: input, shape index: {}]   ;;  %s523_s1 = inlined_call_operand.vmem [shape: bf16[9,512], index: 1, kind: input, shape index: {}]   ;;  %s524_s2 = inlined_call_operand.<no memory space> [shape: f32[1,1], index: 2, kind: input, shape index: {}]   ;;  %s525_s3 = inlined_call_operand.vmem [shape: bf16[1,512], index: 3, kind: output, shape index: {}]  }
   0x1   :  { %v8_v0 = vstv %s524_s2 }
   0x2   :  { %9 = vst [vmem:[#allocation2] sm:$0x1] %v8_v0 }
   0x3   :  { %s465_s14 = smov 0   ;;  %s467_s15 = smov 0  }
   0x4   :  { %s469_s16 = smov 0  }
   0x5 LB: > { %s358_s2 = sadd.s32 4294967295, %s438_s16   ;;  %s482_s17 = sadd.s32 1, %s438_s16   ;;  %s438_s16 = sphi %s469_s16, %s528_s16   ;;  %s434_s15 = sphi %s467_s15, %s527_s15   ;;  %s430_s14 = sphi %s465_s14, %s526_s14  }
   0x6   : > { %s40_s18 = ssub.s32 %s438_s16, %s482_s17  ;;  %s43_s19 = sadd.s32 1, %s434_s15 }
   0x7   : > { %p41_p0 = scmp.eq.s32.totalorder %s40_s18, 0  ;;  %p50_p1 = scmp.ne.s32.totalorder %s434_s15, %s430_s14 }
   0x8   : > { %p51_p2 = scmp.eq.s32.totalorder %s438_s16, 0  ;;  %p361_p4 = scmp.ge.s32.totalorder %s438_s16, 2 }
   0x9   : > { %s491_s20 = scalar_select %p41_p0, %s434_s15, %s43_s19  }
   0xa   : > { %p52_p3 = por %p51_p2, %p50_p1  ;;  %129 = sbr.rel (%p361_p4) target bundleno = 21 (0x15), region = 24 }
   0xf   : > { %132 = sbr.rel (!%p52_p3) target bundleno = 21 (0x15), region = 28  ;;  %s134_s21 = sand.u32 (%p52_p3), 1, %s434_s15  }
  0x10   : > { %s382_s22 = sshll.u32 (%p52_p3), %s438_s16, 3  ;;  %s362_s23 = sshll.u32 (%p52_p3), %s134_s21, 4 }
  0x11   : > { %s139_s26 = scalar_lea.vmem (%p52_p3), %s523_s1, %s382_s22  ;;  %s136_s27 = scalar_lea.vmem (%p52_p3), [#allocation3], %s362_s23 }
  0x12   : > { %v170_v1 = vld [vmem:[%s139_s26] sm:$0xff] (%p52_p3)  ;;  %v172_v2 = vld [vmem:[%s139_s26 + $0x10] sm:$0xff] (%p52_p3) }
  0x13   : > { %171 = vst [vmem:[%s136_s27] sm:$0xff] (%p52_p3), %v170_v1 }
  0x14   : > { %173 = vst [vmem:[%s136_s27 + $0x8] sm:$0xff] %v172_v2 }
  0x15 PF: > { %p365_p5 = scmp.ge.s32.totalorder %s438_s16, 1  ;;  %p178_p6 = scmp.lt.s32.totalorder %s438_s16, 3 }
  0x17   : > { %p179_p7 = pnand %p365_p5, %p178_p6 }
  0x18   : > { %s185_s28 = sand.u32 (!%p179_p7), 1, %s430_s14   ;;  %s367_s6 = sshll.u32 (!%p179_p7), %s358_s2, 1 }
  0x19   : > { %182 = sbr.rel (%p179_p7) target bundleno = 189 (0xbd), region = 66  ;;  %s366_s29 = sshll.u32 (!%p179_p7), %s185_s28, 4 }
  0x1a   : > { %s187_s30 = scalar_lea.vmem (!%p179_p7), [#allocation3], %s366_s29  ;;  %p209_p8 = scmp.lt.s32.totalorder (!%p179_p7), %s367_s6, 3 }
  0x1e   : > { %vm236_vm0 = vcmask 1043456   ;;  %vm237_vm1 = vcmask 1044480   ;;  %v440_v3 = vmov 65535   ;;  %v217_v5 = vld [vmem:[#allocation2] sm:$0x1]  ;;  %v441_v7 = vmov 0  }
  0x1f   : > { %v238_v4 = vsel %vm236_vm0, 4294967295, %v440_v3  ;;  %411 = vset.pattern.permute.xlu0 %v441_v7  ;;  %v370_v8 = vld [vmem:[%s187_s30] sm:$0xf]  ;;  %v384_v9 = vld [vmem:[%s187_s30 + $0x4] sm:$0x10]  ;;  %vm232_vm2 = vcmask 72704  }
  0x20   : > { %v239_v6 = vsel %vm237_vm1, %v238_v4, 0  ;;  %v383_v10 = vld [vmem:[%s187_s30 + $0x4] sm:$0xf]  ;;  %220 = vperm.xlu0 %411, %v217_v5   ;;  %v371_v11 = vor.u32 %v384_v9, %v370_v8  ;;  %v372_v12 = vld [vmem:[%s187_s30 + $0x8] sm:$0x10]  ;;  %s530_s6 = smov (!%p209_p8, %s367_s6), 3 }
  0x21   : > { %v375_v13 = vor.u32 %v383_v10, %v372_v12  ;;  %v214_v16 = vld [vmem:[%s522_s0] sm:$0x1]  ;;  %vm287_vm3 = vcmask 1040384   ;;  %vm293_vm4 = vsmask.f32 256  ;;  %vm295_vm5 = vcmask 1041409   ;;  %s211_s9 = scalar_lea.vmem %s525_s3, %s530_s6 }
  0x22   : > { %v241_v14 = vand.u32 %v371_v11, %v239_v6  ;;  %vm296_vm6 = vsmask.f32 1280  ;;  %vm294_vm9 = vmand %vm287_vm3, %vm293_vm4  ;;  %v299_v37 = vld [vmem:[%s211_s9] sm:$0x3] }
  0x23   : > { %v244_v15 = vand.u32 %v375_v13, %v239_v6  ;;  %vm297_vm10 = vmand %vm295_vm5, %vm296_vm6 }
  0x24   : > { %253 = vmatpush.bf16.msra.mxu0 %v241_v14  ;;  %vm298_vm11 = vmor %vm297_vm10, %vm294_vm9 }
  0x25   : > { %266 = vmatpush.bf16.msra.mxu1 %v244_v15 }
  0x27   : > { %376 = vmatmul.msk.bf16.vlgmr.msra.gmra.mxu0 %vm232_vm2, %v214_v16 }
  0x28   : > { %377 = vmatmul.msk.bf16.vlgmr.msra.gmra.mxu1 %vm232_vm2, %v214_v16 }
  0x92   : > { %v221_v17 = vpop.permute.xlu0 %220 }
  0x93   : > { %v223_v18 = vperm.slane %v221_v17, 0 }
  0xa4   : > { %v255_v19 = vpop.f32.mrf.mxu0 }
  0xa5   : > { %v256_v20 = vadd.f32 %v255_v19, %v223_v18  ;;  %v268_v21 = vpop.f32.mrf.mxu1 }
  0xa6   : > { %v269_v22 = vadd.f32 %v268_v21, %v223_v18 }
  0xa7   : > { %v274_v23 = vmin.f32 %v256_v20, 0.0  ;;  %vm272_vm7 = vcmp.gt.f32.partialorder %v256_v20, 0.0 }
  0xa8   : > { %v275_v24 = vmin.f32 %v269_v22, 0.0  ;;  %vm273_vm8 = vcmp.gt.f32.partialorder %v269_v22, 0.0 }
  0xa9   : > { %v276_v25 = vmul.f32 1.442695, %v274_v23 }
  0xaa   : > { %v278_v26 = vmul.f32 1.442695, %v275_v24 }
  0xab   : > { %412 = vpow2.f32 %v276_v25 }
  0xac   : > { %414 = vpow2.f32 %v278_v26  ;;  %v257_v27 = vpop.f32.mrf.mxu0 }
  0xad   : > { %v270_v28 = vpop.f32.mrf.mxu1 }
  0xb1   : > { %v413_v29 = vpop.eup %412 }
  0xb2   : > { %v415_v30 = vpop.eup %414  ;;  %v378_v31 = vadd.f32 -1.0, %v413_v29 }
  0xb3   : > { %v379_v32 = vadd.f32 -1.0, %v415_v30 }
  0xb4   : > { %v282_v33 = vsel %vm272_vm7, %v256_v20, %v378_v31 }
  0xb5   : > { %v283_v34 = vsel %vm273_vm8, %v269_v22, %v379_v32 }
  0xb6   : > { %v284_v35 = vpack.c.bf16 %v283_v34, %v282_v33 }
  0xb8   : > { %v286_v36 = vrot.slane %v284_v35, 3 }
  0xba   : > { %v290_v38 = vsel %vm287_vm3, %v284_v35, %v286_v36 }
  0xbb   : > { %v300_v39 = vsel %vm298_vm11, %v290_v38, %v299_v37 }
  0xbc   : > { %301 = vst [vmem:[%s211_s9] sm:$0x3] %v300_v39 }
  0xbd PF: > { %p12_p9 = scmp.ge.s32.totalorder %s482_s17, 4   ;;  %s526_s14 = smov %s434_s15 }
  0xbe   : > { %s527_s15 = smov %s491_s20  ;;  %s528_s16 = smov %s482_s17 }
  0xbf   :  { %14 = sbr.rel (!%p12_p9) target bundleno = 5 (0x5), region = 105 }

// kernel: lstm_unet_forward.16
= control target key start
LH: loop header
LB: loop body
LE: loop exit
PB: predicated region body
PF: predicated region fallthrough
CT: control target
= control target key end

     0   :  { %s707_s21 = smov 0   ;;  %s709_s22 = smov 0   ;;  %s784_s0 = inlined_call_operand.vmem [shape: bf16[4,9], index: 0, kind: input, shape index: {}]   ;;  %s785_s1 = inlined_call_operand.vmem [shape: bf16[9,512], index: 1, kind: input, shape index: {}]   ;;  %s786_s2 = inlined_call_operand.vmem [shape: f32[4,1], index: 2, kind: input, shape index: {}]   ;;  %s787_s3 = inlined_call_operand.vmem [shape: bf16[4,9], index: 3, kind: input, shape index: {}]   ;;  %s788_s4 = inlined_call_operand.vmem [shape: bf16[9,512], index: 4, kind: input, shape index: {}]   ;;  %s789_s5 = inlined_call_operand.vmem [shape: f32[4,1], index: 5, kind: input, shape index: {}]   ;;  %s790_s6 = inlined_call_operand.vmem [shape: bf16[4,512], index: 6, kind: output, shape index: {}]  }
   0x1   :  { %s711_s23 = smov 0  }
   0x2 LB: > { %s570_s24 = sadd.s32 4294967295, %s668_s23   ;;  %s724_s25 = sadd.s32 1, %s668_s23   ;;  %s668_s23 = sphi %s711_s23, %s794_s23   ;;  %s664_s22 = sphi %s709_s22, %s793_s22   ;;  %s660_s21 = sphi %s707_s21, %s792_s21  }
   0x3   : > { %s41_s26 = ssub.s32 %s668_s23, %s724_s25  ;;  %s44_s27 = sadd.s32 1, %s664_s22 }
   0x4   : > { %p42_p0 = scmp.eq.s32.totalorder %s41_s26, 0  ;;  %p51_p1 = scmp.ne.s32.totalorder %s664_s22, %s660_s21 }
   0x5   : > { %p52_p2 = scmp.eq.s32.totalorder %s668_s23, 0  ;;  %p573_p4 = scmp.ge.s32.totalorder %s668_s23, 2 }
   0x6   : > { %s733_s28 = scalar_select %p42_p0, %s664_s22, %s44_s27  }
   0x7   : > { %p735_p3 = por %p52_p2, %p51_p1  ;;  %204 = sbr.rel (%p573_p4) target bundleno = 24 (0x18), region = 32 }
   0xc   : > { %207 = sbr.rel (!%p735_p3) target bundleno = 18 (0x12), region = 36  ;;  %s209_s30 = sand.u32 (%p735_p3), 1, %s664_s22  }
   0xd   : > { %s609_s7 = sshll.u32 (%p735_p3), %s668_s23, 3  ;;  %s574_s8 = sshll.u32 (%p735_p3), %s209_s30, 4 }
   0xe   : > { %s214_s11 = scalar_lea.vmem (%p735_p3), %s785_s1, %s609_s7  ;;  %s211_s12 = scalar_lea.vmem (%p735_p3), [#allocation2], %s574_s8 }
   0xf   : > { %v245_v0 = vld [vmem:[%s214_s11] sm:$0xff] (%p735_p3)  ;;  %v247_v1 = vld [vmem:[%s214_s11 + $0x10] sm:$0xff] (%p735_p3) }
  0x10   : > { %246 = vst [vmem:[%s211_s12] sm:$0xff] (%p735_p3), %v245_v0 }
  0x11   : > { %248 = vst [vmem:[%s211_s12 + $0x8] sm:$0xff] %v247_v1 }
  0x12 PF: > { %254 = sbr.rel (!%p735_p3) target bundleno = 24 (0x18), region = 74  ;;  %s256_s13 = sand.u32 (%p735_p3), 1, %s664_s22  }
  0x13   : > { %s610_s14 = sshll.u32 (%p735_p3), %s668_s23, 3  ;;  %s577_s15 = sshll.u32 (%p735_p3), %s256_s13, 4 }
  0x14   : > { %s261_s18 = scalar_lea.vmem (%p735_p3), %s788_s4, %s610_s14  ;;  %s258_s19 = scalar_lea.vmem (%p735_p3), [#allocation3], %s577_s15 }
  0x15   : > { %v292_v2 = vld [vmem:[%s261_s18] sm:$0xff] (%p735_p3)  ;;  %v294_v3 = vld [vmem:[%s261_s18 + $0x10] sm:$0xff] (%p735_p3) }
  0x16   : > { %293 = vst [vmem:[%s258_s19] sm:$0xff] (%p735_p3), %v292_v2 }
  0x17   : > { %295 = vst [vmem:[%s258_s19 + $0x8] sm:$0xff] %v294_v3 }
  0x18 PF: > { %p580_p5 = scmp.ge.s32.totalorder %s668_s23, 1  ;;  %p300_p6 = scmp.lt.s32.totalorder %s668_s23, 3 }
  0x1a   : > { %p301_p7 = pnand %p580_p5, %p300_p6 }
  0x1b   : > { %s307_s20 = sand.u32 (!%p301_p7), 1, %s660_s21   ;;  %s583_s13 = sshll.u32 (!%p301_p7), %s570_s24, 1 }
  0x1c   : > { %304 = sbr.rel (%p301_p7) target bundleno = 201 (0xc9), region = 112  ;;  %s581_s26 = sshll.u32 (!%p301_p7), %s307_s20, 4 }
  0x1d   : > { %s316_s30 = scalar_lea.vmem (!%p301_p7), [#allocation3], %s581_s26  ;;  %s309_s7 = scalar_lea.vmem (!%p301_p7), [#allocation2], %s581_s26 }
  0x1e   : > { %p350_p8 = scmp.lt.s32.totalorder (!%p301_p7), %s583_s13, 3 }
  0x21   : > { %vm377_vm0 = vcmask 1043456   ;;  %vm378_vm1 = vcmask 1044480   ;;  %v670_v4 = vmov 65535   ;;  %v416_v7 = vld [vmem:[%s789_s5] sm:$0xf]  ;;  %v671_v11 = vmov 0  }
  0x22   : > { %v379_v5 = vsel %vm377_vm0, 4294967295, %v670_v4  ;;  %v597_v8 = vld [vmem:[%s316_s30] sm:$0xf]  ;;  %v614_v9 = vld [vmem:[%s316_s30 + $0x4] sm:$0x10]  ;;  %641 = vset.pattern.permute.xlu0 %v671_v11  ;;  %vm373_vm2 = vcmask 72704  }
  0x23   : > { %v380_v6 = vsel %vm378_vm1, %v379_v5, 0  ;;  %v613_v10 = vld [vmem:[%s316_s30 + $0x4] sm:$0xf]  ;;  %v598_v12 = vor.u32 %v614_v9, %v597_v8  ;;  %v599_v13 = vld [vmem:[%s316_s30 + $0x8] sm:$0x10]  ;;  %419 = vperm.xlu0 %641, %v416_v7   ;;  %s796_s13 = smov (!%p350_p8, %s583_s13), 3 }
  0x24   : > { %v587_v14 = vld [vmem:[%s309_s7] sm:$0xf]  ;;  %v612_v15 = vld [vmem:[%s309_s7 + $0x4] sm:$0x10]  ;;  %v602_v16 = vor.u32 %v613_v10, %v599_v13  ;;  %v611_v18 = vld [vmem:[%s309_s7 + $0x4] sm:$0xf] }
  0x25   : > { %v588_v17 = vor.u32 %v612_v15, %v587_v14  ;;  %v589_v19 = vld [vmem:[%s309_s7 + $0x8] sm:$0x10]  ;;  %v434_v20 = vand.u32 %v598_v12, %v380_v6  ;;  %v413_v24 = vld [vmem:[%s787_s3] sm:$0x3]  ;;  %s584_s14 = sshll.u32 %s796_s13, 1  ;;  %vm484_vm5 = vcmask 1041408  }
  0x26   : > { %v592_v21 = vor.u32 %v611_v18, %v589_v19  ;;  %v437_v22 = vand.u32 %v602_v16, %v380_v6  ;;  %v356_v26 = vld [vmem:[%s784_s0] sm:$0x3]  ;;  %s353_s15 = scalar_lea.vmem %s790_s6, %s584_s14 }
  0x27   : > { %v382_v23 = vand.u32 %v588_v17, %v380_v6  ;;  %446 = vmatpush.bf16.msra.mxu2 %v434_v20  ;;  %v359_v27 = vld [vmem:[%s786_s2] sm:$0xf] }
  0x28   : > { %v385_v25 = vand.u32 %v592_v21, %v380_v6  ;;  %459 = vmatpush.bf16.msra.mxu3 %v437_v22 }
  0x29   : > { %394 = vmatpush.bf16.msra.mxu0 %v382_v23 }
  0x2a   : > { %407 = vmatpush.bf16.msra.mxu1 %v385_v25  ;;  %603 = vmatmul.msk.bf16.vlgmr.msra.gmra.mxu2 %vm373_vm2, %v413_v24 }
  0x2b   : > { %604 = vmatmul.msk.bf16.vlgmr.msra.gmra.mxu3 %vm373_vm2, %v413_v24  ;;  %362 = vperm.xlu0 %641, %v359_v27  }
  0x2c   : > { %593 = vmatmul.msk.bf16.vlgmr.msra.gmra.mxu0 %vm373_vm2, %v356_v26 }
  0x2d   : > { %594 = vmatmul.msk.bf16.vlgmr.msra.gmra.mxu1 %vm373_vm2, %v356_v26 }
  0x95   : > { %v420_v30 = vpop.permute.xlu0 %419 }
  0x9d   : > { %v363_v43 = vpop.permute.xlu0 %362 }
  0xa9   : > { %v396_v28 = vpop.f32.mrf.mxu0 }
  0xaa   : > { %v409_v29 = vpop.f32.mrf.mxu1  ;;  %v397_v47 = vadd.f32 %v396_v28, %v363_v43 }
  0xab   : > { %v410_v49 = vadd.f32 %v409_v29, %v363_v43 }
  0xad   : > { %v448_v31 = vpop.f32.mrf.mxu2 }
  0xae   : > { %v449_v32 = vadd.f32 %v448_v31, %v420_v30  ;;  %v461_v33 = vpop.f32.mrf.mxu3 }
  0xaf   : > { %v462_v34 = vadd.f32 %v461_v33, %v420_v30 }
  0xb0   : > { %v467_v35 = vmin.f32 %v449_v32, 0.0  ;;  %vm465_vm3 = vcmp.gt.f32.partialorder %v449_v32, 0.0 }
  0xb1   : > { %v398_v36 = vpop.f32.mrf.mxu0  ;;  %v468_v37 = vmin.f32 %v462_v34, 0.0  ;;  %vm466_vm4 = vcmp.gt.f32.partialorder %v462_v34, 0.0 }
  0xb2   : > { %v411_v38 = vpop.f32.mrf.mxu1  ;;  %v469_v39 = vmul.f32 1.442695, %v467_v35 }
  0xb3   : > { %v471_v40 = vmul.f32 1.442695, %v468_v37 }
  0xb4   : > { %642 = vpow2.f32 %v469_v39 }
  0xb5   : > { %644 = vpow2.f32 %v471_v40  ;;  %v450_v41 = vpop.f32.mrf.mxu2 }
  0xb6   : > { %v463_v42 = vpop.f32.mrf.mxu3 }
  0xba   : > { %v643_v44 = vpop.eup %642 }
  0xbb   : > { %v645_v45 = vpop.eup %644  ;;  %v605_v46 = vadd.f32 -1.0, %v643_v44 }
  0xbc   : > { %v606_v48 = vadd.f32 -1.0, %v645_v45 }
  0xbd   : > { %v475_v50 = vsel %vm465_vm3, %v449_v32, %v605_v46 }
  0xbe   : > { %v477_v51 = vadd.f32 %v475_v50, %v397_v47  ;;  %v476_v52 = vsel %vm466_vm4, %v462_v34, %v606_v48 }
  0xbf   : > { %v478_v53 = vadd.f32 %v476_v52, %v410_v49 }
  0xc0   : > { %v479_v54 = vmax.f32 %v477_v51, 0.0 }
  0xc1   : > { %v480_v55 = vmax.f32 %v478_v53, 0.0 }
  0xc3   : > { %v481_v56 = vpack.c.bf16 %v480_v55, %v479_v54 }
  0xc5   : > { %v483_v57 = vrot.slane %v481_v56, 2 }
  0xc7   : > { %v487_v58 = vsel %vm484_vm5, %v481_v56, %v483_v57 }
  0xc8   : > { %489 = vst [vmem:[%s353_s15] sm:$0xf] %v487_v58 }
  0xc9 PF: > { %p13_p9 = scmp.ge.s32.totalorder %s724_s25, 4   ;;  %s792_s21 = smov %s664_s22 }
  0xca   : > { %s793_s22 = smov %s733_s28  ;;  %s794_s23 = smov %s724_s25 }
  0xcb   :  { %15 = sbr.rel (!%p13_p9) target bundleno = 2 (0x2), region = 163 }

// kernel: lstm_unet_forward.17
= control target key start
LH: loop header
LB: loop body
LE: loop exit
PB: predicated region body
PF: predicated region fallthrough
CT: control target
= control target key end

     0   :  { %v109_v1 = vmov 0   ;;  %vm54_vm0 = vcmask 523264   ;;  %s151_s1 = inlined_call_operand.vmem [shape: bf16[64,128], index: 1, kind: input, shape index: {}]   ;;  %s152_s2 = inlined_call_operand.vmem [shape: f32[4,1], index: 2, kind: input, shape index: {}]   ;;  %s153_s0 = inlined_call_operand.vmem [shape: bf16[4,64], index: 0, kind: input, shape index: {}]   ;;  %s154_s3 = inlined_call_operand.vmem [shape: bf16[4,128], index: 3, kind: output, shape index: {}]  }
   0x1   :  { %v104_v0 = vld [vmem:[%s151_s1 + $0x18] sm:$0xff]  ;;  %106 = vset.pattern.permute.xlu0 %v109_v1  ;;  %v24_v2 = vld [vmem:[%s152_s2] sm:$0xf]  ;;  %v103_v3 = vld [vmem:[%s151_s1 + $0x10] sm:$0xff] }
   0x2   :  { %62 = vmatpush.bf16.msra.mxu0 %v104_v0  ;;  %27 = vperm.xlu0 %106, %v24_v2   ;;  %v102_v4 = vld [vmem:[%s151_s1 + $0x8] sm:$0xff]  ;;  %v101_v5 = vld [vmem:[%s151_s1] sm:$0xff] }
   0x3   :  { %v15_v6 = vld [vmem:[%s153_s0] sm:$0x3] }
   0x6   :  { %63 = vmatpush.bf16.msra.mxu0 %v103_v3 }
   0xa   :  { %64 = vmatpush.bf16.msra.mxu0 %v102_v4 }
   0xe   :  { %65 = vmatpush.bf16.msra.mxu0 %v101_v5 }
  0x11   :  { %99 = vmatmul.msk.bf16.vlgmr.msra.gmra.mxu0 %vm54_vm0, %v15_v6 }
  0x74   :  { %v28_v7 = vpop.permute.xlu0 %27 }
  0x8e   :  { %v67_v8 = vpop.f32.mrf.mxu0 }
  0x8f   :  { %v68_v9 = vadd.f32 %v67_v8, %v28_v7 }
  0x91   :  { %v72_v10 = vmin.f32 %v68_v9, 0.0  ;;  %vm71_vm1 = vcmp.gt.f32.partialorder %v68_v9, 0.0 }
  0x93   :  { %v73_v11 = vmul.f32 1.442695, %v72_v10 }
  0x95   :  { %107 = vpow2.f32 %v73_v11 }
  0x96   :  { %v69_v12 = vpop.f32.mrf.mxu0 }
  0x9b   :  { %v108_v13 = vpop.eup %107 }
  0x9c   :  { %v100_v14 = vadd.f32 -1.0, %v108_v13 }
  0x9e   :  { %v76_v15 = vsel %vm71_vm1, %v68_v9, %v100_v14 }
  0x9f   :  { %v77_v16 = vpack.c.bf16 %v76_v15, %v76_v15 }
  0xa1   :  { %78 = vst [vmem:[%s154_s3] sm:$0x3] %v77_v16 }

// kernel: lstm_unet_forward.19
= control target key start
LH: loop header
LB: loop body
LE: loop exit
PB: predicated region body
PF: predicated region fallthrough
CT: control target
= control target key end

     0   :  { %v91_v1 = vmov 0   ;;  %vm46_vm0 = vcmask 1041408   ;;  %vm42_vm1 = vcmask 293888   ;;  %s130_s1 = inlined_call_operand.vmem [shape: bf16[36,128], index: 1, kind: input, shape index: {}]   ;;  %s131_s2 = inlined_call_operand.vmem [shape: f32[4,1], index: 2, kind: input, shape index: {}]   ;;  %s132_s0 = inlined_call_operand.vmem [shape: bf16[4,36], index: 0, kind: input, shape index: {}]   ;;  %s133_s3 = inlined_call_operand.vmem [shape: bf16[4,128], index: 3, kind: output, shape index: {}]  }
   0x1   :  { %v20_v0 = vld [vmem:[%s130_s1 + $0x10] sm:$0x3]  ;;  %88 = vset.pattern.permute.xlu0 %v91_v1  ;;  %v21_v3 = vld [vmem:[%s131_s2] sm:$0xf]  ;;  %v86_v6 = vld [vmem:[%s130_s1 + $0x8] sm:$0xff] }
   0x2   :  { %v36_v2 = vunpack.c.l.b16 %v20_v0  ;;  %24 = vperm.xlu0 %88, %v21_v3   ;;  %v85_v7 = vld [vmem:[%s130_s1] sm:$0xff] }
   0x3   :  { %v15_v8 = vld [vmem:[%s132_s0] sm:$0x3] }
   0x4   :  { %v39_v4 = vpack.c.b16 %v36_v2, %v36_v2 }
   0x6   :  { %v48_v5 = vsel %vm46_vm0, %v39_v4, 0 }
   0x7   :  { %55 = vmatpush.bf16.msra.mxu0 %v48_v5 }
   0xb   :  { %56 = vmatpush.bf16.msra.mxu0 %v86_v6 }
   0xf   :  { %57 = vmatpush.bf16.msra.mxu0 %v85_v7 }
  0x12   :  { %83 = vmatmul.msk.bf16.vlgmr.msra.gmra.mxu0 %vm42_vm1, %v15_v8 }
  0x74   :  { %v25_v9 = vpop.permute.xlu0 %24 }
  0x8f   :  { %v59_v10 = vpop.f32.mrf.mxu0 }
  0x90   :  { %v60_v11 = vadd.f32 %v59_v10, %v25_v9 }
  0x92   :  { %v64_v12 = vmin.f32 %v60_v11, 0.0  ;;  %vm63_vm2 = vcmp.gt.f32.partialorder %v60_v11, 0.0 }
  0x94   :  { %v65_v13 = vmul.f32 1.442695, %v64_v12 }
  0x96   :  { %89 = vpow2.f32 %v65_v13 }
  0x97   :  { %v61_v14 = vpop.f32.mrf.mxu0 }
  0x9c   :  { %v90_v15 = vpop.eup %89 }
  0x9d   :  { %v84_v16 = vadd.f32 -1.0, %v90_v15 }
  0x9f   :  { %v68_v17 = vsel %vm63_vm2, %v60_v11, %v84_v16 }
  0xa0   :  { %v69_v18 = vpack.c.bf16 %v68_v17, %v68_v17 }
  0xa2   :  { %70 = vst [vmem:[%s133_s3] sm:$0x3] %v69_v18 }

// kernel: lstm_unet_forward.20
= control target key start
LH: loop header
LB: loop body
LE: loop exit
PB: predicated region body
PF: predicated region fallthrough
CT: control target
= control target key end

     0   :  { %v159_v2 = vmov 0   ;;  %vm55_vm0 = vcmask 1041408   ;;  %vm51_vm1 = vcmask 293888   ;;  %s228_s1 = inlined_call_operand.vmem [shape: bf16[36,128], index: 1, kind: input, shape index: {}]   ;;  %s229_s4 = inlined_call_operand.vmem [shape: bf16[36,128], index: 4, kind: input, shape index: {}]   ;;  %s230_s5 = inlined_call_operand.vmem [shape: f32[8,1], index: 5, kind: input, shape index: {}]   ;;  %s231_s2 = inlined_call_operand.vmem [shape: f32[8,1], index: 2, kind: input, shape index: {}]   ;;  %s232_s0 = inlined_call_operand.vmem [shape: bf16[8,36], index: 0, kind: input, shape index: {}]   ;;  %s233_s3 = inlined_call_operand.vmem [shape: bf16[8,36], index: 3, kind: input, shape index: {}]   ;;  %s234_s6 = inlined_call_operand.vmem [shape: bf16[8,128], index: 6, kind: output, shape index: {}]  }
   0x1   :  { %v29_v0 = vld [vmem:[%s228_s1 + $0x10] sm:$0x3]  ;;  %156 = vset.pattern.permute.xlu0 %v159_v2  ;;  %v78_v5 = vld [vmem:[%s230_s5] sm:$0xff]  ;;  %v152_v10 = vld [vmem:[%s228_s1 + $0x8] sm:$0xff] }
   0x2   :  { %v77_v1 = vld [vmem:[%s229_s4 + $0x10] sm:$0x3]  ;;  %v45_v3 = vunpack.c.l.b16 %v29_v0  ;;  %81 = vperm.xlu0 %156, %v78_v5   ;;  %v154_v11 = vld [vmem:[%s229_s4 + $0x8] sm:$0xff]  ;;  %v30_v12 = vld [vmem:[%s231_s2] sm:$0xff] }
   0x3   :  { %v93_v4 = vunpack.c.l.b16 %v77_v1  ;;  %v151_v13 = vld [vmem:[%s228_s1] sm:$0xff] }
   0x4   :  { %v48_v6 = vpack.c.b16 %v45_v3, %v45_v3  ;;  %v153_v14 = vld [vmem:[%s229_s4] sm:$0xff] }
   0x5   :  { %v96_v7 = vpack.c.b16 %v93_v4, %v93_v4  ;;  %v24_v15 = vld [vmem:[%s232_s0] sm:$0xf] }
   0x6   :  { %v57_v8 = vsel %vm55_vm0, %v48_v6, 0  ;;  %v72_v16 = vld [vmem:[%s233_s3] sm:$0xf] }
   0x7   :  { %v103_v9 = vsel %vm55_vm0, %v96_v7, 0  ;;  %64 = vmatpush.bf16.msra.mxu0 %v57_v8 }
   0x8   :  { %110 = vmatpush.bf16.msra.mxu1 %v103_v9 }
   0xa   :  { %33 = vperm.xlu0 %156, %v30_v12  }
   0xb   :  { %65 = vmatpush.bf16.msra.mxu0 %v152_v10 }
   0xc   :  { %111 = vmatpush.bf16.msra.mxu1 %v154_v11 }
   0xf   :  { %66 = vmatpush.bf16.msra.mxu0 %v151_v13 }
  0x10   :  { %112 = vmatpush.bf16.msra.mxu1 %v153_v14 }
  0x12   :  { %140 = vmatmul.msk.bf16.vlgmr.msra.gmra.mxu0 %vm51_vm1, %v24_v15 }
  0x13   :  { %149 = vmatmul.msk.bf16.vlgmr.msra.gmra.mxu1 %vm51_vm1, %v72_v16 }
  0x74   :  { %v82_v17 = vpop.permute.xlu0 %81 }
  0x7c   :  { %v34_v25 = vpop.permute.xlu0 %33 }
  0x8f   :  { %v68_v19 = vpop.f32.mrf.mxu0 }
  0x90   :  { %v114_v18 = vpop.f32.mrf.mxu1  ;;  %v69_v28 = vadd.f32 %v68_v19, %v34_v25 }
  0x91   :  { %v115_v20 = vadd.f32 %v114_v18, %v82_v17 }
  0x93   :  { %v119_v21 = vmin.f32 %v115_v20, 0.0  ;;  %vm118_vm2 = vcmp.gt.f32.partialorder %v115_v20, 0.0 }
  0x95   :  { %v120_v22 = vmul.f32 1.442695, %v119_v21 }
  0x97   :  { %157 = vpow2.f32 %v120_v22  ;;  %v70_v24 = vpop.f32.mrf.mxu0 }
  0x98   :  { %v116_v23 = vpop.f32.mrf.mxu1 }
  0x9d   :  { %v158_v26 = vpop.eup %157 }
  0x9e   :  { %v150_v27 = vadd.f32 -1.0, %v158_v26 }
  0xa0   :  { %v123_v29 = vsel %vm118_vm2, %v115_v20, %v150_v27 }
  0xa1   :  { %v124_v30 = vadd.f32 %v123_v29, %v69_v28 }
  0xa3   :  { %v125_v31 = vmax.f32 %v124_v30, 0.0 }
  0xa5   :  { %v126_v32 = vpack.c.bf16 %v125_v31, %v125_v31 }
  0xa7   :  { %127 = vst [vmem:[%s234_s6] sm:$0xf] %v126_v32 }

// kernel: lstm_unet_forward.21
= control target key start
LH: loop header
LB: loop body
LE: loop exit
PB: predicated region body
PF: predicated region fallthrough
CT: control target
= control target key end

     0   :  { %v156_v2 = vmov 0   ;;  %vm105_vm1 = vcmask 257024   ;;  %s210_s1 = inlined_call_operand.vmem [shape: bf16[128,32], index: 1, kind: input, shape index: {}]   ;;  %s211_s2 = inlined_call_operand.vmem [shape: f32[8,1], index: 2, kind: input, shape index: {}]   ;;  %s212_s0 = inlined_call_operand.vmem [shape: bf16[8,128], index: 0, kind: input, shape index: {}]   ;;  %s213_s3 = inlined_call_operand.vmem [shape: bf16[8,32], index: 3, kind: output, shape index: {}]  }
   0x1   :  { %v151_v0 = vld [vmem:[%s210_s1 + $0x38] sm:$0xff]  ;;  %v150_v1 = vld [vmem:[%s210_s1 + $0x30] sm:$0xff]  ;;  %153 = vset.pattern.permute.xlu0 %v156_v2  ;;  %v31_v3 = vld [vmem:[%s211_s2] sm:$0xff] }
   0x2   :  { %85 = vmatpush.bf16.msra.mxu0 %v151_v0  ;;  %34 = vperm.xlu0 %153, %v31_v3   ;;  %v149_v4 = vld [vmem:[%s210_s1 + $0x28] sm:$0xff]  ;;  %v148_v5 = vld [vmem:[%s210_s1 + $0x20] sm:$0xff]  ;;  %v147_v6 = vld [vmem:[%s210_s1 + $0x18] sm:$0xff] }
   0x3   :  { %v146_v7 = vld [vmem:[%s210_s1 + $0x10] sm:$0xff]  ;;  %v145_v8 = vld [vmem:[%s210_s1 + $0x8] sm:$0xff]  ;;  %v144_v9 = vld [vmem:[%s210_s1] sm:$0xff] }
   0x4   :  { %v14_v10 = vld [vmem:[%s212_s0] sm:$0xf] }
   0x6   :  { %86 = vmatpush.bf16.msra.mxu0 %v150_v1 }
   0xa   :  { %87 = vmatpush.bf16.msra.mxu0 %v149_v4 }
   0xe   :  { %88 = vmatpush.bf16.msra.mxu0 %v148_v5 }
  0x12   :  { %89 = vmatpush.bf16.msra.mxu0 %v147_v6 }
  0x16   :  { %90 = vmatpush.bf16.msra.mxu0 %v146_v7 }
  0x1a   :  { %91 = vmatpush.bf16.msra.mxu0 %v145_v8 }
  0x1e   :  { %92 = vmatpush.bf16.msra.mxu0 %v144_v9 }
  0x21   :  { %93 = vmatmul.bf16.vlgmr.msra.gmra.mxu0 %v14_v10 }
  0x74   :  { %v35_v11 = vpop.permute.xlu0 %34 }
  0x9e   :  { %v94_v12 = vpop.f32.mrf.mxu0 }
  0x9f   :  { %v95_v13 = vadd.f32 %v94_v12, %v35_v11 }
  0xa1   :  { %v99_v14 = vmin.f32 %v95_v13, 0.0  ;;  %vm98_vm0 = vcmp.gt.f32.partialorder %v95_v13, 0.0 }
  0xa3   :  { %v100_v15 = vmul.f32 1.442695, %v99_v14 }
  0xa5   :  { %154 = vpow2.f32 %v100_v15 }
  0xa6   :  { %v96_v16 = vpop.f32.mrf.mxu0 }
  0xab   :  { %v155_v17 = vpop.eup %154 }
  0xac   :  { %v143_v18 = vadd.f32 -1.0, %v155_v17 }
  0xae   :  { %v103_v19 = vsel %vm98_vm0, %v95_v13, %v143_v18 }
  0xaf   :  { %v104_v20 = vpack.c.bf16 %v103_v19, %v103_v19 }
  0xb1   :  { %106 = vst.msk [vmem:[%s213_s3] sm:$0xf] %vm105_vm1, %v104_v20 }

// kernel: lstm_unet_forward.23
= control target key start
LH: loop header
LB: loop body
LE: loop exit
PB: predicated region body
PF: predicated region fallthrough
CT: control target
= control target key end

     0   :  { %vm105_vm0 = vcmask 130048   ;;  %v419_v9 = vmov 0   ;;  %vm329_vm11 = vcmask 261120   ;;  %s530_s2 = inlined_call_operand.vmem [shape: bf16[144,32], index: 2, kind: input, shape index: {}]   ;;  %s531_s0 = inlined_call_operand.vmem [shape: bf16[4,8,144], index: 0, kind: input, shape index: {}]   ;;  %s532_s1 = inlined_call_operand.vmem [shape: f32[4,8,1], index: 1, kind: input, shape index: {}]   ;;  %s533_s3 = inlined_call_operand.vmem [shape: f32[8,32], index: 3, kind: input, shape index: {}]   ;;  %s534_s5 = inlined_call_operand.vmem [shape: f32[8,32], index: 5, kind: output, shape index: {1}]   ;;  %s535_s4 = inlined_call_operand.vmem [shape: f32[8,32], index: 4, kind: output, shape index: {0}]  }
   0x1   :  { %v398_v0 = vld [vmem:[%s530_s2 + $0x38] sm:$0xff]  ;;  %v456_v1 = vld [vmem:[%s530_s2 + $0x40] sm:$0xff]  ;;  %v397_v2 = vld [vmem:[%s530_s2 + $0x30] sm:$0xff]  ;;  %401 = vset.pattern.permute.xlu0 %v419_v9  ;;  %402 = vset.pattern.permute.xlu1 %v419_v9 }
   0x2   :  { %109 = vmatpush.bf16.msra.mxu0 %v398_v0  ;;  %172 = vmatpush.bf16.msra.mxu2 %v398_v0  ;;  %v464_v3 = vld [vmem:[%s531_s0 + $0x10] sm:$0xff]  ;;  %v38_v5 = vld [vmem:[%s531_s0] sm:$0xff]  ;;  %v396_v10 = vld [vmem:[%s530_s2 + $0x28] sm:$0xff] }
   0x3   :  { %255 = vmatpush.bf16.msra.mxu3 %v456_v1  ;;  %129 = vmatpush.bf16.msra.mxu1 %v456_v1  ;;  %v228_v4 = vunpack.c.h.b16 %v464_v3  ;;  %v47_v6 = vunpack.c.h.b16 %v38_v5  ;;  %v39_v7 = vld [vmem:[%s532_s1] sm:$0xff]  ;;  %v388_v12 = vld [vmem:[%s532_s1 + $0x18] sm:$0xff]  ;;  %v381_v15 = vld [vmem:[%s532_s1 + $0x8] sm:$0xff]  ;;  %v46_v21 = vunpack.c.l.b16 %v38_v5  ;;  %v227_v25 = vunpack.c.l.b16 %v464_v3 }
   0x4   :  { %42 = vperm.xlu0 %401, %v39_v7   ;;  %268 = vperm.xlu1 %402, %v388_v12   ;;  %v395_v13 = vld [vmem:[%s530_s2 + $0x20] sm:$0xff]  ;;  %v394_v14 = vld [vmem:[%s530_s2 + $0x18] sm:$0xff]  ;;  %v385_v16 = vld [vmem:[%s532_s1 + $0x10] sm:$0xff] }
   0x5   :  { %v230_v8 = vpack.c.b16 %v228_v4, %v228_v4  ;;  %v49_v11 = vpack.c.b16 %v47_v6, %v47_v6  ;;  %v393_v17 = vld [vmem:[%s530_s2 + $0x10] sm:$0xff]  ;;  %v392_v18 = vld [vmem:[%s530_s2 + $0x8] sm:$0xff]  ;;  %v387_v20 = vld [vmem:[%s531_s0 + $0x18] sm:$0xff]  ;;  %v48_v26 = vpack.c.b16 %v46_v21, %v46_v21  ;;  %v229_v29 = vpack.c.b16 %v227_v25, %v227_v25 }
   0x6   :  { %110 = vmatpush.bf16.msra.mxu0 %v397_v2  ;;  %173 = vmatpush.bf16.msra.mxu2 %v397_v2  ;;  %v380_v19 = vld [vmem:[%s531_s0 + $0x8] sm:$0xff]  ;;  %v391_v23 = vld [vmem:[%s530_s2] sm:$0xff]  ;;  %v272_v24 = vunpack.c.l.b16 %v387_v20  ;;  %v273_v31 = vunpack.c.h.b16 %v387_v20 }
   0x7   :  { %280 = vmatpush.bf16.msrb.mxu3 %v398_v0  ;;  %235 = vmatpush.bf16.msrb.mxu1 %v398_v0  ;;  %v164_v22 = vunpack.c.l.b16 %v380_v19  ;;  %v165_v30 = vunpack.c.h.b16 %v380_v19 }
   0x8   :  { %386 = vmatmul.msk.bf16.vlgmr.msra.gmra.mxu3 %vm105_vm0, %v230_v8  ;;  %378 = vmatmul.msk.bf16.vlgmr.msra.gmra.mxu1 %vm105_vm0, %v49_v11  ;;  %v274_v28 = vpack.c.b16 %v272_v24, %v272_v24  ;;  %v275_v33 = vpack.c.b16 %v273_v31, %v273_v31 }
   0x9   :  { %v166_v27 = vpack.c.b16 %v164_v22, %v164_v22  ;;  %v167_v32 = vpack.c.b16 %v165_v30, %v165_v30 }
   0xa   :  { %111 = vmatpush.bf16.msra.mxu0 %v396_v10  ;;  %174 = vmatpush.bf16.msra.mxu2 %v396_v10 }
   0xb   :  { %281 = vmatpush.bf16.msrb.mxu3 %v397_v2  ;;  %236 = vmatpush.bf16.msrb.mxu1 %v397_v2 }
   0xc   :  { %160 = vperm.xlu0 %401, %v381_v15   ;;  %223 = vperm.xlu1 %402, %v385_v16  }
   0xe   :  { %112 = vmatpush.bf16.msra.mxu0 %v395_v13  ;;  %175 = vmatpush.bf16.msra.mxu2 %v395_v13 }
   0xf   :  { %282 = vmatpush.bf16.msrb.mxu3 %v396_v10  ;;  %237 = vmatpush.bf16.msrb.mxu1 %v396_v10 }
  0x12   :  { %113 = vmatpush.bf16.msra.mxu0 %v394_v14  ;;  %176 = vmatpush.bf16.msra.mxu2 %v394_v14 }
  0x13   :  { %283 = vmatpush.bf16.msrb.mxu3 %v395_v13  ;;  %238 = vmatpush.bf16.msrb.mxu1 %v395_v13 }
  0x16   :  { %114 = vmatpush.bf16.msra.mxu0 %v393_v17  ;;  %177 = vmatpush.bf16.msra.mxu2 %v393_v17 }
  0x17   :  { %284 = vmatpush.bf16.msrb.mxu3 %v394_v14  ;;  %239 = vmatpush.bf16.msrb.mxu1 %v394_v14 }
  0x1a   :  { %115 = vmatpush.bf16.msra.mxu0 %v392_v18  ;;  %178 = vmatpush.bf16.msra.mxu2 %v392_v18 }
  0x1b   :  { %285 = vmatpush.bf16.msrb.mxu3 %v393_v17  ;;  %240 = vmatpush.bf16.msrb.mxu1 %v393_v17 }
  0x1e   :  { %116 = vmatpush.bf16.msra.mxu0 %v391_v23  ;;  %179 = vmatpush.bf16.msra.mxu2 %v391_v23 }
  0x1f   :  { %286 = vmatpush.bf16.msrb.mxu3 %v392_v18  ;;  %241 = vmatpush.bf16.msrb.mxu1 %v392_v18 }
  0x21   :  { %117 = vmatmul.bf16.vlgmr.msra.gmra.mxu0 %v48_v26  ;;  %180 = vmatmul.bf16.vlgmr.msra.gmra.mxu2 %v166_v27 }
  0x22   :  { %192 = vmatpush.bf16.msrb.mxu2 %v456_v1  ;;  %300 = vmatpush.bf16.msrb.mxu0 %v456_v1 }
  0x23   :  { %287 = vmatpush.bf16.msrb.mxu3 %v391_v23  ;;  %242 = vmatpush.bf16.msrb.mxu1 %v391_v23 }
  0x26   :  { %288 = vmatmul.bf16.vlgmr.msrb.gmra.mxu3 %v274_v28  ;;  %243 = vmatmul.bf16.vlgmr.msrb.gmra.mxu1 %v229_v29  ;;  %v325_v29 = vld [vmem:[%s533_s3] sm:$0xff] }
  0x31   :  { %382 = vmatmul.msk.bf16.vlgmr.msrb.gmra.mxu2 %vm105_vm0, %v167_v32  ;;  %389 = vmatmul.msk.bf16.vlgmr.msrb.gmra.mxu0 %vm105_vm0, %v275_v33 }
  0x76   :  { %v43_v38 = vpop.permute.xlu0 %42  ;;  %v269_v48 = vpop.permute.xlu1 %268 }
  0x7e   :  { %v161_v56 = vpop.permute.xlu0 %160  ;;  %v224_v7 = vpop.permute.xlu1 %223 }
  0x85   :  { %v131_v34 = vpop.f32.mrf.mxu1 }
  0x8b   :  { %v257_v35 = vpop.f32.mrf.mxu3 }
  0x8d   :  { %v133_v36 = vpop.f32.mrf.mxu1 }
  0x93   :  { %v259_v37 = vpop.f32.mrf.mxu3 }
  0x9e   :  { %v118_v39 = vpop.f32.mrf.mxu0 }
  0x9f   :  { %v119_v40 = vadd.f32 %v118_v39, %v43_v38 }
  0xa1   :  { %v132_v42 = vadd.f32 %v131_v34, %v119_v40 }
  0xa3   :  { %v244_v41 = vpop.f32.mrf.mxu1  ;;  %v379_v43 = vmul.f32 -1.442695, %v132_v42 }
  0xa4   :  { %v181_v44 = vpop.f32.mrf.mxu2  ;;  %v245_v8 = vadd.f32 %v244_v41, %v224_v7 }
  0xa5   :  { %403 = vpow2.f32 %v379_v43  ;;  %v182_v58 = vadd.f32 %v181_v44, %v161_v56 }
  0xa6   :  { %v120_v45 = vpop.f32.mrf.mxu0  ;;  %v258_v14 = vadd.f32 %v257_v35, %v245_v8 }
  0xa9   :  { %v289_v46 = vpop.f32.mrf.mxu3 }
  0xaa   :  { %v290_v49 = vadd.f32 %v289_v46, %v269_v48 }
  0xab   :  { %v246_v47 = vpop.f32.mrf.mxu1  ;;  %v404_v50 = vpop.eup %403 }
  0xac   :  { %v183_v51 = vpop.f32.mrf.mxu2  ;;  %v138_v54 = vadd.f32 1.0, %v404_v50 }
  0xae   :  { %v302_v52 = vpop.f32.mrf.mxu0  ;;  %405 = vrcp.f32 %v138_v54  ;;  %vm144_vm1 = vweird.f32 %v138_v54  ;;  %v148_v12 = vand.u32 2147483647, %v138_v54  ;;  %v150_v13 = vand.u32 2147483648, %v138_v54 }
  0xaf   :  { %v303_v55 = vadd.f32 %v302_v52, %v290_v49 }
  0xb0   :  { %vm149_vm4 = vcmp.eq.f32.partialorder %v148_v12, 8.507059e+37  ;;  %v151_v20 = vor.u32 1.1754944e-38, %v150_v13 }
  0xb1   :  { %v291_v53 = vpop.f32.mrf.mxu3  ;;  %v390_v57 = vmul.f32 -1.442695, %v303_v55 }
  0xb3   :  { %407 = vpow2.f32 %v390_v57 }
  0xb4   :  { %v194_v59 = vpop.f32.mrf.mxu2  ;;  %v406_v63 = vpop.eup %405 }
  0xb5   :  { %v195_v60 = vadd.f32 %v194_v59, %v182_v58  ;;  %v140_v2 = vmul.f32 %v406_v63, %v138_v54  ;;  %vm145_vm2 = vweird.f32 %v406_v63 }
  0xb6   :  { %v304_v61 = vpop.f32.mrf.mxu0  ;;  %vm515_vm3 = vmor %vm144_vm1, %vm145_vm2 }
  0xb7   :  { %v383_v62 = vmul.f32 -1.442695, %v195_v60  ;;  %v141_v6 = vsub.f32 1.0, %v140_v2 }
  0xb9   :  { %409 = vpow2.f32 %v383_v62  ;;  %v408_v0 = vpop.eup %407  ;;  %v142_v9 = vmul.f32 %v406_v63, %v141_v6 }
  0xba   :  { %v309_v3 = vadd.f32 1.0, %v408_v0 }
  0xbb   :  { %v143_v15 = vadd.f32 %v406_v63, %v142_v9 }
  0xbc   :  { %v196_v1 = vpop.f32.mrf.mxu2  ;;  %411 = vrcp.f32 %v309_v3  ;;  %vm315_vm9 = vweird.f32 %v309_v3  ;;  %v321_v36 = vand.u32 2147483648, %v309_v3  ;;  %v319_v39 = vand.u32 2147483647, %v309_v3 }
  0xbd   :  { %v147_v22 = vsel %vm515_vm3, %v406_v63, %v143_v15 }
  0xbe   :  { %v152_v27 = vsel %vm149_vm4, %v151_v20, %v147_v22  ;;  %v322_v40 = vor.u32 1.1754944e-38, %v321_v36  ;;  %vm320_vm13 = vcmp.eq.f32.partialorder %v319_v39, 8.507059e+37 }
  0xbf   :  { %v410_v4 = vpop.eup %409 }
  0xc0   :  { %v201_v5 = vadd.f32 1.0, %v410_v4 }
  0xc2   :  { %413 = vrcp.f32 %v201_v5  ;;  %v412_v10 = vpop.eup %411  ;;  %v213_v21 = vand.u32 2147483648, %v201_v5  ;;  %v211_v24 = vand.u32 2147483647, %v201_v5  ;;  %vm207_vm6 = vweird.f32 %v201_v5 }
  0xc3   :  { %v311_v18 = vmul.f32 %v412_v10, %v309_v3  ;;  %415 = vtanh.f32 %v258_v14  ;;  %vm316_vm10 = vweird.f32 %v412_v10 }
  0xc4   :  { %v214_v28 = vor.u32 1.1754944e-38, %v213_v21  ;;  %vm212_vm8 = vcmp.eq.f32.partialorder %v211_v24, 8.507059e+37  ;;  %vm317_vm12 = vmor %vm315_vm9, %vm316_vm10 }
  0xc5   :  { %v312_v25 = vsub.f32 1.0, %v311_v18 }
  0xc7   :  { %v313_v32 = vmul.f32 %v412_v10, %v312_v25 }
  0xc8   :  { %v414_v11 = vpop.eup %413 }
  0xc9   :  { %v203_v16 = vmul.f32 %v414_v11, %v201_v5  ;;  %vm208_vm5 = vweird.f32 %v414_v11  ;;  %v416_v31 = vpop.eup %415  ;;  %v314_v38 = vadd.f32 %v412_v10, %v313_v32 }
  0xca   :  { %vm209_vm7 = vmor %vm207_vm6, %vm208_vm5  ;;  %v327_v34 = vmul.f32 %v416_v31, %v152_v27 }
  0xcb   :  { %v204_v19 = vsub.f32 1.0, %v203_v16  ;;  %v318_v41 = vsel %vm317_vm12, %v412_v10, %v314_v38 }
  0xcc   :  { %v323_v43 = vsel %vm320_vm13, %v322_v40, %v318_v41 }
  0xcd   :  { %v205_v23 = vmul.f32 %v414_v11, %v204_v19 }
  0xcf   :  { %v206_v26 = vadd.f32 %v414_v11, %v205_v23 }
  0xd1   :  { %v210_v30 = vsel %vm209_vm7, %v414_v11, %v206_v26 }
  0xd2   :  { %v215_v33 = vsel %vm212_vm8, %v214_v28, %v210_v30 }
  0xd3   :  { %v326_v35 = vmul.f32 %v325_v29, %v215_v33 }
  0xd5   :  { %v328_v37 = vadd.f32 %v327_v34, %v326_v35 }
  0xd7   :  { %330 = vst.msk [vmem:[%s534_s5] sm:$0xff] %vm329_vm11, %v328_v37  ;;  %417 = vtanh.f32 %v328_v37 }
  0xdd   :  { %v418_v42 = vpop.eup %417 }
  0xde   :  { %v332_v44 = vmul.f32 %v418_v42, %v323_v43 }
  0xe0   :  { %333 = vst.msk [vmem:[%s535_s4] sm:$0xff] %vm329_vm11, %v332_v44 }

// kernel: tile.13
= control target key start
LH: loop header
LB: loop body
LE: loop exit
PB: predicated region body
PF: predicated region fallthrough
CT: control target
= control target key end

     0   :  { %s22_s0 = inlined_call_operand.vmem [shape: f32[8], index: 0, kind: input, shape index: {}]   ;;  %s23_s1 = inlined_call_operand.vmem [shape: f32[4,8], index: 1, kind: output, shape index: {}]  }
   0x1   :  { %v4_v0 = vld [vmem:[%s22_s0] ss:$0 sm:$0xff] }
   0x2   :  { %5 = vst [vmem:[%s23_s1] sm:$0xf] %v4_v0 }

// kernel: tile.0
= control target key start
LH: loop header
LB: loop body
LE: loop exit
PB: predicated region body
PF: predicated region fallthrough
CT: control target
= control target key end

     0   :  { %s66_s8 = smov 125   ;;  %s67_s9 = smov 123   ;;  %vm7_vm0 = vcmask 7168   ;;  %s117_s0 = inlined_call_operand.vmem [shape: f32[4,8], index: 0, kind: input, shape index: {}]   ;;  %s118_s1 = inlined_call_operand.vmem [shape: f32[32,1], index: 1, kind: output, shape index: {}]  }
   0x1   :  { %v4_v0 = vld [vmem:[%s117_s0] sm:$0xf]  ;;  %s65_s0 = smov 127   ;;  %s68_s10 = smov 126  }
   0x2   :  { %5 = vst [vmem:[#allocation0] sm:$0xf] %v4_v0  ;;  %s69_s11 = smov 124   ;;  %s70_s12 = smov 122  }
   0x3   :  { %s71_s13 = smov 121  }
   0x9   :  { %v9_v1 = vld [vmem:[#allocation0] sm:$0xf]  }
   0xa   :  { %v21_v2 = vld [vmem:[#allocation0] sm:$0xf]   ;;  %10 = vrot.lane.b32.xlu0 %v9_v1, %s65_s0 }
   0xb   :  { %22 = vrot.lane.b32.xlu1 %v21_v2, %s66_s8  ;;  %v33_v3 = vld [vmem:[#allocation0] sm:$0xf]  }
   0xc   :  { %34 = vrot.lane.b32.xlu2 %v33_v3, %s67_s9  ;;  %v15_v4 = vld [vmem:[#allocation0] sm:$0xf]  }
   0xd   :  { %v27_v5 = vld [vmem:[#allocation0] sm:$0xf]  }
   0xe   :  { %v39_v6 = vld [vmem:[#allocation0] sm:$0xf]  }
   0xf   :  { %v45_v7 = vld [vmem:[#allocation0] sm:$0xf]  }
  0x10   :  { %v6_v8 = vld [vmem:[#allocation0] sm:$0xf]  }
  0x11   :  { %8 = vst.msk [vmem:[%s118_s1] ss:$8 sm:$0xf] %vm7_vm0, %v6_v8  }
  0x12   :  { %16 = vrot.lane.b32.xlu0 %v15_v4, %s68_s10 }
  0x13   :  { %28 = vrot.lane.b32.xlu1 %v27_v5, %s69_s11 }
  0x14   :  { %40 = vrot.lane.b32.xlu2 %v39_v6, %s70_s12 }
  0x1a   :  { %46 = vrot.lane.b32.xlu0 %v45_v7, %s71_s13 }
  0x66   :  { %v35_v9 = vpop.permute.xlu2 %34  }
  0x67   :  { %55 = vst.msk [vmem:[%s118_s1 + $0x5] ss:$8 sm:$0xf] %vm7_vm0, %v35_v9  }
  0x6e   :  { %v41_v10 = vpop.permute.xlu2 %40  }
  0x6f   :  { %56 = vst.msk [vmem:[%s118_s1 + $0x6] ss:$8 sm:$0xf] %vm7_vm0, %v41_v10  }
  0x7c   :  { %v11_v11 = vpop.permute.xlu0 %10  }
  0x7d   :  { %v23_v12 = vpop.permute.xlu1 %22   ;;  %51 = vst.msk [vmem:[%s118_s1 + $0x1] ss:$8 sm:$0xf] %vm7_vm0, %v11_v11  }
  0x7e   :  { %53 = vst.msk [vmem:[%s118_s1 + $0x3] ss:$8 sm:$0xf] %vm7_vm0, %v23_v12  }
  0x84   :  { %v17_v13 = vpop.permute.xlu0 %16  }
  0x85   :  { %v29_v14 = vpop.permute.xlu1 %28   ;;  %52 = vst.msk [vmem:[%s118_s1 + $0x2] ss:$8 sm:$0xf] %vm7_vm0, %v17_v13  }
  0x86   :  { %54 = vst.msk [vmem:[%s118_s1 + $0x4] ss:$8 sm:$0xf] %vm7_vm0, %v29_v14  }
  0x8c   :  { %v47_v15 = vpop.permute.xlu0 %46  }
  0x8d   :  { %57 = vst.msk [vmem:[%s118_s1 + $0x7] ss:$8 sm:$0xf] %vm7_vm0, %v47_v15  }

// kernel: lstm_unet_forward.24
= control target key start
LH: loop header
LB: loop body
LE: loop exit
PB: predicated region body
PF: predicated region fallthrough
CT: control target
= control target key end

     0   :  { %v247_v2 = vmov 0   ;;  %vm165_vm1 = vcmask 257024   ;;  %s326_s1 = inlined_call_operand.vmem [shape: bf16[128,32], index: 1, kind: input, shape index: {}]   ;;  %s327_s2 = inlined_call_operand.vmem [shape: f32[32,1], index: 2, kind: input, shape index: {}]   ;;  %s328_s0 = inlined_call_operand.vmem [shape: bf16[32,128], index: 0, kind: input, shape index: {}]   ;;  %s329_s3 = inlined_call_operand.vmem [shape: bf16[32,32], index: 3, kind: output, shape index: {}]  }
   0x1   :  { %v227_v0 = vld [vmem:[%s326_s1 + $0x38] sm:$0xff]  ;;  %v226_v1 = vld [vmem:[%s326_s1 + $0x30] sm:$0xff]  ;;  %238 = vset.pattern.permute.xlu1 %v247_v2  ;;  %237 = vset.pattern.permute.xlu0 %v247_v2  ;;  %v34_v4 = vld [vmem:[%s327_s2] sm:$0xff] }
   0x2   :  { %118 = vmatpush.bf16.msra.mxu0 %v227_v0  ;;  %228 = vmatpush.bf16.msra.mxu1 %v227_v0  ;;  %v36_v3 = vld [vmem:[%s327_s2 + $0x10] sm:$0xff]  ;;  %v225_v5 = vld [vmem:[%s326_s1 + $0x28] sm:$0xff]  ;;  %v37_v6 = vld [vmem:[%s327_s2 + $0x18] sm:$0xff] }
   0x3   :  { %50 = vperm.xlu1 %238, %v36_v3   ;;  %40 = vperm.xlu0 %237, %v34_v4   ;;  %v35_v7 = vld [vmem:[%s327_s2 + $0x8] sm:$0xff]  ;;  %v224_v8 = vld [vmem:[%s326_s1 + $0x20] sm:$0xff]  ;;  %v223_v9 = vld [vmem:[%s326_s1 + $0x18] sm:$0xff] }
   0x4   :  { %v222_v10 = vld [vmem:[%s326_s1 + $0x10] sm:$0xff]  ;;  %v221_v11 = vld [vmem:[%s326_s1 + $0x8] sm:$0xff]  ;;  %v220_v12 = vld [vmem:[%s326_s1] sm:$0xff] }
   0x5   :  { %v218_v13 = vld [vmem:[%s328_s0] sm:$0xff]  ;;  %v219_v14 = vld [vmem:[%s328_s0 + $0x8] sm:$0xff] }
   0x6   :  { %119 = vmatpush.bf16.msra.mxu0 %v226_v1  ;;  %229 = vmatpush.bf16.msra.mxu1 %v226_v1 }
   0xa   :  { %120 = vmatpush.bf16.msra.mxu0 %v225_v5  ;;  %230 = vmatpush.bf16.msra.mxu1 %v225_v5 }
   0xb   :  { %55 = vperm.xlu1 %238, %v37_v6   ;;  %45 = vperm.xlu0 %237, %v35_v7  }
   0xe   :  { %121 = vmatpush.bf16.msra.mxu0 %v224_v8  ;;  %231 = vmatpush.bf16.msra.mxu1 %v224_v8 }
  0x12   :  { %122 = vmatpush.bf16.msra.mxu0 %v223_v9  ;;  %232 = vmatpush.bf16.msra.mxu1 %v223_v9 }
  0x16   :  { %123 = vmatpush.bf16.msra.mxu0 %v222_v10  ;;  %233 = vmatpush.bf16.msra.mxu1 %v222_v10 }
  0x1a   :  { %124 = vmatpush.bf16.msra.mxu0 %v221_v11  ;;  %234 = vmatpush.bf16.msra.mxu1 %v221_v11 }
  0x1e   :  { %125 = vmatpush.bf16.msra.mxu0 %v220_v12  ;;  %235 = vmatpush.bf16.msra.mxu1 %v220_v12 }
  0x21   :  { %126 = vmatmul.bf16.vlgmr.msra.gmra.mxu0 %v218_v13  ;;  %131 = vmatmul.bf16.vlgmr.msra.gmra.mxu1 %v219_v14 }
  0x75   :  { %v51_v15 = vpop.permute.xlu1 %50  ;;  %v41_v16 = vpop.permute.xlu0 %40 }
  0x7d   :  { %v56_v25 = vpop.permute.xlu1 %55  ;;  %v46_v26 = vpop.permute.xlu0 %45 }
  0x9e   :  { %v127_v17 = vpop.f32.mrf.mxu0  ;;  %v132_v18 = vpop.f32.mrf.mxu1 }
  0x9f   :  { %v128_v19 = vadd.f32 %v127_v17, %v41_v16  ;;  %v133_v20 = vadd.f32 %v132_v18, %v51_v15 }
  0xa1   :  { %v141_v21 = vmin.f32 %v128_v19, 0.0  ;;  %v143_v22 = vmin.f32 %v133_v20, 0.0  ;;  %vm137_vm0 = vcmp.gt.f32.partialorder %v128_v19, 0.0  ;;  %vm139_vm2 = vcmp.gt.f32.partialorder %v133_v20, 0.0 }
  0xa3   :  { %v145_v23 = vmul.f32 1.442695, %v141_v21  ;;  %v149_v24 = vmul.f32 1.442695, %v143_v22 }
  0xa5   :  { %239 = vpow2.f32 %v145_v23 }
  0xa6   :  { %241 = vpow2.f32 %v149_v24  ;;  %v129_v27 = vpop.f32.mrf.mxu0  ;;  %v134_v28 = vpop.f32.mrf.mxu1 }
  0xa7   :  { %v130_v29 = vadd.f32 %v129_v27, %v46_v26  ;;  %v135_v30 = vadd.f32 %v134_v28, %v56_v25 }
  0xa9   :  { %v142_v31 = vmin.f32 %v130_v29, 0.0  ;;  %v144_v32 = vmin.f32 %v135_v30, 0.0  ;;  %vm138_vm3 = vcmp.gt.f32.partialorder %v130_v29, 0.0  ;;  %vm140_vm4 = vcmp.gt.f32.partialorder %v135_v30, 0.0 }
  0xab   :  { %v240_v33 = vpop.eup %239  ;;  %v147_v34 = vmul.f32 1.442695, %v142_v31  ;;  %v151_v35 = vmul.f32 1.442695, %v144_v32 }
  0xac   :  { %v242_v36 = vpop.eup %241  ;;  %v214_v37 = vadd.f32 -1.0, %v240_v33 }
  0xad   :  { %v216_v38 = vadd.f32 -1.0, %v242_v36  ;;  %243 = vpow2.f32 %v147_v34 }
  0xae   :  { %v157_v39 = vsel %vm137_vm0, %v128_v19, %v214_v37  ;;  %245 = vpow2.f32 %v151_v35 }
  0xaf   :  { %v161_v40 = vpack.c.bf16 %v157_v39, %v157_v39  ;;  %v159_v41 = vsel %vm139_vm2, %v133_v20, %v216_v38 }
  0xb0   :  { %v163_v42 = vpack.c.bf16 %v159_v41, %v159_v41 }
  0xb1   :  { %166 = vst.msk [vmem:[%s329_s3] sm:$0xf] %vm165_vm1, %v161_v40 }
  0xb2   :  { %168 = vst.msk [vmem:[%s329_s3 + $0x8] sm:$0xf] %vm165_vm1, %v163_v42 }
  0xb3   :  { %v244_v43 = vpop.eup %243 }
  0xb4   :  { %v246_v44 = vpop.eup %245  ;;  %v215_v45 = vadd.f32 -1.0, %v244_v43 }
  0xb5   :  { %v217_v46 = vadd.f32 -1.0, %v246_v44 }
  0xb6   :  { %v158_v47 = vsel %vm138_vm3, %v130_v29, %v215_v45 }
  0xb7   :  { %v162_v48 = vpack.c.bf16 %v158_v47, %v158_v47  ;;  %v160_v49 = vsel %vm140_vm4, %v135_v30, %v217_v46 }
  0xb8   :  { %v164_v50 = vpack.c.bf16 %v160_v49, %v160_v49 }
  0xb9   :  { %167 = vst.msk [vmem:[%s329_s3 + $0x4] sm:$0xf] %vm165_vm1, %v162_v48 }
  0xba   :  { %169 = vst.msk [vmem:[%s329_s3 + $0xc] sm:$0xf] %vm165_vm1, %v164_v50 }

// kernel: lstm_unet_forward.22
= control target key start
LH: loop header
LB: loop body
LE: loop exit
PB: predicated region body
PF: predicated region fallthrough
CT: control target
= control target key end

     0   :  { %vm105_vm0 = vcmask 130048   ;;  %v418_v9 = vmov 0   ;;  %s529_s2 = inlined_call_operand.vmem [shape: bf16[144,128], index: 2, kind: input, shape index: {}]   ;;  %s530_s0 = inlined_call_operand.vmem [shape: bf16[4,8,144], index: 0, kind: input, shape index: {}]   ;;  %s531_s1 = inlined_call_operand.vmem [shape: f32[4,8,1], index: 1, kind: input, shape index: {}]   ;;  %s532_s3 = inlined_call_operand.vmem [shape: f32[8,128], index: 3, kind: input, shape index: {}]   ;;  %s533_s5 = inlined_call_operand.vmem [shape: f32[8,128], index: 5, kind: output, shape index: {1}]   ;;  %s534_s4 = inlined_call_operand.vmem [shape: f32[8,128], index: 4, kind: output, shape index: {0}]  }
   0x1   :  { %v397_v0 = vld [vmem:[%s529_s2 + $0x38] sm:$0xff]  ;;  %v455_v1 = vld [vmem:[%s529_s2 + $0x40] sm:$0xff]  ;;  %v396_v2 = vld [vmem:[%s529_s2 + $0x30] sm:$0xff]  ;;  %400 = vset.pattern.permute.xlu0 %v418_v9  ;;  %401 = vset.pattern.permute.xlu1 %v418_v9 }
   0x2   :  { %109 = vmatpush.bf16.msra.mxu0 %v397_v0  ;;  %172 = vmatpush.bf16.msra.mxu2 %v397_v0  ;;  %v463_v3 = vld [vmem:[%s530_s0 + $0x10] sm:$0xff]  ;;  %v38_v5 = vld [vmem:[%s530_s0] sm:$0xff]  ;;  %v395_v10 = vld [vmem:[%s529_s2 + $0x28] sm:$0xff] }
   0x3   :  { %255 = vmatpush.bf16.msra.mxu3 %v455_v1  ;;  %129 = vmatpush.bf16.msra.mxu1 %v455_v1  ;;  %v228_v4 = vunpack.c.h.b16 %v463_v3  ;;  %v47_v6 = vunpack.c.h.b16 %v38_v5  ;;  %v39_v7 = vld [vmem:[%s531_s1] sm:$0xff]  ;;  %v387_v12 = vld [vmem:[%s531_s1 + $0x18] sm:$0xff]  ;;  %v380_v15 = vld [vmem:[%s531_s1 + $0x8] sm:$0xff]  ;;  %v46_v21 = vunpack.c.l.b16 %v38_v5  ;;  %v227_v25 = vunpack.c.l.b16 %v463_v3 }
   0x4   :  { %42 = vperm.xlu0 %400, %v39_v7   ;;  %268 = vperm.xlu1 %401, %v387_v12   ;;  %v394_v13 = vld [vmem:[%s529_s2 + $0x20] sm:$0xff]  ;;  %v393_v14 = vld [vmem:[%s529_s2 + $0x18] sm:$0xff]  ;;  %v384_v16 = vld [vmem:[%s531_s1 + $0x10] sm:$0xff] }
   0x5   :  { %v230_v8 = vpack.c.b16 %v228_v4, %v228_v4  ;;  %v49_v11 = vpack.c.b16 %v47_v6, %v47_v6  ;;  %v392_v17 = vld [vmem:[%s529_s2 + $0x10] sm:$0xff]  ;;  %v391_v18 = vld [vmem:[%s529_s2 + $0x8] sm:$0xff]  ;;  %v386_v20 = vld [vmem:[%s530_s0 + $0x18] sm:$0xff]  ;;  %v48_v26 = vpack.c.b16 %v46_v21, %v46_v21  ;;  %v229_v29 = vpack.c.b16 %v227_v25, %v227_v25 }
   0x6   :  { %110 = vmatpush.bf16.msra.mxu0 %v396_v2  ;;  %173 = vmatpush.bf16.msra.mxu2 %v396_v2  ;;  %v379_v19 = vld [vmem:[%s530_s0 + $0x8] sm:$0xff]  ;;  %v390_v23 = vld [vmem:[%s529_s2] sm:$0xff]  ;;  %v272_v24 = vunpack.c.l.b16 %v386_v20  ;;  %v273_v31 = vunpack.c.h.b16 %v386_v20 }
   0x7   :  { %280 = vmatpush.bf16.msrb.mxu3 %v397_v0  ;;  %235 = vmatpush.bf16.msrb.mxu1 %v397_v0  ;;  %v164_v22 = vunpack.c.l.b16 %v379_v19  ;;  %v165_v30 = vunpack.c.h.b16 %v379_v19 }
   0x8   :  { %385 = vmatmul.msk.bf16.vlgmr.msra.gmra.mxu3 %vm105_vm0, %v230_v8  ;;  %377 = vmatmul.msk.bf16.vlgmr.msra.gmra.mxu1 %vm105_vm0, %v49_v11  ;;  %v274_v28 = vpack.c.b16 %v272_v24, %v272_v24  ;;  %v275_v33 = vpack.c.b16 %v273_v31, %v273_v31 }
   0x9   :  { %v166_v27 = vpack.c.b16 %v164_v22, %v164_v22  ;;  %v167_v32 = vpack.c.b16 %v165_v30, %v165_v30 }
   0xa   :  { %111 = vmatpush.bf16.msra.mxu0 %v395_v10  ;;  %174 = vmatpush.bf16.msra.mxu2 %v395_v10 }
   0xb   :  { %281 = vmatpush.bf16.msrb.mxu3 %v396_v2  ;;  %236 = vmatpush.bf16.msrb.mxu1 %v396_v2 }
   0xc   :  { %160 = vperm.xlu0 %400, %v380_v15   ;;  %223 = vperm.xlu1 %401, %v384_v16  }
   0xe   :  { %112 = vmatpush.bf16.msra.mxu0 %v394_v13  ;;  %175 = vmatpush.bf16.msra.mxu2 %v394_v13 }
   0xf   :  { %282 = vmatpush.bf16.msrb.mxu3 %v395_v10  ;;  %237 = vmatpush.bf16.msrb.mxu1 %v395_v10 }
  0x12   :  { %113 = vmatpush.bf16.msra.mxu0 %v393_v14  ;;  %176 = vmatpush.bf16.msra.mxu2 %v393_v14 }
  0x13   :  { %283 = vmatpush.bf16.msrb.mxu3 %v394_v13  ;;  %238 = vmatpush.bf16.msrb.mxu1 %v394_v13 }
  0x16   :  { %114 = vmatpush.bf16.msra.mxu0 %v392_v17  ;;  %177 = vmatpush.bf16.msra.mxu2 %v392_v17 }
  0x17   :  { %284 = vmatpush.bf16.msrb.mxu3 %v393_v14  ;;  %239 = vmatpush.bf16.msrb.mxu1 %v393_v14 }
  0x1a   :  { %115 = vmatpush.bf16.msra.mxu0 %v391_v18  ;;  %178 = vmatpush.bf16.msra.mxu2 %v391_v18 }
  0x1b   :  { %285 = vmatpush.bf16.msrb.mxu3 %v392_v17  ;;  %240 = vmatpush.bf16.msrb.mxu1 %v392_v17 }
  0x1e   :  { %116 = vmatpush.bf16.msra.mxu0 %v390_v23  ;;  %179 = vmatpush.bf16.msra.mxu2 %v390_v23 }
  0x1f   :  { %286 = vmatpush.bf16.msrb.mxu3 %v391_v18  ;;  %241 = vmatpush.bf16.msrb.mxu1 %v391_v18 }
  0x21   :  { %117 = vmatmul.bf16.vlgmr.msra.gmra.mxu0 %v48_v26  ;;  %180 = vmatmul.bf16.vlgmr.msra.gmra.mxu2 %v166_v27 }
  0x22   :  { %192 = vmatpush.bf16.msrb.mxu2 %v455_v1  ;;  %300 = vmatpush.bf16.msrb.mxu0 %v455_v1 }
  0x23   :  { %287 = vmatpush.bf16.msrb.mxu3 %v390_v23  ;;  %242 = vmatpush.bf16.msrb.mxu1 %v390_v23 }
  0x26   :  { %288 = vmatmul.bf16.vlgmr.msrb.gmra.mxu3 %v274_v28  ;;  %243 = vmatmul.bf16.vlgmr.msrb.gmra.mxu1 %v229_v29  ;;  %v325_v29 = vld [vmem:[%s532_s3] sm:$0xff] }
  0x31   :  { %381 = vmatmul.msk.bf16.vlgmr.msrb.gmra.mxu2 %vm105_vm0, %v167_v32  ;;  %388 = vmatmul.msk.bf16.vlgmr.msrb.gmra.mxu0 %vm105_vm0, %v275_v33 }
  0x76   :  { %v43_v38 = vpop.permute.xlu0 %42  ;;  %v269_v48 = vpop.permute.xlu1 %268 }
  0x7e   :  { %v161_v56 = vpop.permute.xlu0 %160  ;;  %v224_v7 = vpop.permute.xlu1 %223 }
  0x85   :  { %v131_v34 = vpop.f32.mrf.mxu1 }
  0x8b   :  { %v257_v35 = vpop.f32.mrf.mxu3 }
  0x8d   :  { %v133_v36 = vpop.f32.mrf.mxu1 }
  0x93   :  { %v259_v37 = vpop.f32.mrf.mxu3 }
  0x9e   :  { %v118_v39 = vpop.f32.mrf.mxu0 }
  0x9f   :  { %v119_v40 = vadd.f32 %v118_v39, %v43_v38 }
  0xa1   :  { %v132_v42 = vadd.f32 %v131_v34, %v119_v40 }
  0xa3   :  { %v244_v41 = vpop.f32.mrf.mxu1  ;;  %v378_v43 = vmul.f32 -1.442695, %v132_v42 }
  0xa4   :  { %v181_v44 = vpop.f32.mrf.mxu2  ;;  %v245_v8 = vadd.f32 %v244_v41, %v224_v7 }
  0xa5   :  { %402 = vpow2.f32 %v378_v43  ;;  %v182_v58 = vadd.f32 %v181_v44, %v161_v56 }
  0xa6   :  { %v120_v45 = vpop.f32.mrf.mxu0  ;;  %v258_v14 = vadd.f32 %v257_v35, %v245_v8 }
  0xa9   :  { %v289_v46 = vpop.f32.mrf.mxu3 }
  0xaa   :  { %v290_v49 = vadd.f32 %v289_v46, %v269_v48 }
  0xab   :  { %v246_v47 = vpop.f32.mrf.mxu1  ;;  %v403_v50 = vpop.eup %402 }
  0xac   :  { %v183_v51 = vpop.f32.mrf.mxu2  ;;  %v138_v54 = vadd.f32 1.0, %v403_v50 }
  0xae   :  { %v302_v52 = vpop.f32.mrf.mxu0  ;;  %404 = vrcp.f32 %v138_v54  ;;  %vm144_vm1 = vweird.f32 %v138_v54  ;;  %v148_v12 = vand.u32 2147483647, %v138_v54  ;;  %v150_v13 = vand.u32 2147483648, %v138_v54 }
  0xaf   :  { %v303_v55 = vadd.f32 %v302_v52, %v290_v49 }
  0xb0   :  { %vm149_vm4 = vcmp.eq.f32.partialorder %v148_v12, 8.507059e+37  ;;  %v151_v20 = vor.u32 1.1754944e-38, %v150_v13 }
  0xb1   :  { %v291_v53 = vpop.f32.mrf.mxu3  ;;  %v389_v57 = vmul.f32 -1.442695, %v303_v55 }
  0xb3   :  { %406 = vpow2.f32 %v389_v57 }
  0xb4   :  { %v194_v59 = vpop.f32.mrf.mxu2  ;;  %v405_v63 = vpop.eup %404 }
  0xb5   :  { %v195_v60 = vadd.f32 %v194_v59, %v182_v58  ;;  %v140_v2 = vmul.f32 %v405_v63, %v138_v54  ;;  %vm145_vm2 = vweird.f32 %v405_v63 }
  0xb6   :  { %v304_v61 = vpop.f32.mrf.mxu0  ;;  %vm514_vm3 = vmor %vm144_vm1, %vm145_vm2 }
  0xb7   :  { %v382_v62 = vmul.f32 -1.442695, %v195_v60  ;;  %v141_v6 = vsub.f32 1.0, %v140_v2 }
  0xb9   :  { %408 = vpow2.f32 %v382_v62  ;;  %v407_v0 = vpop.eup %406  ;;  %v142_v9 = vmul.f32 %v405_v63, %v141_v6 }
  0xba   :  { %v309_v3 = vadd.f32 1.0, %v407_v0 }
  0xbb   :  { %v143_v15 = vadd.f32 %v405_v63, %v142_v9 }
  0xbc   :  { %v196_v1 = vpop.f32.mrf.mxu2  ;;  %410 = vrcp.f32 %v309_v3  ;;  %vm315_vm9 = vweird.f32 %v309_v3  ;;  %v321_v36 = vand.u32 2147483648, %v309_v3  ;;  %v319_v39 = vand.u32 2147483647, %v309_v3 }
  0xbd   :  { %v147_v22 = vsel %vm514_vm3, %v405_v63, %v143_v15 }
  0xbe   :  { %v152_v27 = vsel %vm149_vm4, %v151_v20, %v147_v22  ;;  %v322_v40 = vor.u32 1.1754944e-38, %v321_v36  ;;  %vm320_vm12 = vcmp.eq.f32.partialorder %v319_v39, 8.507059e+37 }
  0xbf   :  { %v409_v4 = vpop.eup %408 }
  0xc0   :  { %v201_v5 = vadd.f32 1.0, %v409_v4 }
  0xc2   :  { %412 = vrcp.f32 %v201_v5  ;;  %v411_v10 = vpop.eup %410  ;;  %v213_v21 = vand.u32 2147483648, %v201_v5  ;;  %v211_v24 = vand.u32 2147483647, %v201_v5  ;;  %vm207_vm6 = vweird.f32 %v201_v5 }
  0xc3   :  { %v311_v18 = vmul.f32 %v411_v10, %v309_v3  ;;  %414 = vtanh.f32 %v258_v14  ;;  %vm316_vm10 = vweird.f32 %v411_v10 }
  0xc4   :  { %v214_v28 = vor.u32 1.1754944e-38, %v213_v21  ;;  %vm212_vm8 = vcmp.eq.f32.partialorder %v211_v24, 8.507059e+37  ;;  %vm317_vm11 = vmor %vm315_vm9, %vm316_vm10 }
  0xc5   :  { %v312_v25 = vsub.f32 1.0, %v311_v18 }
  0xc7   :  { %v313_v32 = vmul.f32 %v411_v10, %v312_v25 }
  0xc8   :  { %v413_v11 = vpop.eup %412 }
  0xc9   :  { %v203_v16 = vmul.f32 %v413_v11, %v201_v5  ;;  %vm208_vm5 = vweird.f32 %v413_v11  ;;  %v415_v31 = vpop.eup %414  ;;  %v314_v38 = vadd.f32 %v411_v10, %v313_v32 }
  0xca   :  { %vm209_vm7 = vmor %vm207_vm6, %vm208_vm5  ;;  %v327_v34 = vmul.f32 %v415_v31, %v152_v27 }
  0xcb   :  { %v204_v19 = vsub.f32 1.0, %v203_v16  ;;  %v318_v41 = vsel %vm317_vm11, %v411_v10, %v314_v38 }
  0xcc   :  { %v323_v43 = vsel %vm320_vm12, %v322_v40, %v318_v41 }
  0xcd   :  { %v205_v23 = vmul.f32 %v413_v11, %v204_v19 }
  0xcf   :  { %v206_v26 = vadd.f32 %v413_v11, %v205_v23 }
  0xd1   :  { %v210_v30 = vsel %vm209_vm7, %v413_v11, %v206_v26 }
  0xd2   :  { %v215_v33 = vsel %vm212_vm8, %v214_v28, %v210_v30 }
  0xd3   :  { %v326_v35 = vmul.f32 %v325_v29, %v215_v33 }
  0xd5   :  { %v328_v37 = vadd.f32 %v327_v34, %v326_v35 }
  0xd7   :  { %329 = vst [vmem:[%s533_s5] sm:$0xff] %v328_v37  ;;  %416 = vtanh.f32 %v328_v37 }
  0xdd   :  { %v417_v42 = vpop.eup %416 }
  0xde   :  { %v331_v44 = vmul.f32 %v417_v42, %v323_v43 }
  0xe0   :  { %332 = vst [vmem:[%s534_s4] sm:$0xff] %v331_v44 }

// kernel: lstm_unet_forward.25
= control target key start
LH: loop header
LB: loop body
LE: loop exit
PB: predicated region body
PF: predicated region fallthrough
CT: control target
= control target key end

     0   :  { %v231_v4 = vmov 0   ;;  %vm110_vm0 = vcmask 130048   ;;  %s300_s1 = inlined_call_operand.vmem [shape: bf16[144,128], index: 1, kind: input, shape index: {}]   ;;  %s301_s0 = inlined_call_operand.vmem [shape: bf16[16,144], index: 0, kind: input, shape index: {}]   ;;  %s302_s2 = inlined_call_operand.vmem [shape: f32[16,1], index: 2, kind: input, shape index: {}]   ;;  %s303_s3 = inlined_call_operand.vmem [shape: bf16[16,128], index: 3, kind: output, shape index: {}]  }
   0x1   :  { %v218_v0 = vld [vmem:[%s300_s1 + $0x38] sm:$0xff]  ;;  %v217_v1 = vld [vmem:[%s300_s1 + $0x30] sm:$0xff]  ;;  %v219_v2 = vld [vmem:[%s300_s1 + $0x40] sm:$0xff]  ;;  %226 = vset.pattern.permute.xlu0 %v231_v4 }
   0x2   :  { %114 = vmatpush.bf16.msra.mxu0 %v218_v0  ;;  %v209_v3 = vld [vmem:[%s301_s0 + $0x4] sm:$0xf]  ;;  %v166_v5 = vld [vmem:[%s301_s0 + $0x8] sm:$0xf0]  ;;  %135 = vmatpush.bf16.msra.mxu1 %v219_v2  ;;  %v214_v11 = vld [vmem:[%s300_s1 + $0x18] sm:$0xff] }
   0x3   :  { %v169_v6 = vor.u32 %v209_v3, %v166_v5  ;;  %v35_v7 = vld [vmem:[%s302_s2] sm:$0xff]  ;;  %v216_v8 = vld [vmem:[%s300_s1 + $0x28] sm:$0xff]  ;;  %v213_v12 = vld [vmem:[%s300_s1 + $0x10] sm:$0xff] }
   0x4   :  { %39 = vperm.xlu0 %226, %v35_v7   ;;  %v215_v9 = vld [vmem:[%s300_s1 + $0x20] sm:$0xff]  ;;  %v36_v10 = vld [vmem:[%s302_s2 + $0x8] sm:$0xff] }
   0x5   :  { %206 = vmatmul.msk.bf16.vlgmr.msra.gmra.mxu1 %vm110_vm0, %v169_v6  ;;  %v212_v13 = vld [vmem:[%s300_s1 + $0x8] sm:$0xff]  ;;  %v211_v14 = vld [vmem:[%s300_s1] sm:$0xff] }
   0x6   :  { %115 = vmatpush.bf16.msra.mxu0 %v217_v1  ;;  %v164_v15 = vld [vmem:[%s301_s0] sm:$0xf]  ;;  %v210_v16 = vld [vmem:[%s301_s0 + $0x4] sm:$0xf0] }
   0x7   :  { %v165_v17 = vor.u32 %v210_v16, %v164_v15 }
   0xa   :  { %116 = vmatpush.bf16.msra.mxu0 %v216_v8 }
   0xc   :  { %44 = vperm.xlu0 %226, %v36_v10  }
   0xe   :  { %117 = vmatpush.bf16.msra.mxu0 %v215_v9 }
  0x12   :  { %118 = vmatpush.bf16.msra.mxu0 %v214_v11 }
  0x16   :  { %119 = vmatpush.bf16.msra.mxu0 %v213_v12 }
  0x1a   :  { %120 = vmatpush.bf16.msra.mxu0 %v212_v13 }
  0x1e   :  { %121 = vmatpush.bf16.msra.mxu0 %v211_v14 }
  0x21   :  { %122 = vmatmul.bf16.vlgmr.msra.gmra.mxu0 %v165_v17 }
  0x76   :  { %v40_v18 = vpop.permute.xlu0 %39 }
  0x7e   :  { %v45_v24 = vpop.permute.xlu0 %44 }
  0x82   :  { %v137_v19 = vpop.f32.mrf.mxu1 }
  0x8a   :  { %v139_v28 = vpop.f32.mrf.mxu1 }
  0x9e   :  { %v123_v20 = vpop.f32.mrf.mxu0 }
  0x9f   :  { %v124_v21 = vadd.f32 %v123_v20, %v40_v18 }
  0xa1   :  { %v138_v22 = vadd.f32 %v137_v19, %v124_v21 }
  0xa3   :  { %v144_v23 = vmin.f32 %v138_v22, 0.0  ;;  %vm142_vm1 = vcmp.gt.f32.partialorder %v138_v22, 0.0 }
  0xa5   :  { %v146_v26 = vmul.f32 1.442695, %v144_v23 }
  0xa6   :  { %v125_v25 = vpop.f32.mrf.mxu0 }
  0xa7   :  { %v126_v27 = vadd.f32 %v125_v25, %v45_v24  ;;  %227 = vpow2.f32 %v146_v26 }
  0xa9   :  { %v140_v29 = vadd.f32 %v139_v28, %v126_v27 }
  0xab   :  { %v145_v30 = vmin.f32 %v140_v29, 0.0  ;;  %vm143_vm2 = vcmp.gt.f32.partialorder %v140_v29, 0.0 }
  0xad   :  { %v148_v31 = vmul.f32 1.442695, %v145_v30  ;;  %v228_v32 = vpop.eup %227 }
  0xae   :  { %v207_v33 = vadd.f32 -1.0, %v228_v32 }
  0xaf   :  { %229 = vpow2.f32 %v148_v31 }
  0xb0   :  { %v152_v36 = vsel %vm142_vm1, %v138_v22, %v207_v33 }
  0xb5   :  { %v230_v34 = vpop.eup %229 }
  0xb6   :  { %v208_v35 = vadd.f32 -1.0, %v230_v34 }
  0xb8   :  { %v153_v37 = vsel %vm143_vm2, %v140_v29, %v208_v35 }
  0xb9   :  { %v223_v38 = vpack.c.bf16 %v153_v37, %v152_v36 }
  0xbb   :  { %224 = vst [vmem:[%s303_s3] sm:$0xff] %v223_v38  }

// kernel: lstm_unet_forward.26
= control target key start
LH: loop header
LB: loop body
LE: loop exit
PB: predicated region body
PF: predicated region fallthrough
CT: control target
= control target key end

     0   :  { %v360_v5 = vmov 0   ;;  %vm108_vm0 = vcmask 130048   ;;  %s467_s4 = inlined_call_operand.vmem [shape: bf16[144,128], index: 4, kind: input, shape index: {}]   ;;  %s468_s1 = inlined_call_operand.vmem [shape: bf16[144,128], index: 1, kind: input, shape index: {}]   ;;  %s469_s0 = inlined_call_operand.vmem [shape: bf16[4,144], index: 0, kind: input, shape index: {}]   ;;  %s470_s5 = inlined_call_operand.vmem [shape: f32[4,1], index: 5, kind: input, shape index: {}]   ;;  %s471_s3 = inlined_call_operand.vmem [shape: bf16[4,144], index: 3, kind: input, shape index: {}]   ;;  %s472_s2 = inlined_call_operand.vmem [shape: f32[4,1], index: 2, kind: input, shape index: {}]   ;;  %s473_s6 = inlined_call_operand.vmem [shape: bf16[4,128], index: 6, kind: output, shape index: {}]  }
   0x1   :  { %v354_v0 = vld [vmem:[%s467_s4 + $0x38] sm:$0xff]  ;;  %v353_v2 = vld [vmem:[%s467_s4 + $0x30] sm:$0xff]  ;;  %v355_v4 = vld [vmem:[%s467_s4 + $0x40] sm:$0xff]  ;;  %357 = vset.pattern.permute.xlu0 %v360_v5 }
   0x2   :  { %v345_v1 = vld [vmem:[%s468_s1 + $0x38] sm:$0xff]  ;;  %223 = vmatpush.bf16.msra.mxu2 %v354_v0  ;;  %v344_v3 = vld [vmem:[%s468_s1 + $0x30] sm:$0xff]  ;;  %v24_v6 = vld [vmem:[%s469_s0] sm:$0xf]  ;;  %243 = vmatpush.bf16.msra.mxu3 %v355_v4 }
   0x3   :  { %111 = vmatpush.bf16.msra.mxu0 %v345_v1  ;;  %v352_v7 = vld [vmem:[%s467_s4 + $0x28] sm:$0xff]  ;;  %50 = vst [vmem:[#allocation1] ss:$4 sm:$0xff] %v24_v6  ;;  %v346_v9 = vld [vmem:[%s468_s1 + $0x40] sm:$0xff]  ;;  %v350_v17 = vld [vmem:[%s467_s4 + $0x18] sm:$0xff] }
   0x4   :  { %v343_v8 = vld [vmem:[%s468_s1 + $0x28] sm:$0xff]  ;;  %v156_v10 = vld [vmem:[%s470_s5] sm:$0xf]  ;;  %131 = vmatpush.bf16.msra.mxu1 %v346_v9  ;;  %v341_v18 = vld [vmem:[%s468_s1 + $0x18] sm:$0xff] }
   0x5   :  { %159 = vperm.xlu0 %357, %v156_v10   ;;  %v351_v11 = vld [vmem:[%s467_s4 + $0x20] sm:$0xff]  ;;  %v349_v19 = vld [vmem:[%s467_s4 + $0x10] sm:$0xff]  ;;  %v348_v22 = vld [vmem:[%s467_s4 + $0x8] sm:$0xff] }
   0x6   :  { %224 = vmatpush.bf16.msra.mxu2 %v353_v2  ;;  %v342_v12 = vld [vmem:[%s468_s1 + $0x20] sm:$0xff]  ;;  %v340_v20 = vld [vmem:[%s468_s1 + $0x10] sm:$0xff]  ;;  %v339_v23 = vld [vmem:[%s468_s1 + $0x8] sm:$0xff] }
   0x7   :  { %112 = vmatpush.bf16.msra.mxu0 %v344_v3  ;;  %v137_v13 = vld [vmem:[%s471_s3] sm:$0xf] }
   0x8   :  { %v43_v14 = vld [vmem:[%s472_s2] sm:$0xf] }
   0x9   :  { %v347_v24 = vld [vmem:[%s467_s4] sm:$0xff] }
   0xa   :  { %225 = vmatpush.bf16.msra.mxu2 %v352_v7  ;;  %v51_v15 = vld.sshfl [vmem:[#allocation1] sm:$0xff pattern:$0x73625140]  ;;  %v52_v16 = vld.sshfl [vmem:[#allocation1 + $0x8] sm:$0xff pattern:$0x73625140] }
   0xb   :  { %113 = vmatpush.bf16.msra.mxu0 %v343_v8  ;;  %163 = vst [vmem:[#allocation1] ss:$4 sm:$0xff] %v137_v13  ;;  %299 = vmatmul.msk.bf16.vlgmr.msra.gmra.mxu1 %vm108_vm0, %v52_v16  ;;  %v338_v25 = vld [vmem:[%s468_s1] sm:$0xff] }
   0xd   :  { %46 = vperm.xlu0 %357, %v43_v14  }
   0xe   :  { %226 = vmatpush.bf16.msra.mxu2 %v351_v11 }
   0xf   :  { %114 = vmatpush.bf16.msra.mxu0 %v342_v12 }
  0x12   :  { %227 = vmatpush.bf16.msra.mxu2 %v350_v17  ;;  %v165_v21 = vld.sshfl [vmem:[#allocation1 + $0x8] sm:$0xff pattern:$0x73625140]  ;;  %v164_v26 = vld.sshfl [vmem:[#allocation1] sm:$0xff pattern:$0x73625140] }
  0x13   :  { %115 = vmatpush.bf16.msra.mxu0 %v341_v18  ;;  %336 = vmatmul.msk.bf16.vlgmr.msra.gmra.mxu3 %vm108_vm0, %v165_v21 }
  0x16   :  { %228 = vmatpush.bf16.msra.mxu2 %v349_v19 }
  0x17   :  { %116 = vmatpush.bf16.msra.mxu0 %v340_v20 }
  0x1a   :  { %229 = vmatpush.bf16.msra.mxu2 %v348_v22 }
  0x1b   :  { %117 = vmatpush.bf16.msra.mxu0 %v339_v23 }
  0x1e   :  { %230 = vmatpush.bf16.msra.mxu2 %v347_v24 }
  0x1f   :  { %118 = vmatpush.bf16.msra.mxu0 %v338_v25 }
  0x21   :  { %231 = vmatmul.bf16.vlgmr.msra.gmra.mxu2 %v164_v26 }
  0x22   :  { %119 = vmatmul.bf16.vlgmr.msra.gmra.mxu0 %v51_v15 }
  0x77   :  { %v160_v32 = vpop.permute.xlu0 %159 }
  0x7f   :  { %v47_v40 = vpop.permute.xlu0 %46 }
  0x88   :  { %v133_v27 = vpop.f32.mrf.mxu1 }
  0x90   :  { %v135_v28 = vpop.f32.mrf.mxu1 }
  0x96   :  { %v245_v29 = vpop.f32.mrf.mxu3 }
  0x9e   :  { %v247_v31 = vpop.f32.mrf.mxu3 }
  0x9f   :  { %v120_v30 = vpop.f32.mrf.mxu0 }
  0xa0   :  { %v121_v41 = vadd.f32 %v120_v30, %v47_v40 }
  0xa2   :  { %v134_v44 = vadd.f32 %v133_v27, %v121_v41 }
  0xa4   :  { %v232_v33 = vpop.f32.mrf.mxu2 }
  0xa5   :  { %v233_v34 = vadd.f32 %v232_v33, %v160_v32 }
  0xa7   :  { %v122_v35 = vpop.f32.mrf.mxu0  ;;  %v246_v36 = vadd.f32 %v245_v29, %v233_v34 }
  0xa9   :  { %v250_v37 = vmin.f32 %v246_v36, 0.0  ;;  %vm249_vm1 = vcmp.gt.f32.partialorder %v246_v36, 0.0 }
  0xab   :  { %v251_v38 = vmul.f32 1.442695, %v250_v37 }
  0xac   :  { %v234_v39 = vpop.f32.mrf.mxu2 }
  0xad   :  { %358 = vpow2.f32 %v251_v38 }
  0xb3   :  { %v359_v42 = vpop.eup %358 }
  0xb4   :  { %v337_v43 = vadd.f32 -1.0, %v359_v42 }
  0xb6   :  { %v254_v45 = vsel %vm249_vm1, %v246_v36, %v337_v43 }
  0xb7   :  { %v255_v46 = vadd.f32 %v254_v45, %v134_v44 }
  0xb9   :  { %v256_v47 = vmax.f32 %v255_v46, 0.0 }
  0xbb   :  { %v257_v48 = vpack.c.bf16 %v256_v47, %v256_v47 }
  0xbd   :  { %258 = vst [vmem:[%s473_s6] sm:$0x3] %v257_v48 }

// kernel: tile.18
= control target key start
LH: loop header
LB: loop body
LE: loop exit
PB: predicated region body
PF: predicated region fallthrough
CT: control target
= control target key end

     0   :  { %s22_s0 = inlined_call_operand.vmem [shape: f32[4], index: 0, kind: input, shape index: {}]   ;;  %s23_s1 = inlined_call_operand.vmem [shape: f32[4,4], index: 1, kind: output, shape index: {}]  }
   0x1   :  { %v4_v0 = vld [vmem:[%s22_s0] ss:$0 sm:$0xff] }
   0x2   :  { %5 = vst [vmem:[%s23_s1] sm:$0xf] %v4_v0 }

// kernel: tile.1
= control target key start
LH: loop header
LB: loop body
LE: loop exit
PB: predicated region body
PF: predicated region fallthrough
CT: control target
= control target key end

     0   :  { %s34_s8 = smov 125   ;;  %s35_s9 = smov 126   ;;  %vm7_vm0 = vcmask 7168   ;;  %s61_s0 = inlined_call_operand.vmem [shape: f32[4,4], index: 0, kind: input, shape index: {}]   ;;  %s62_s1 = inlined_call_operand.vmem [shape: f32[16,1], index: 1, kind: output, shape index: {}]  }
   0x1   :  { %v4_v0 = vld [vmem:[%s61_s0] sm:$0xf]  ;;  %s33_s0 = smov 127  }
   0x2   :  { %5 = vst [vmem:[#allocation0] sm:$0xf] %v4_v0 }
   0x9   :  { %v9_v1 = vld [vmem:[#allocation0] sm:$0xf]  }
   0xa   :  { %v21_v2 = vld [vmem:[#allocation0] sm:$0xf]   ;;  %10 = vrot.lane.b32.xlu0 %v9_v1, %s33_s0 }
   0xb   :  { %22 = vrot.lane.b32.xlu1 %v21_v2, %s34_s8  ;;  %v15_v3 = vld [vmem:[#allocation0] sm:$0xf]  }
   0xc   :  { %v6_v4 = vld [vmem:[#allocation0] sm:$0xf]  }
   0xd   :  { %8 = vst.msk [vmem:[%s62_s1] ss:$4 sm:$0xf] %vm7_vm0, %v6_v4  }
  0x12   :  { %16 = vrot.lane.b32.xlu0 %v15_v3, %s35_s9 }
  0x7c   :  { %v11_v5 = vpop.permute.xlu0 %10  }
  0x7d   :  { %v23_v6 = vpop.permute.xlu1 %22   ;;  %27 = vst.msk [vmem:[%s62_s1 + $0x1] ss:$4 sm:$0xf] %vm7_vm0, %v11_v5  }
  0x7e   :  { %29 = vst.msk [vmem:[%s62_s1 + $0x3] ss:$4 sm:$0xf] %vm7_vm0, %v23_v6  }
  0x84   :  { %v17_v7 = vpop.permute.xlu0 %16  }
  0x85   :  { %28 = vst.msk [vmem:[%s62_s1 + $0x2] ss:$4 sm:$0xf] %vm7_vm0, %v17_v7  }

// kernel: lstm_unet_forward.27
= control target key start
LH: loop header
LB: loop body
LE: loop exit
PB: predicated region body
PF: predicated region fallthrough
CT: control target
= control target key end

     0   :  { %v143_v1 = vmov 0   ;;  %vm66_vm0 = vcmask 523264   ;;  %s188_s1 = inlined_call_operand.vmem [shape: bf16[64,128], index: 1, kind: input, shape index: {}]   ;;  %s189_s2 = inlined_call_operand.vmem [shape: f32[16,1], index: 2, kind: input, shape index: {}]   ;;  %s190_s0 = inlined_call_operand.vmem [shape: bf16[16,64], index: 0, kind: input, shape index: {}]   ;;  %s191_s3 = inlined_call_operand.vmem [shape: bf16[16,128], index: 3, kind: output, shape index: {}]  }
   0x1   :  { %v131_v0 = vld [vmem:[%s188_s1 + $0x18] sm:$0xff]  ;;  %138 = vset.pattern.permute.xlu0 %v143_v1  ;;  %v25_v2 = vld [vmem:[%s189_s2] sm:$0xff]  ;;  %v130_v3 = vld [vmem:[%s188_s1 + $0x10] sm:$0xff] }
   0x2   :  { %74 = vmatpush.bf16.msra.mxu0 %v131_v0  ;;  %29 = vperm.xlu0 %138, %v25_v2   ;;  %v129_v4 = vld [vmem:[%s188_s1 + $0x8] sm:$0xff]  ;;  %v128_v6 = vld [vmem:[%s188_s1] sm:$0xff] }
   0x3   :  { %v26_v5 = vld [vmem:[%s189_s2 + $0x8] sm:$0xff]  ;;  %v127_v7 = vld [vmem:[%s190_s0] sm:$0xff] }
   0x6   :  { %75 = vmatpush.bf16.msra.mxu0 %v130_v3 }
   0xa   :  { %76 = vmatpush.bf16.msra.mxu0 %v129_v4  ;;  %34 = vperm.xlu0 %138, %v26_v5  }
   0xe   :  { %77 = vmatpush.bf16.msra.mxu0 %v128_v6 }
  0x11   :  { %124 = vmatmul.msk.bf16.vlgmr.msra.gmra.mxu0 %vm66_vm0, %v127_v7 }
  0x74   :  { %v30_v8 = vpop.permute.xlu0 %29 }
  0x7c   :  { %v35_v13 = vpop.permute.xlu0 %34 }
  0x8e   :  { %v79_v9 = vpop.f32.mrf.mxu0 }
  0x8f   :  { %v80_v10 = vadd.f32 %v79_v9, %v30_v8 }
  0x91   :  { %v86_v11 = vmin.f32 %v80_v10, 0.0  ;;  %vm84_vm1 = vcmp.gt.f32.partialorder %v80_v10, 0.0 }
  0x93   :  { %v88_v12 = vmul.f32 1.442695, %v86_v11 }
  0x95   :  { %139 = vpow2.f32 %v88_v12 }
  0x96   :  { %v81_v14 = vpop.f32.mrf.mxu0 }
  0x97   :  { %v82_v15 = vadd.f32 %v81_v14, %v35_v13 }
  0x99   :  { %v87_v16 = vmin.f32 %v82_v15, 0.0  ;;  %vm85_vm2 = vcmp.gt.f32.partialorder %v82_v15, 0.0 }
  0x9b   :  { %v90_v17 = vmul.f32 1.442695, %v87_v16  ;;  %v140_v18 = vpop.eup %139 }
  0x9c   :  { %v125_v19 = vadd.f32 -1.0, %v140_v18 }
  0x9d   :  { %141 = vpow2.f32 %v90_v17 }
  0x9e   :  { %v94_v22 = vsel %vm84_vm1, %v80_v10, %v125_v19 }
  0xa3   :  { %v142_v20 = vpop.eup %141 }
  0xa4   :  { %v126_v21 = vadd.f32 -1.0, %v142_v20 }
  0xa6   :  { %v95_v23 = vsel %vm85_vm2, %v82_v15, %v126_v21 }
  0xa7   :  { %v135_v24 = vpack.c.bf16 %v95_v23, %v94_v22 }
  0xa9   :  { %136 = vst [vmem:[%s191_s3] sm:$0xff] %v135_v24  }

// kernel: lstm_unet_forward.18
= control target key start
LH: loop header
LB: loop body
LE: loop exit
PB: predicated region body
PF: predicated region fallthrough
CT: control target
= control target key end

     0   :  { %s989_s18 = smov 0   ;;  %s991_s19 = smov 0   ;;  %s1175_s0 = inlined_call_operand.vmem [shape: bf16[4,4,72], index: 0, kind: input, shape index: {}]   ;;  %s1176_s1 = inlined_call_operand.vmem [shape: f32[4,4,1], index: 1, kind: input, shape index: {}]   ;;  %s1177_s2 = inlined_call_operand.vmem [shape: bf16[72,512], index: 2, kind: input, shape index: {}]   ;;  %s1178_s3 = inlined_call_operand.vmem [shape: f32[4,512], index: 3, kind: input, shape index: {}]   ;;  %s1179_s4 = inlined_call_operand.vmem [shape: f32[4,512], index: 4, kind: output, shape index: {0}]   ;;  %s1180_s5 = inlined_call_operand.vmem [shape: f32[4,512], index: 5, kind: output, shape index: {1}]  }
   0x1   :  { %s993_s20 = smov 0  }
   0x2 LB: > { %s797_s21 = sadd.s32 4294967295, %s956_s20   ;;  %s1006_s22 = sadd.s32 1, %s956_s20   ;;  %s956_s20 = sphi %s993_s20, %s1189_s20   ;;  %s952_s19 = sphi %s991_s19, %s1188_s19   ;;  %s948_s18 = sphi %s989_s18, %s1187_s18  }
   0x3   : > { %s62_s23 = ssub.s32 %s956_s20, %s1006_s22  ;;  %s65_s24 = sadd.s32 1, %s952_s19 }
   0x4   : > { %p63_p0 = scmp.eq.s32.totalorder %s62_s23, 0  ;;  %p72_p1 = scmp.ne.s32.totalorder %s952_s19, %s948_s18 }
   0x5   : > { %p73_p2 = scmp.eq.s32.totalorder %s956_s20, 0  ;;  %p800_p4 = scmp.ge.s32.totalorder %s956_s20, 2 }
   0x6   : > { %s1015_s25 = scalar_select %p63_p0, %s952_s19, %s65_s24  }
   0x7   : > { %p74_p3 = por %p73_p2, %p72_p1  ;;  %182 = sbr.rel (%p800_p4) target bundleno = 25 (0x19), region = 24 }
   0xc   : > { %185 = sbr.rel (!%p74_p3) target bundleno = 25 (0x19), region = 28  ;;  %s187_s26 = sand.u32 (%p74_p3), 1, %s952_s19  }
   0xd   : > { %s864_s27 = sshll.u32 (%p74_p3), %s956_s20, 3  ;;  %s873_s28 = smul.u32 (%p74_p3), 72, %s187_s26 }
   0xe   : > { %s192_s6 = scalar_lea.vmem (%p74_p3), %s1177_s2, %s864_s27 }
   0xf   : > { %v237_v0 = vld [vmem:[%s192_s6] sm:$0xff] (%p74_p3)  ;;  %v239_v1 = vld [vmem:[%s192_s6 + $0x10] sm:$0xff] (%p74_p3)  ;;  %s189_s7 = scalar_lea.vmem (%p74_p3), [#allocation2], %s873_s28 }
  0x10   : > { %v241_v2 = vld [vmem:[%s192_s6 + $0x20] sm:$0xff] (%p74_p3)  ;;  %238 = vst [vmem:[%s189_s7] sm:$0xff] (%p74_p3), %v237_v0  ;;  %v243_v3 = vld [vmem:[%s192_s6 + $0x30] sm:$0xff] (%p74_p3) }
  0x11   : > { %240 = vst [vmem:[%s189_s7 + $0x8] sm:$0xff] %v239_v1  ;;  %v245_v4 = vld [vmem:[%s192_s6 + $0x40] sm:$0xff]  ;;  %v247_v5 = vld [vmem:[%s192_s6 + $0x50] sm:$0xff] }
  0x12   : > { %242 = vst [vmem:[%s189_s7 + $0x10] sm:$0xff] %v241_v2  ;;  %v249_v6 = vld [vmem:[%s192_s6 + $0x60] sm:$0xff]  ;;  %v251_v7 = vld [vmem:[%s192_s6 + $0x70] sm:$0xff] }
  0x13   : > { %244 = vst [vmem:[%s189_s7 + $0x18] sm:$0xff] %v243_v3  ;;  %v253_v8 = vld [vmem:[%s192_s6 + $0x80] sm:$0xff] }
  0x14   : > { %246 = vst [vmem:[%s189_s7 + $0x20] sm:$0xff] %v245_v4 }
  0x15   : > { %248 = vst [vmem:[%s189_s7 + $0x28] sm:$0xff] %v247_v5 }
  0x16   : > { %250 = vst [vmem:[%s189_s7 + $0x30] sm:$0xff] %v249_v6 }
  0x17   : > { %252 = vst [vmem:[%s189_s7 + $0x38] sm:$0xff] %v251_v7 }
  0x18   : > { %254 = vst [vmem:[%s189_s7 + $0x40] sm:$0xff] %v253_v8 }
  0x19 PF: > { %p803_p5 = scmp.ge.s32.totalorder %s956_s20, 1  ;;  %p268_p6 = scmp.lt.s32.totalorder %s956_s20, 3 }
  0x1b   : > { %p269_p7 = pnand %p803_p5, %p268_p6 }
  0x1c   : > { %s275_s8 = sand.u32 (!%p269_p7), 1, %s948_s18   ;;  %s804_s7 = sshll.u32 (!%p269_p7), %s797_s21, 1 }
  0x1d   : > { %272 = sbr.rel (%p269_p7) target bundleno = 249 (0xf9), region = 70  ;;  %p314_p8 = scmp.lt.s32.totalorder (!%p269_p7), %s804_s7, 3 }
  0x1e   : > { %s874_s9 = smul.u32 (!%p269_p7), 72, %s275_s8 }
  0x20   : > { %s1026_s10 = scalar_lea.vmem (!%p269_p7), [#allocation2], %s874_s9 }
  0x22   : > { %v958_v9 = vmov 0   ;;  %v340_v10 = vld [vmem:[%s1026_s10 + $0x40] sm:$0xff]  ;;  %vm397_vm0 = vcmask 1043456   ;;  %v836_v13 = vld [vmem:[%s1026_s10 + $0x30] sm:$0xf]  ;;  %vm393_vm1 = vcmask 588800  }
  0x23   : > { %900 = vset.pattern.permute.xlu0 %v958_v9  ;;  %901 = vset.pattern.permute.xlu1 %v958_v9  ;;  %v373_v11 = vunpack.c.l.b16 %v340_v10  ;;  %v374_v12 = vunpack.c.h.b16 %v340_v10  ;;  %v872_v16 = vld [vmem:[%s1026_s10 + $0x34] sm:$0xf0]  ;;  %v871_v17 = vld [vmem:[%s1026_s10 + $0x34] sm:$0xf]  ;;  %v838_v18 = vld [vmem:[%s1026_s10 + $0x38] sm:$0xf0] }
  0x24   : > { %v837_v21 = vor.u32 %v872_v16, %v836_v13  ;;  %v841_v22 = vor.u32 %v871_v17, %v838_v18  ;;  %v828_v23 = vld [vmem:[%s1026_s10 + $0x20] sm:$0xf]  ;;  %v342_v24 = vld [vmem:[%s1176_s1] sm:$0xf]  ;;  %v870_v25 = vld [vmem:[%s1026_s10 + $0x24] sm:$0xf0] }
  0x25   : > { %v383_v14 = vpack.c.b16 %v373_v11, %v373_v11  ;;  %v384_v15 = vpack.c.b16 %v374_v12, %v374_v12  ;;  %v869_v26 = vld [vmem:[%s1026_s10 + $0x24] sm:$0xf]  ;;  %v830_v27 = vld [vmem:[%s1026_s10 + $0x28] sm:$0xf0]  ;;  %345 = vperm.xlu0 %900, %v342_v24   ;;  %v829_v28 = vor.u32 %v870_v25, %v828_v23  ;;  %v820_v30 = vld [vmem:[%s1026_s10 + $0x10] sm:$0xf] }
  0x26   : > { %v833_v29 = vor.u32 %v869_v26, %v830_v27  ;;  %v868_v31 = vld [vmem:[%s1026_s10 + $0x14] sm:$0xf0]  ;;  %v867_v32 = vld [vmem:[%s1026_s10 + $0x14] sm:$0xf]  ;;  %v822_v33 = vld [vmem:[%s1026_s10 + $0x18] sm:$0xf0] }
  0x27   : > { %v399_v19 = vsel %vm397_vm0, %v383_v14, 0  ;;  %v402_v20 = vsel %vm397_vm0, %v384_v15, 0  ;;  %v847_v34 = vld [vmem:[%s1176_s1 + $0x4] sm:$0xf]  ;;  %v821_v35 = vor.u32 %v868_v31, %v820_v30  ;;  %v825_v36 = vor.u32 %v867_v32, %v822_v33  ;;  %v812_v37 = vld [vmem:[%s1026_s10] sm:$0xf] }
  0x28   : > { %407 = vmatpush.bf16.msra.mxu0 %v399_v19  ;;  %420 = vmatpush.bf16.msra.mxu1 %v402_v20  ;;  %v866_v38 = vld [vmem:[%s1026_s10 + $0x4] sm:$0xf0]  ;;  %v865_v39 = vld [vmem:[%s1026_s10 + $0x4] sm:$0xf]  ;;  %v814_v40 = vld [vmem:[%s1026_s10 + $0x8] sm:$0xf0] }
  0x29   : > { %483 = vmatpush.bf16.msra.mxu2 %v399_v19  ;;  %496 = vmatpush.bf16.msra.mxu3 %v402_v20  ;;  %v857_v41 = vld [vmem:[%s1176_s1 + $0xc] sm:$0xf]  ;;  %v813_v42 = vor.u32 %v866_v38, %v812_v37  ;;  %v817_v43 = vor.u32 %v865_v39, %v814_v40  ;;  %v341_v44 = vld [vmem:[%s1175_s0] sm:$0x3]  ;;  %v846_v45 = vld [vmem:[%s1175_s0 + $0x2] sm:$0x3] }
  0x2a   : > { %590 = vperm.xlu1 %901, %v857_v41   ;;  %v853_v46 = vld [vmem:[%s1176_s1 + $0x8] sm:$0xf]  ;;  %v856_v47 = vld [vmem:[%s1175_s0 + $0x6] sm:$0x3]  ;;  %v852_v48 = vld [vmem:[%s1175_s0 + $0x4] sm:$0x3] }
  0x2b   : > { %s1191_s7 = smov (!%p314_p8, %s804_s7), 3 }
  0x2c   : > { %408 = vmatpush.bf16.msra.mxu0 %v837_v21  ;;  %421 = vmatpush.bf16.msra.mxu1 %v841_v22  ;;  %s1081_s8 = sshll.u32 %s1191_s7, 2 }
  0x2d   : > { %484 = vmatpush.bf16.msra.mxu2 %v837_v21  ;;  %497 = vmatpush.bf16.msra.mxu3 %v841_v22  ;;  %s317_s11 = scalar_lea.vmem %s1178_s3, %s1081_s8  ;;  %s329_s12 = scalar_lea.vmem %s1180_s5, %s1081_s8 }
  0x2e   : > { %474 = vperm.xlu0 %900, %v847_v34   ;;  %v660_v50 = vld [vmem:[%s317_s11] sm:$0xff]  ;;  %s323_s15 = scalar_lea.vmem %s1179_s4, %s1081_s8 }
  0x2f   : > { %662 = vst [vmem:[#allocation1] ss:$2 sm:$0xff] %v660_v50 }
  0x30   : > { %409 = vmatpush.bf16.msra.mxu0 %v829_v28  ;;  %422 = vmatpush.bf16.msra.mxu1 %v833_v29 }
  0x31   : > { %485 = vmatpush.bf16.msra.mxu2 %v829_v28  ;;  %498 = vmatpush.bf16.msra.mxu3 %v833_v29 }
  0x32   : > { %550 = vperm.xlu1 %901, %v853_v46  }
  0x34   : > { %410 = vmatpush.bf16.msra.mxu0 %v821_v35  ;;  %423 = vmatpush.bf16.msra.mxu1 %v825_v36 }
  0x35   : > { %486 = vmatpush.bf16.msra.mxu2 %v821_v35  ;;  %499 = vmatpush.bf16.msra.mxu3 %v825_v36 }
  0x38   : > { %411 = vmatpush.bf16.msra.mxu0 %v813_v42  ;;  %424 = vmatpush.bf16.msra.mxu1 %v817_v43 }
  0x39   : > { %487 = vmatpush.bf16.msra.mxu2 %v813_v42  ;;  %500 = vmatpush.bf16.msra.mxu3 %v817_v43 }
  0x3b   : > { %842 = vmatmul.msk.bf16.vlgmr.msra.gmra.mxu0 %vm393_vm1, %v341_v44  ;;  %843 = vmatmul.msk.bf16.vlgmr.msra.gmra.mxu1 %vm393_vm1, %v341_v44 }
  0x3c   : > { %848 = vmatmul.msk.bf16.vlgmr.msra.gmra.mxu2 %vm393_vm1, %v846_v45  ;;  %849 = vmatmul.msk.bf16.vlgmr.msra.gmra.mxu3 %vm393_vm1, %v846_v45 }
  0x3d   : > { %599 = vmatpush.bf16.msrb.mxu2 %v399_v19  ;;  %612 = vmatpush.bf16.msrb.mxu3 %v402_v20 }
  0x3e   : > { %559 = vmatpush.bf16.msrb.mxu0 %v399_v19  ;;  %572 = vmatpush.bf16.msrb.mxu1 %v402_v20 }
  0x41   : > { %600 = vmatpush.bf16.msrb.mxu2 %v837_v21  ;;  %613 = vmatpush.bf16.msrb.mxu3 %v841_v22 }
  0x42   : > { %560 = vmatpush.bf16.msrb.mxu0 %v837_v21  ;;  %573 = vmatpush.bf16.msrb.mxu1 %v841_v22 }
  0x45   : > { %601 = vmatpush.bf16.msrb.mxu2 %v829_v28  ;;  %614 = vmatpush.bf16.msrb.mxu3 %v833_v29 }
  0x46   : > { %561 = vmatpush.bf16.msrb.mxu0 %v829_v28  ;;  %574 = vmatpush.bf16.msrb.mxu1 %v833_v29 }
  0x49   : > { %602 = vmatpush.bf16.msrb.mxu2 %v821_v35  ;;  %615 = vmatpush.bf16.msrb.mxu3 %v825_v36 }
  0x4a   : > { %562 = vmatpush.bf16.msrb.mxu0 %v821_v35  ;;  %575 = vmatpush.bf16.msrb.mxu1 %v825_v36 }
  0x4d   : > { %603 = vmatpush.bf16.msrb.mxu2 %v813_v42  ;;  %616 = vmatpush.bf16.msrb.mxu3 %v817_v43 }
  0x4e   : > { %563 = vmatpush.bf16.msrb.mxu0 %v813_v42  ;;  %576 = vmatpush.bf16.msrb.mxu1 %v817_v43 }
  0x50   : > { %858 = vmatmul.msk.bf16.vlgmr.msrb.gmra.mxu2 %vm393_vm1, %v856_v47  ;;  %859 = vmatmul.msk.bf16.vlgmr.msrb.gmra.mxu3 %vm393_vm1, %v856_v47 }
  0x51   : > { %854 = vmatmul.msk.bf16.vlgmr.msrb.gmra.mxu0 %vm393_vm1, %v852_v48  ;;  %855 = vmatmul.msk.bf16.vlgmr.msrb.gmra.mxu1 %vm393_vm1, %v852_v48 }
  0x97   : > { %v346_v49 = vpop.permute.xlu0 %345 }
  0x9c   : > { %v591_v3 = vpop.permute.xlu1 %590 }
  0xa0   : > { %v475_v57 = vpop.permute.xlu0 %474 }
  0xa4   : > { %v551_v16 = vpop.permute.xlu1 %550 }
  0xb8   : > { %v413_v51 = vpop.f32.mrf.mxu0  ;;  %v426_v52 = vpop.f32.mrf.mxu1 }
  0xb9   : > { %v414_v53 = vadd.f32 %v413_v51, %v346_v49  ;;  %v427_v54 = vadd.f32 %v426_v52, %v346_v49 }
  0xbb   : > { %v844_v55 = vmul.f32 -1.442695, %v414_v53  ;;  %v845_v56 = vmul.f32 -1.442695, %v427_v54 }
  0xbd   : > { %902 = vpow2.f32 %v844_v55 }
  0xbe   : > { %904 = vpow2.f32 %v845_v56 }
  0xbf   : > { %v489_v58 = vpop.f32.mrf.mxu2  ;;  %v502_v59 = vpop.f32.mrf.mxu3 }
  0xc0   : > { %v490_v60 = vadd.f32 %v489_v58, %v475_v57  ;;  %v503_v61 = vadd.f32 %v502_v59, %v475_v57  ;;  %v428_v62 = vpop.f32.mrf.mxu1  ;;  %v415_v63 = vpop.f32.mrf.mxu0 }
  0xc2   : > { %v850_v0 = vmul.f32 -1.442695, %v490_v60  ;;  %v851_v1 = vmul.f32 -1.442695, %v503_v61 }
  0xc3   : > { %v903_v2 = vpop.eup %902 }
  0xc4   : > { %v905_v4 = vpop.eup %904  ;;  %v1087_v5 = vadd.f32 1.0, %v903_v2  ;;  %906 = vpow2.f32 %v850_v0  ;;  %v663_v0 = vld.sshfl [vmem:[#allocation1] sm:$0xff pattern:$0x75316420] }
  0xc5   : > { %v1089_v6 = vadd.f32 1.0, %v905_v4  ;;  %908 = vpow2.f32 %v851_v1 }
  0xc6   : > { %910 = vrcp.f32 %v1087_v5  ;;  %v449_v21 = vand.u32 2147483648, %v1087_v5  ;;  %vm443_vm2 = vweird.f32 %v1087_v5  ;;  %v447_v25 = vand.u32 2147483647, %v1087_v5 }
  0xc7   : > { %912 = vrcp.f32 %v1089_v6  ;;  %v491_v7 = vpop.f32.mrf.mxu2  ;;  %v504_v8 = vpop.f32.mrf.mxu3  ;;  %vm458_vm3 = vweird.f32 %v1089_v6  ;;  %v462_v33 = vand.u32 2147483647, %v1089_v6  ;;  %v464_v34 = vand.u32 2147483648, %v1089_v6 }
  0xc8   : > { %v450_v32 = vor.u32 1.1754944e-38, %v449_v21  ;;  %vm1118_vm5 = vcmp.eq.f32.partialorder %v447_v25, 8.507059e+37 }
  0xc9   : > { %vm463_vm12 = vcmp.eq.f32.partialorder %v462_v33, 8.507059e+37  ;;  %v465_v60 = vor.u32 1.1754944e-38, %v464_v34 }
  0xca   : > { %v907_v9 = vpop.eup %906 }
  0xcb   : > { %v909_v10 = vpop.eup %908  ;;  %v1093_v11 = vadd.f32 1.0, %v907_v9 }
  0xcc   : > { %v1095_v12 = vpop.eup %910  ;;  %v1097_v13 = vadd.f32 1.0, %v909_v10 }
  0xcd   : > { %v1099_v14 = vpop.eup %912  ;;  %v439_v15 = vmul.f32 %v1095_v12, %v1087_v5  ;;  %914 = vrcp.f32 %v1093_v11  ;;  %v525_v44 = vand.u32 2147483648, %v1093_v11  ;;  %vm444_vm6 = vweird.f32 %v1095_v12 }
  0xce   : > { %v454_v17 = vmul.f32 %v1099_v14, %v1089_v6  ;;  %916 = vrcp.f32 %v1097_v13  ;;  %v565_v18 = vpop.f32.mrf.mxu0  ;;  %v578_v19 = vpop.f32.mrf.mxu1  ;;  %vm459_vm4 = vweird.f32 %v1099_v14  ;;  %v540_v45 = vand.u32 2147483648, %v1097_v13  ;;  %vm1143_vm11 = vmor %vm443_vm2, %vm444_vm6  ;;  %v664_v6 = vld.sshfl [vmem:[#allocation1 + $0x8] sm:$0xff pattern:$0x75316420] }
  0xcf   : > { %v440_v20 = vsub.f32 1.0, %v439_v15  ;;  %v579_v26 = vadd.f32 %v578_v19, %v551_v16  ;;  %v566_v37 = vadd.f32 %v565_v18, %v551_v16  ;;  %v523_v51 = vand.u32 2147483647, %v1093_v11  ;;  %vm1132_vm8 = vmor %vm458_vm3, %vm459_vm4 }
  0xd0   : > { %v455_v22 = vsub.f32 1.0, %v454_v17  ;;  %v538_v57 = vand.u32 2147483647, %v1097_v13  ;;  %vm519_vm10 = vweird.f32 %v1093_v11  ;;  %v526_v62 = vor.u32 1.1754944e-38, %v525_v44 }
  0xd1   : > { %v441_v31 = vmul.f32 %v1095_v12, %v440_v20  ;;  %918 = vtanh.f32 %v579_v26  ;;  %vm534_vm14 = vweird.f32 %v1097_v13  ;;  %vm524_vm1 = vcmp.eq.f32.partialorder %v523_v51, 8.507059e+37 }
  0xd2   : > { %v456_v27 = vmul.f32 %v1099_v14, %v455_v22  ;;  %vm539_vm2 = vcmp.eq.f32.partialorder %v538_v57, 8.507059e+37 }
  0xd3   : > { %v605_v23 = vpop.f32.mrf.mxu2  ;;  %v618_v24 = vpop.f32.mrf.mxu3  ;;  %v442_v49 = vadd.f32 %v1095_v12, %v441_v31 }
  0xd4   : > { %v606_v28 = vadd.f32 %v605_v23, %v591_v3  ;;  %v619_v29 = vadd.f32 %v618_v24, %v591_v3  ;;  %v915_v30 = vpop.eup %914  ;;  %v457_v41 = vadd.f32 %v1099_v14, %v456_v27  ;;  %v541_v3 = vor.u32 1.1754944e-38, %v540_v45 }
  0xd5   : > { %v917_v35 = vpop.eup %916  ;;  %v515_v36 = vmul.f32 %v915_v30, %v1093_v11  ;;  %vm520_vm7 = vweird.f32 %v915_v30  ;;  %v446_v63 = vsel %vm1143_vm11, %v1095_v12, %v442_v49 }
  0xd6   : > { %v860_v38 = vmul.f32 -1.442695, %v606_v28  ;;  %v530_v39 = vmul.f32 %v917_v35, %v1097_v13  ;;  %v861_v42 = vmul.f32 -1.442695, %v619_v29  ;;  %v580_v46 = vpop.f32.mrf.mxu1  ;;  %v567_v47 = vpop.f32.mrf.mxu0  ;;  %vm535_vm9 = vweird.f32 %v917_v35  ;;  %vm521_vm13 = vmor %vm519_vm10, %vm520_vm7 }
  0xd7   : > { %v516_v43 = vsub.f32 1.0, %v515_v36  ;;  %v461_v56 = vsel %vm1132_vm8, %v1099_v14, %v457_v41  ;;  %v919_v61 = vpop.eup %918  ;;  %vm536_vm15 = vmor %vm534_vm14, %vm535_vm9  ;;  %v451_v12 = vsel %vm1118_vm5, %v450_v32, %v446_v63 }
  0xd8   : > { %920 = vpow2.f32 %v860_v38  ;;  %v531_v48 = vsub.f32 1.0, %v530_v39  ;;  %v466_v5 = vsel %vm463_vm12, %v465_v60, %v461_v56 }
  0xd9   : > { %922 = vpow2.f32 %v861_v42  ;;  %v517_v50 = vmul.f32 %v915_v30, %v516_v43  ;;  %v670_v17 = vmul.f32 %v919_v61, %v466_v5 }
  0xda   : > { %924 = vtanh.f32 %v566_v37  ;;  %v532_v55 = vmul.f32 %v917_v35, %v531_v48 }
  0xdb   : > { %v607_v53 = vpop.f32.mrf.mxu2  ;;  %v620_v54 = vpop.f32.mrf.mxu3  ;;  %v518_v59 = vadd.f32 %v915_v30, %v517_v50 }
  0xdc   : > { %v533_v1 = vadd.f32 %v917_v35, %v532_v55 }
  0xdd   : > { %v522_v4 = vsel %vm521_vm13, %v915_v30, %v518_v59 }
  0xde   : > { %v921_v2 = vpop.eup %920  ;;  %v527_v8 = vsel %vm524_vm1, %v526_v62, %v522_v4  ;;  %v537_v9 = vsel %vm536_vm15, %v917_v35, %v533_v1 }
  0xdf   : > { %v923_v7 = vpop.eup %922  ;;  %v628_v10 = vadd.f32 1.0, %v921_v2  ;;  %v542_v13 = vsel %vm539_vm2, %v541_v3, %v537_v9  ;;  %v667_v15 = vmul.f32 %v663_v0, %v527_v8 }
  0xe0   : > { %v925_v11 = vpop.eup %924  ;;  %v629_v14 = vadd.f32 1.0, %v923_v7  ;;  %v668_v16 = vmul.f32 %v664_v6, %v542_v13 }
  0xe1   : > { %926 = vrcp.f32 %v628_v10  ;;  %v669_v18 = vmul.f32 %v925_v11, %v451_v12  ;;  %v641_v28 = vand.u32 2147483648, %v628_v10  ;;  %v639_v32 = vand.u32 2147483647, %v628_v10 }
  0xe2   : > { %928 = vrcp.f32 %v629_v14  ;;  %v672_v19 = vadd.f32 %v670_v17, %v668_v16  ;;  %v656_v31 = vand.u32 2147483648, %v629_v14  ;;  %v654_v34 = vand.u32 2147483647, %v629_v14 }
  0xe3   : > { %v671_v20 = vadd.f32 %v669_v18, %v667_v15  ;;  %vm635_vm5 = vweird.f32 %v628_v10  ;;  %vm650_vm7 = vweird.f32 %v629_v14  ;;  %v642_v38 = vor.u32 1.1754944e-38, %v641_v28 }
  0xe4   : > { %v675_v21 = vrot.slane %v672_v19, 4  ;;  %930 = vtanh.f32 %v672_v19  ;;  %v657_v39 = vor.u32 1.1754944e-38, %v656_v31  ;;  %vm640_vm9 = vcmp.eq.f32.partialorder %v639_v32, 8.507059e+37 }
  0xe5   : > { %932 = vtanh.f32 %v671_v20  ;;  %vm655_vm10 = vcmp.eq.f32.partialorder %v654_v34, 8.507059e+37 }
  0xe6   : > { %v676_v23 = vsel %vm397_vm0, %v671_v20, %v675_v21 }
  0xe7   : > { %v927_v22 = vpop.eup %926  ;;  %678 = vst [vmem:[%s329_s12] sm:$0xff] %v676_v23 }
  0xe8   : > { %v929_v24 = vpop.eup %928  ;;  %v631_v25 = vmul.f32 %v927_v22, %v628_v10  ;;  %vm636_vm3 = vweird.f32 %v927_v22 }
  0xe9   : > { %v646_v26 = vmul.f32 %v929_v24, %v629_v14  ;;  %vm651_vm4 = vweird.f32 %v929_v24  ;;  %vm637_vm6 = vmor %vm635_vm5, %vm636_vm3 }
  0xea   : > { %v632_v27 = vsub.f32 1.0, %v631_v25  ;;  %vm652_vm8 = vmor %vm650_vm7, %vm651_vm4  ;;  %v931_v41 = vpop.eup %930 }
  0xeb   : > { %v647_v29 = vsub.f32 1.0, %v646_v26  ;;  %v933_v45 = vpop.eup %932 }
  0xec   : > { %v633_v30 = vmul.f32 %v927_v22, %v632_v27 }
  0xed   : > { %v648_v33 = vmul.f32 %v929_v24, %v647_v29 }
  0xee   : > { %v634_v35 = vadd.f32 %v927_v22, %v633_v30 }
  0xef   : > { %v649_v36 = vadd.f32 %v929_v24, %v648_v33 }
  0xf0   : > { %v638_v37 = vsel %vm637_vm6, %v927_v22, %v634_v35 }
  0xf1   : > { %v653_v40 = vsel %vm652_vm8, %v929_v24, %v649_v36  ;;  %v643_v42 = vsel %vm640_vm9, %v642_v38, %v638_v37 }
  0xf2   : > { %v658_v43 = vsel %vm655_vm10, %v657_v39, %v653_v40  ;;  %v681_v46 = vmul.f32 %v933_v45, %v643_v42 }
  0xf3   : > { %v682_v44 = vmul.f32 %v931_v41, %v658_v43 }
  0xf5   : > { %v685_v47 = vrot.slane %v682_v44, 4 }
  0xf7   : > { %v686_v48 = vsel %vm397_vm0, %v681_v46, %v685_v47 }
  0xf8   : > { %688 = vst [vmem:[%s323_s15] sm:$0xff] %v686_v48 }
  0xf9 PF: > { %p13_p9 = scmp.ge.s32.totalorder %s1006_s22, 4   ;;  %s1187_s18 = smov %s952_s19 }
  0xfa   : > { %s1188_s19 = smov %s1015_s25  ;;  %s1189_s20 = smov %s1006_s22 }
  0xfb   :  { %15 = sbr.rel (!%p13_p9) target bundleno = 2 (0x2), region = 130 }

// kernel: lstm_unet_forward.28
= control target key start
LH: loop header
LB: loop body
LE: loop exit
PB: predicated region body
PF: predicated region fallthrough
CT: control target
= control target key end

     0   :  { %s549_s12 = smov 0   ;;  %s551_s13 = smov 0   ;;  %s626_s0 = inlined_call_operand.vmem [shape: bf16[8,72], index: 0, kind: input, shape index: {}]   ;;  %s627_s1 = inlined_call_operand.vmem [shape: bf16[72,512], index: 1, kind: input, shape index: {}]   ;;  %s628_s2 = inlined_call_operand.vmem [shape: f32[8,1], index: 2, kind: input, shape index: {}]   ;;  %s629_s3 = inlined_call_operand.vmem [shape: bf16[8,512], index: 3, kind: output, shape index: {}]  }
   0x1   :  { %s553_s14 = smov 0  }
   0x2 LB: > { %s416_s15 = sadd.s32 4294967295, %s526_s14   ;;  %s566_s16 = sadd.s32 1, %s526_s14   ;;  %s526_s14 = sphi %s553_s14, %s632_s14   ;;  %s522_s13 = sphi %s551_s13, %s631_s13   ;;  %s518_s12 = sphi %s549_s12, %s630_s12  }
   0x3   : > { %s38_s17 = ssub.s32 %s526_s14, %s566_s16  ;;  %s41_s18 = sadd.s32 1, %s522_s13 }
   0x4   : > { %p39_p0 = scmp.eq.s32.totalorder %s38_s17, 0  ;;  %p48_p1 = scmp.ne.s32.totalorder %s522_s13, %s518_s12 }
   0x5   : > { %p49_p2 = scmp.eq.s32.totalorder %s526_s14, 0  ;;  %p419_p4 = scmp.ge.s32.totalorder %s526_s14, 2 }
   0x6   : > { %s575_s19 = scalar_select %p39_p0, %s522_s13, %s41_s18  }
   0x7   : > { %p50_p3 = por %p49_p2, %p48_p1  ;;  %127 = sbr.rel (%p419_p4) target bundleno = 25 (0x19), region = 24 }
   0xc   : > { %130 = sbr.rel (!%p50_p3) target bundleno = 25 (0x19), region = 28  ;;  %s132_s20 = sand.u32 (%p50_p3), 1, %s522_s13  }
   0xd   : > { %s463_s21 = sshll.u32 (%p50_p3), %s526_s14, 3  ;;  %s472_s22 = smul.u32 (%p50_p3), 72, %s132_s20 }
   0xe   : > { %s137_s25 = scalar_lea.vmem (%p50_p3), %s627_s1, %s463_s21 }
   0xf   : > { %v182_v0 = vld [vmem:[%s137_s25] sm:$0xff] (%p50_p3)  ;;  %v184_v1 = vld [vmem:[%s137_s25 + $0x10] sm:$0xff] (%p50_p3)  ;;  %s134_s26 = scalar_lea.vmem (%p50_p3), [#allocation2], %s472_s22 }
  0x10   : > { %v186_v2 = vld [vmem:[%s137_s25 + $0x20] sm:$0xff] (%p50_p3)  ;;  %183 = vst [vmem:[%s134_s26] sm:$0xff] (%p50_p3), %v182_v0  ;;  %v188_v3 = vld [vmem:[%s137_s25 + $0x30] sm:$0xff] (%p50_p3) }
  0x11   : > { %185 = vst [vmem:[%s134_s26 + $0x8] sm:$0xff] %v184_v1  ;;  %v190_v4 = vld [vmem:[%s137_s25 + $0x40] sm:$0xff]  ;;  %v192_v5 = vld [vmem:[%s137_s25 + $0x50] sm:$0xff] }
  0x12   : > { %187 = vst [vmem:[%s134_s26 + $0x10] sm:$0xff] %v186_v2  ;;  %v194_v6 = vld [vmem:[%s137_s25 + $0x60] sm:$0xff]  ;;  %v196_v7 = vld [vmem:[%s137_s25 + $0x70] sm:$0xff] }
  0x13   : > { %189 = vst [vmem:[%s134_s26 + $0x18] sm:$0xff] %v188_v3  ;;  %v198_v8 = vld [vmem:[%s137_s25 + $0x80] sm:$0xff] }
  0x14   : > { %191 = vst [vmem:[%s134_s26 + $0x20] sm:$0xff] %v190_v4 }
  0x15   : > { %193 = vst [vmem:[%s134_s26 + $0x28] sm:$0xff] %v192_v5 }
  0x16   : > { %195 = vst [vmem:[%s134_s26 + $0x30] sm:$0xff] %v194_v6 }
  0x17   : > { %197 = vst [vmem:[%s134_s26 + $0x38] sm:$0xff] %v196_v7 }
  0x18   : > { %199 = vst [vmem:[%s134_s26 + $0x40] sm:$0xff] %v198_v8 }
  0x19 PF: > { %p422_p5 = scmp.ge.s32.totalorder %s526_s14, 1  ;;  %p204_p6 = scmp.lt.s32.totalorder %s526_s14, 3 }
  0x1b   : > { %p205_p7 = pnand %p422_p5, %p204_p6 }
  0x1c   : > { %s211_s27 = sand.u32 (!%p205_p7), 1, %s518_s12   ;;  %s423_s7 = sshll.u32 (!%p205_p7), %s416_s15, 1 }
  0x1d   : > { %208 = sbr.rel (%p205_p7) target bundleno = 206 (0xce), region = 66  ;;  %p236_p8 = scmp.lt.s32.totalorder (!%p205_p7), %s423_s7, 3 }
  0x1e   : > { %s473_s28 = smul.u32 (!%p205_p7), 72, %s211_s27 }
  0x20   : > { %s589_s4 = scalar_lea.vmem (!%p205_p7), [#allocation2], %s473_s28 }
  0x22   : > { %v528_v9 = vmov 0   ;;  %v252_v10 = vld [vmem:[%s628_s2] sm:$0xff]  ;;  %vm307_vm0 = vcmask 1043456   ;;  %v451_v14 = vld [vmem:[%s589_s4 + $0x30] sm:$0xf]  ;;  %vm303_vm1 = vcmask 588800  }
  0x23   : > { %499 = vset.pattern.permute.xlu0 %v528_v9  ;;  %v251_v11 = vld [vmem:[%s589_s4 + $0x40] sm:$0xff]  ;;  %v471_v17 = vld [vmem:[%s589_s4 + $0x34] sm:$0xf0]  ;;  %v470_v18 = vld [vmem:[%s589_s4 + $0x34] sm:$0xf]  ;;  %s634_s7 = smov (!%p236_p8, %s423_s7), 3 }
  0x24   : > { %255 = vperm.xlu0 %499, %v252_v10   ;;  %v283_v12 = vunpack.c.l.b16 %v251_v11  ;;  %v284_v13 = vunpack.c.h.b16 %v251_v11  ;;  %v453_v19 = vld [vmem:[%s589_s4 + $0x38] sm:$0xf0]  ;;  %v452_v22 = vor.u32 %v471_v17, %v451_v14  ;;  %v443_v24 = vld [vmem:[%s589_s4 + $0x20] sm:$0xf]  ;;  %v469_v25 = vld [vmem:[%s589_s4 + $0x24] sm:$0xf0] }
  0x25   : > { %v456_v23 = vor.u32 %v470_v18, %v453_v19  ;;  %v468_v26 = vld [vmem:[%s589_s4 + $0x24] sm:$0xf]  ;;  %v445_v27 = vld [vmem:[%s589_s4 + $0x28] sm:$0xf0]  ;;  %v444_v28 = vor.u32 %v469_v25, %v443_v24  ;;  %v435_v30 = vld [vmem:[%s589_s4 + $0x10] sm:$0xf] }
  0x26   : > { %v293_v15 = vpack.c.b16 %v283_v12, %v283_v12  ;;  %v294_v16 = vpack.c.b16 %v284_v13, %v284_v13  ;;  %v448_v29 = vor.u32 %v468_v26, %v445_v27  ;;  %v467_v31 = vld [vmem:[%s589_s4 + $0x14] sm:$0xf0]  ;;  %v466_v32 = vld [vmem:[%s589_s4 + $0x14] sm:$0xf]  ;;  %v437_v33 = vld [vmem:[%s589_s4 + $0x18] sm:$0xf0] }
  0x27   : > { %v436_v34 = vor.u32 %v467_v31, %v435_v30  ;;  %v440_v35 = vor.u32 %v466_v32, %v437_v33  ;;  %v427_v36 = vld [vmem:[%s589_s4] sm:$0xf]  ;;  %v465_v37 = vld [vmem:[%s589_s4 + $0x4] sm:$0xf0]  ;;  %v464_v38 = vld [vmem:[%s589_s4 + $0x4] sm:$0xf] }
  0x28   : > { %v309_v20 = vsel %vm307_vm0, %v293_v15, 0  ;;  %v312_v21 = vsel %vm307_vm0, %v294_v16, 0  ;;  %v429_v39 = vld [vmem:[%s589_s4 + $0x8] sm:$0xf0]  ;;  %v428_v40 = vor.u32 %v465_v37, %v427_v36  ;;  %v242_v42 = vld [vmem:[%s626_s0] sm:$0xf] }
  0x29   : > { %317 = vmatpush.bf16.msra.mxu0 %v309_v20  ;;  %330 = vmatpush.bf16.msra.mxu1 %v312_v21  ;;  %v432_v41 = vor.u32 %v464_v38, %v429_v39  ;;  %s424_s8 = sshll.u32 %s634_s7, 2 }
  0x2a   : > { %s239_s11 = scalar_lea.vmem %s629_s3, %s424_s8 }
  0x2d   : > { %318 = vmatpush.bf16.msra.mxu0 %v452_v22  ;;  %331 = vmatpush.bf16.msra.mxu1 %v456_v23 }
  0x31   : > { %319 = vmatpush.bf16.msra.mxu0 %v444_v28  ;;  %332 = vmatpush.bf16.msra.mxu1 %v448_v29 }
  0x35   : > { %320 = vmatpush.bf16.msra.mxu0 %v436_v34  ;;  %333 = vmatpush.bf16.msra.mxu1 %v440_v35 }
  0x39   : > { %321 = vmatpush.bf16.msra.mxu0 %v428_v40  ;;  %334 = vmatpush.bf16.msra.mxu1 %v432_v41 }
  0x3c   : > { %457 = vmatmul.msk.bf16.vlgmr.msra.gmra.mxu0 %vm303_vm1, %v242_v42  ;;  %458 = vmatmul.msk.bf16.vlgmr.msra.gmra.mxu1 %vm303_vm1, %v242_v42 }
  0x96   : > { %v256_v43 = vpop.permute.xlu0 %255 }
  0xb9   : > { %v323_v44 = vpop.f32.mrf.mxu0  ;;  %v336_v45 = vpop.f32.mrf.mxu1 }
  0xba   : > { %v324_v46 = vadd.f32 %v323_v44, %v256_v43  ;;  %v337_v47 = vadd.f32 %v336_v45, %v256_v43 }
  0xbc   : > { %v342_v48 = vmin.f32 %v324_v46, 0.0  ;;  %v343_v49 = vmin.f32 %v337_v47, 0.0  ;;  %vm340_vm2 = vcmp.gt.f32.partialorder %v324_v46, 0.0  ;;  %vm341_vm3 = vcmp.gt.f32.partialorder %v337_v47, 0.0 }
  0xbe   : > { %v344_v50 = vmul.f32 1.442695, %v342_v48  ;;  %v346_v51 = vmul.f32 1.442695, %v343_v49 }
  0xc0   : > { %500 = vpow2.f32 %v344_v50 }
  0xc1   : > { %502 = vpow2.f32 %v346_v51  ;;  %v325_v52 = vpop.f32.mrf.mxu0  ;;  %v338_v53 = vpop.f32.mrf.mxu1 }
  0xc6   : > { %v501_v54 = vpop.eup %500 }
  0xc7   : > { %v503_v55 = vpop.eup %502  ;;  %v459_v56 = vadd.f32 -1.0, %v501_v54 }
  0xc8   : > { %v460_v57 = vadd.f32 -1.0, %v503_v55 }
  0xc9   : > { %v350_v58 = vsel %vm340_vm2, %v324_v46, %v459_v56 }
  0xca   : > { %v351_v59 = vsel %vm341_vm3, %v337_v47, %v460_v57 }
  0xcb   : > { %v352_v60 = vpack.c.bf16 %v351_v59, %v350_v58 }
  0xcd   : > { %353 = vst [vmem:[%s239_s11] sm:$0xff] %v352_v60 }
  0xce PF: > { %p10_p9 = scmp.ge.s32.totalorder %s566_s16, 4   ;;  %s630_s12 = smov %s522_s13 }
  0xcf   : > { %s631_s13 = smov %s575_s19  ;;  %s632_s14 = smov %s566_s16 }
  0xd0   :  { %12 = sbr.rel (!%p10_p9) target bundleno = 2 (0x2), region = 105 }

// kernel: lstm_unet_forward.29
= control target key start
LH: loop header
LB: loop body
LE: loop exit
PB: predicated region body
PF: predicated region fallthrough
CT: control target
= control target key end

     0   :  { %s1023_s0 = inlined_call_operand.vmem [shape: bf16[1,72], index: 0, kind: input, shape index: {}]   ;;  %s1024_s1 = inlined_call_operand.vmem [shape: bf16[72,512], index: 1, kind: input, shape index: {}]   ;;  %s1025_s2 = inlined_call_operand.<no memory space> [shape: f32[1,1], index: 2, kind: input, shape index: {}]   ;;  %s1026_s3 = inlined_call_operand.vmem [shape: bf16[1,72], index: 3, kind: input, shape index: {}]   ;;  %s1027_s4 = inlined_call_operand.vmem [shape: bf16[72,512], index: 4, kind: input, shape index: {}]   ;;  %s1028_s6 = inlined_call_operand.vmem [shape: f32[1,512], index: 6, kind: output, shape index: {}]   ;;  %s1029_s5 = inlined_call_operand.<no memory space> [shape: f32[1,1], index: 5, kind: input, shape index: {}]  }
   0x1   :  { %v11_v0 = vstv %s1025_s2  ;;  %v13_v1 = vstv %s1029_s5 }
   0x2   :  { %12 = vst [vmem:[#allocation2] sm:$0x1] %v11_v0 }
   0x3   :  { %14 = vst [vmem:[#allocation3] sm:$0x1] %v13_v1 }
   0x4   :  { %s910_s25 = smov 0   ;;  %s912_s26 = smov 0  }
   0x5   :  { %s914_s27 = smov 0  }
   0x6 LB: > { %s711_s2 = sadd.s32 4294967295, %s866_s27   ;;  %s927_s5 = sadd.s32 1, %s866_s27   ;;  %s866_s27 = sphi %s914_s27, %s1033_s27   ;;  %s862_s26 = sphi %s912_s26, %s1032_s26   ;;  %s858_s25 = sphi %s910_s25, %s1031_s25  }
   0x7   : > { %s45_s28 = ssub.s32 %s866_s27, %s927_s5  ;;  %s48_s29 = sadd.s32 1, %s862_s26 }
   0x8   : > { %p46_p0 = scmp.eq.s32.totalorder %s45_s28, 0  ;;  %p55_p1 = scmp.ne.s32.totalorder %s862_s26, %s858_s25 }
   0x9   : > { %p56_p2 = scmp.eq.s32.totalorder %s866_s27, 0  ;;  %p714_p4 = scmp.ge.s32.totalorder %s866_s27, 2 }
   0xa   : > { %s936_s30 = scalar_select %p46_p0, %s862_s26, %s48_s29  }
   0xb   : > { %p938_p3 = por %p56_p2, %p55_p1  ;;  %208 = sbr.rel (%p714_p4) target bundleno = 42 (0x2a), region = 32 }
  0x10   : > { %211 = sbr.rel (!%p938_p3) target bundleno = 29 (0x1d), region = 36  ;;  %s213_s8 = sand.u32 (%p938_p3), 1, %s862_s26  }
  0x11   : > { %s793_s9 = sshll.u32 (%p938_p3), %s866_s27, 3  ;;  %s811_s10 = smul.u32 (%p938_p3), 72, %s213_s8 }
  0x12   : > { %s218_s13 = scalar_lea.vmem (%p938_p3), %s1024_s1, %s793_s9 }
  0x13   : > { %v263_v2 = vld [vmem:[%s218_s13] sm:$0xff] (%p938_p3)  ;;  %v265_v3 = vld [vmem:[%s218_s13 + $0x10] sm:$0xff] (%p938_p3)  ;;  %s215_s14 = scalar_lea.vmem (%p938_p3), [#allocation4], %s811_s10 }
  0x14   : > { %v267_v4 = vld [vmem:[%s218_s13 + $0x20] sm:$0xff] (%p938_p3)  ;;  %264 = vst [vmem:[%s215_s14] sm:$0xff] (%p938_p3), %v263_v2  ;;  %v269_v5 = vld [vmem:[%s218_s13 + $0x30] sm:$0xff] (%p938_p3) }
  0x15   : > { %266 = vst [vmem:[%s215_s14 + $0x8] sm:$0xff] %v265_v3  ;;  %v271_v6 = vld [vmem:[%s218_s13 + $0x40] sm:$0xff]  ;;  %v273_v7 = vld [vmem:[%s218_s13 + $0x50] sm:$0xff] }
  0x16   : > { %268 = vst [vmem:[%s215_s14 + $0x10] sm:$0xff] %v267_v4  ;;  %v275_v8 = vld [vmem:[%s218_s13 + $0x60] sm:$0xff]  ;;  %v277_v9 = vld [vmem:[%s218_s13 + $0x70] sm:$0xff] }
  0x17   : > { %270 = vst [vmem:[%s215_s14 + $0x18] sm:$0xff] %v269_v5  ;;  %v279_v10 = vld [vmem:[%s218_s13 + $0x80] sm:$0xff] }
  0x18   : > { %272 = vst [vmem:[%s215_s14 + $0x20] sm:$0xff] %v271_v6 }
  0x19   : > { %274 = vst [vmem:[%s215_s14 + $0x28] sm:$0xff] %v273_v7 }
  0x1a   : > { %276 = vst [vmem:[%s215_s14 + $0x30] sm:$0xff] %v275_v8 }
  0x1b   : > { %278 = vst [vmem:[%s215_s14 + $0x38] sm:$0xff] %v277_v9 }
  0x1c   : > { %280 = vst [vmem:[%s215_s14 + $0x40] sm:$0xff] %v279_v10 }
  0x1d PF: > { %286 = sbr.rel (!%p938_p3) target bundleno = 42 (0x2a), region = 74  ;;  %s288_s15 = sand.u32 (%p938_p3), 1, %s862_s26  }
  0x1e   : > { %s794_s16 = sshll.u32 (%p938_p3), %s866_s27, 3  ;;  %s812_s17 = smul.u32 (%p938_p3), 72, %s288_s15 }
  0x1f   : > { %s293_s20 = scalar_lea.vmem (%p938_p3), %s1027_s4, %s794_s16 }
  0x20   : > { %v338_v11 = vld [vmem:[%s293_s20] sm:$0xff] (%p938_p3)  ;;  %v340_v12 = vld [vmem:[%s293_s20 + $0x10] sm:$0xff] (%p938_p3)  ;;  %s290_s21 = scalar_lea.vmem (%p938_p3), [#allocation5], %s812_s17 }
  0x21   : > { %v342_v13 = vld [vmem:[%s293_s20 + $0x20] sm:$0xff] (%p938_p3)  ;;  %339 = vst [vmem:[%s290_s21] sm:$0xff] (%p938_p3), %v338_v11  ;;  %v344_v14 = vld [vmem:[%s293_s20 + $0x30] sm:$0xff] (%p938_p3) }
  0x22   : > { %341 = vst [vmem:[%s290_s21 + $0x8] sm:$0xff] %v340_v12  ;;  %v346_v15 = vld [vmem:[%s293_s20 + $0x40] sm:$0xff]  ;;  %v348_v16 = vld [vmem:[%s293_s20 + $0x50] sm:$0xff] }
  0x23   : > { %343 = vst [vmem:[%s290_s21 + $0x10] sm:$0xff] %v342_v13  ;;  %v350_v17 = vld [vmem:[%s293_s20 + $0x60] sm:$0xff]  ;;  %v352_v18 = vld [vmem:[%s293_s20 + $0x70] sm:$0xff] }
  0x24   : > { %345 = vst [vmem:[%s290_s21 + $0x18] sm:$0xff] %v344_v14  ;;  %v354_v19 = vld [vmem:[%s293_s20 + $0x80] sm:$0xff] }
  0x25   : > { %347 = vst [vmem:[%s290_s21 + $0x20] sm:$0xff] %v346_v15 }
  0x26   : > { %349 = vst [vmem:[%s290_s21 + $0x28] sm:$0xff] %v348_v16 }
  0x27   : > { %351 = vst [vmem:[%s290_s21 + $0x30] sm:$0xff] %v350_v17 }
  0x28   : > { %353 = vst [vmem:[%s290_s21 + $0x38] sm:$0xff] %v352_v18 }
  0x29   : > { %355 = vst [vmem:[%s290_s21 + $0x40] sm:$0xff] %v354_v19 }
  0x2a PF: > { %p719_p5 = scmp.ge.s32.totalorder %s866_s27, 1  ;;  %p360_p6 = scmp.lt.s32.totalorder %s866_s27, 3 }
  0x2c   : > { %p361_p7 = pnand %p719_p5, %p360_p6 }
  0x2d   : > { %s367_s22 = sand.u32 (!%p361_p7), 1, %s858_s25   ;;  %s720_s9 = sshll.u32 (!%p361_p7), %s711_s2, 1 }
  0x2e   : > { %364 = sbr.rel (%p361_p7) target bundleno = 234 (0xea), region = 112  ;;  %p409_p8 = scmp.lt.s32.totalorder (!%p361_p7), %s720_s9, 3 }
  0x2f   : > { %s813_s23 = smul.u32 (!%p361_p7), 72, %s367_s22 }
  0x31   : > { %s960_s24 = scalar_lea.vmem (!%p361_p7), [#allocation5], %s813_s23  ;;  %s963_s28 = scalar_lea.vmem (!%p361_p7), [#allocation4], %s813_s23 }
  0x33   : > { %v868_v20 = vmov 0   ;;  %v523_v21 = vld [vmem:[#allocation3] sm:$0x1]  ;;  %v423_v25 = vld [vmem:[%s963_s28 + $0x40] sm:$0xff]  ;;  %vm480_vm0 = vcmask 1043456   ;;  %vm476_vm1 = vcmask 588800  }
  0x34   : > { %839 = vset.pattern.permute.xlu0 %v868_v20  ;;  %v522_v22 = vld [vmem:[%s960_s24 + $0x40] sm:$0xff]  ;;  %v781_v26 = vld [vmem:[%s960_s24 + $0x30] sm:$0xf]  ;;  %v810_v27 = vld [vmem:[%s960_s24 + $0x34] sm:$0xf0]  ;;  %v456_v28 = vunpack.c.l.b16 %v423_v25  ;;  %v457_v29 = vunpack.c.h.b16 %v423_v25  ;;  %s1035_s9 = smov (!%p409_p8, %s720_s9), 3 }
  0x35   : > { %526 = vperm.xlu0 %839, %v523_v21   ;;  %v555_v23 = vunpack.c.l.b16 %v522_v22  ;;  %v556_v24 = vunpack.c.h.b16 %v522_v22  ;;  %v809_v32 = vld [vmem:[%s960_s24 + $0x34] sm:$0xf]  ;;  %v783_v33 = vld [vmem:[%s960_s24 + $0x38] sm:$0xf0]  ;;  %v747_v34 = vld [vmem:[%s963_s28 + $0x30] sm:$0xf]  ;;  %v782_v43 = vor.u32 %v810_v27, %v781_v26  ;;  %s411_s10 = scalar_lea.vmem %s1028_s6, %s1035_s9 }
  0x36   : > { %v466_v35 = vpack.c.b16 %v456_v28, %v456_v28  ;;  %v467_v36 = vpack.c.b16 %v457_v29, %v457_v29  ;;  %v802_v37 = vld [vmem:[%s963_s28 + $0x34] sm:$0xf0]  ;;  %v801_v38 = vld [vmem:[%s963_s28 + $0x34] sm:$0xf]  ;;  %v749_v39 = vld [vmem:[%s963_s28 + $0x38] sm:$0xf0]  ;;  %v786_v44 = vor.u32 %v809_v32, %v783_v33 }
  0x37   : > { %v565_v30 = vpack.c.b16 %v555_v23, %v555_v23  ;;  %v566_v31 = vpack.c.b16 %v556_v24, %v556_v24  ;;  %v424_v42 = vld [vmem:[#allocation2] sm:$0x1]  ;;  %v773_v47 = vld [vmem:[%s960_s24 + $0x20] sm:$0xf]  ;;  %v808_v48 = vld [vmem:[%s960_s24 + $0x24] sm:$0xf0]  ;;  %v748_v51 = vor.u32 %v802_v37, %v747_v34  ;;  %v752_v52 = vor.u32 %v801_v38, %v749_v39 }
  0x38   : > { %v482_v45 = vsel %vm480_vm0, %v466_v35, 0  ;;  %v485_v46 = vsel %vm480_vm0, %v467_v36, 0  ;;  %v807_v49 = vld [vmem:[%s960_s24 + $0x24] sm:$0xf]  ;;  %v775_v50 = vld [vmem:[%s960_s24 + $0x28] sm:$0xf0]  ;;  %v774_v57 = vor.u32 %v808_v48, %v773_v47 }
  0x39   : > { %v579_v40 = vsel %vm480_vm0, %v565_v30, 0  ;;  %v582_v41 = vsel %vm480_vm0, %v566_v31, 0  ;;  %490 = vmatpush.bf16.msra.mxu0 %v482_v45  ;;  %503 = vmatpush.bf16.msra.mxu1 %v485_v46  ;;  %v739_v53 = vld [vmem:[%s963_s28 + $0x20] sm:$0xf]  ;;  %v800_v54 = vld [vmem:[%s963_s28 + $0x24] sm:$0xf0]  ;;  %v778_v58 = vor.u32 %v807_v49, %v775_v50 }
  0x3a   : > { %587 = vmatpush.bf16.msra.mxu2 %v579_v40  ;;  %600 = vmatpush.bf16.msra.mxu3 %v582_v41  ;;  %v799_v55 = vld [vmem:[%s963_s28 + $0x24] sm:$0xf]  ;;  %v741_v56 = vld [vmem:[%s963_s28 + $0x28] sm:$0xf0]  ;;  %v765_v59 = vld [vmem:[%s960_s24 + $0x10] sm:$0xf]  ;;  %v740_v63 = vor.u32 %v800_v54, %v739_v53 }
  0x3b   : > { %v806_v60 = vld [vmem:[%s960_s24 + $0x14] sm:$0xf0]  ;;  %v805_v61 = vld [vmem:[%s960_s24 + $0x14] sm:$0xf]  ;;  %v767_v62 = vld [vmem:[%s960_s24 + $0x18] sm:$0xf0]  ;;  %v744_v0 = vor.u32 %v799_v55, %v741_v56 }
  0x3c   : > { %v731_v1 = vld [vmem:[%s963_s28 + $0x10] sm:$0xf]  ;;  %v798_v2 = vld [vmem:[%s963_s28 + $0x14] sm:$0xf0]  ;;  %v797_v3 = vld [vmem:[%s963_s28 + $0x14] sm:$0xf]  ;;  %v766_v5 = vor.u32 %v806_v60, %v765_v59  ;;  %v770_v6 = vor.u32 %v805_v61, %v767_v62 }
  0x3d   : > { %427 = vperm.xlu0 %839, %v424_v42   ;;  %491 = vmatpush.bf16.msra.mxu0 %v748_v51  ;;  %v733_v4 = vld [vmem:[%s963_s28 + $0x18] sm:$0xf0]  ;;  %v757_v7 = vld [vmem:[%s960_s24] sm:$0xf]  ;;  %v804_v8 = vld [vmem:[%s960_s24 + $0x4] sm:$0xf0]  ;;  %v732_v11 = vor.u32 %v798_v2, %v731_v1  ;;  %v632_v51 = vlaneseq }
  0x3e   : > { %588 = vmatpush.bf16.msra.mxu2 %v782_v43  ;;  %601 = vmatpush.bf16.msra.mxu3 %v786_v44  ;;  %v803_v9 = vld [vmem:[%s960_s24 + $0x4] sm:$0xf]  ;;  %v759_v10 = vld [vmem:[%s960_s24 + $0x8] sm:$0xf0]  ;;  %v736_v12 = vor.u32 %v797_v3, %v733_v4  ;;  %v723_v13 = vld [vmem:[%s963_s28] sm:$0xf]  ;;  %v758_v17 = vor.u32 %v804_v8, %v757_v7 }
  0x3f   : > { %504 = vmatpush.bf16.msra.mxu1 %v752_v52  ;;  %v796_v14 = vld [vmem:[%s963_s28 + $0x4] sm:$0xf0]  ;;  %v795_v15 = vld [vmem:[%s963_s28 + $0x4] sm:$0xf]  ;;  %v725_v16 = vld [vmem:[%s963_s28 + $0x8] sm:$0xf0]  ;;  %v762_v18 = vor.u32 %v803_v9, %v759_v10 }
  0x40   : > { %v724_v19 = vor.u32 %v796_v14, %v723_v13  ;;  %v728_v20 = vor.u32 %v795_v15, %v725_v16  ;;  %v513_v21 = vld [vmem:[%s1026_s3] sm:$0x1]  ;;  %vm629_vm4 = vcmask 1040384   ;;  %vm634_vm5 = vcmp.lt.s32.totalorder %v632_v51, 256 }
  0x41   : > { %492 = vmatpush.bf16.msra.mxu0 %v740_v63  ;;  %v414_v22 = vld [vmem:[%s1023_s0] sm:$0x1] }
  0x42   : > { %589 = vmatpush.bf16.msra.mxu2 %v774_v57  ;;  %602 = vmatpush.bf16.msra.mxu3 %v778_v58 }
  0x43   : > { %505 = vmatpush.bf16.msra.mxu1 %v744_v0 }
  0x45   : > { %493 = vmatpush.bf16.msra.mxu0 %v732_v11 }
  0x46   : > { %590 = vmatpush.bf16.msra.mxu2 %v766_v5  ;;  %603 = vmatpush.bf16.msra.mxu3 %v770_v6 }
  0x47   : > { %506 = vmatpush.bf16.msra.mxu1 %v736_v12 }
  0x49   : > { %494 = vmatpush.bf16.msra.mxu0 %v724_v19 }
  0x4a   : > { %591 = vmatpush.bf16.msra.mxu2 %v758_v17  ;;  %604 = vmatpush.bf16.msra.mxu3 %v762_v18 }
  0x4b   : > { %507 = vmatpush.bf16.msra.mxu1 %v728_v20 }
  0x4c   : > { %753 = vmatmul.msk.bf16.vlgmr.msra.gmra.mxu0 %vm476_vm1, %v414_v22 }
  0x4d   : > { %787 = vmatmul.msk.bf16.vlgmr.msra.gmra.mxu2 %vm476_vm1, %v513_v21  ;;  %788 = vmatmul.msk.bf16.vlgmr.msra.gmra.mxu3 %vm476_vm1, %v513_v21 }
  0x4e   : > { %754 = vmatmul.msk.bf16.vlgmr.msra.gmra.mxu1 %vm476_vm1, %v414_v22 }
  0xa7   : > { %v527_v25 = vpop.permute.xlu0 %526 }
  0xa8   : > { %v529_v26 = vperm.slane %v527_v25, 0 }
  0xaf   : > { %v428_v39 = vpop.permute.xlu0 %427 }
  0xb0   : > { %v430_v40 = vperm.slane %v428_v39, 0 }
  0xc9   : > { %v496_v23 = vpop.f32.mrf.mxu0 }
  0xca   : > { %v497_v45 = vadd.f32 %v496_v23, %v430_v40 }
  0xcb   : > { %v509_v24 = vpop.f32.mrf.mxu1 }
  0xcc   : > { %v510_v46 = vadd.f32 %v509_v24, %v430_v40 }
  0xd0   : > { %v593_v27 = vpop.f32.mrf.mxu2  ;;  %v606_v28 = vpop.f32.mrf.mxu3 }
  0xd1   : > { %v594_v29 = vadd.f32 %v593_v27, %v529_v26  ;;  %v607_v30 = vadd.f32 %v606_v28, %v529_v26  ;;  %v498_v34 = vpop.f32.mrf.mxu0 }
  0xd3   : > { %v612_v31 = vmin.f32 %v594_v29, 0.0  ;;  %v613_v32 = vmin.f32 %v607_v30, 0.0  ;;  %v511_v33 = vpop.f32.mrf.mxu1  ;;  %vm610_vm2 = vcmp.gt.f32.partialorder %v594_v29, 0.0  ;;  %vm611_vm3 = vcmp.gt.f32.partialorder %v607_v30, 0.0 }
  0xd5   : > { %v614_v35 = vmul.f32 1.442695, %v612_v31  ;;  %v616_v36 = vmul.f32 1.442695, %v613_v32 }
  0xd7   : > { %840 = vpow2.f32 %v614_v35 }
  0xd8   : > { %842 = vpow2.f32 %v616_v36  ;;  %v595_v37 = vpop.f32.mrf.mxu2  ;;  %v608_v38 = vpop.f32.mrf.mxu3 }
  0xdd   : > { %v841_v41 = vpop.eup %840 }
  0xde   : > { %v843_v42 = vpop.eup %842  ;;  %v789_v43 = vadd.f32 -1.0, %v841_v41 }
  0xdf   : > { %v790_v44 = vadd.f32 -1.0, %v843_v42 }
  0xe0   : > { %v620_v47 = vsel %vm610_vm2, %v594_v29, %v789_v43 }
  0xe1   : > { %v621_v48 = vsel %vm611_vm3, %v607_v30, %v790_v44  ;;  %v622_v49 = vadd.f32 %v620_v47, %v497_v45 }
  0xe2   : > { %v623_v50 = vadd.f32 %v621_v48, %v510_v46 }
  0xe3   : > { %v624_v53 = vmax.f32 %v622_v49, 0.0 }
  0xe4   : > { %v625_v52 = vmax.f32 %v623_v50, 0.0 }
  0xe6   : > { %v628_v54 = vrot.slane %v625_v52, 7 }
  0xe8   : > { %v630_v55 = vsel %vm629_vm4, %v624_v53, %v628_v54 }
  0xe9   : > { %636 = vst.msk [vmem:[%s411_s10] sm:$0x3] %vm634_vm5, %v630_v55 }
  0xea PF: > { %p17_p9 = scmp.ge.s32.totalorder %s927_s5, 4   ;;  %s1031_s25 = smov %s862_s26 }
  0xeb   : > { %s1032_s26 = smov %s936_s30  ;;  %s1033_s27 = smov %s927_s5 }
  0xec   :  { %19 = sbr.rel (!%p17_p9) target bundleno = 6 (0x6), region = 163 }

</bundles_post_ra>
